<compile_context>
chip_gen: v5e
topology: v5e:2x2
jax: 0.10.0
libtpu: 0.0.40
codegen_flags: <defaults>
</compile_context>

<pallas_src>
import functools

import jax
import jax.numpy as jnp
from jax.experimental import pallas as pl
from jax.experimental.pallas import tpu as pltpu

_TILE_PREFS = (512, 256, 128)   # adaptive tile candidates (largest first)


def _round_up(x, m):
    return ((x + m - 1) // m) * m


def _pick_tile(n, prefs=_TILE_PREFS):
    """Largest tile that still leaves >=2 blocks on the parallel axis
    (so both v7x TensorCores get work via dimension_semantics='parallel')."""
    for t in prefs:
        if (n + t - 1) // t >= 2:
            return t
    return prefs[-1]


# ----------------------------------------------------------------------------
# Kernel 1: row-tiled dense linear  Y = X @ W + b  (bf16 MXU operands, f32
# accumulate, bf16 output so the aggregation GEMMs consume it directly).
# ----------------------------------------------------------------------------
def _linear_kernel(x_ref, w_ref, b_ref, o_ref):
    y = jnp.dot(x_ref[...], w_ref[...], preferred_element_type=jnp.float32)
    o_ref[...] = (y + b_ref[...]).astype(o_ref.dtype)


def linear(x, w, b, *, tile, out_dtype=jnp.bfloat16):
    n, d_in = x.shape
    d_out = w.shape[1]
    assert n % tile == 0
    b2 = b.reshape(1, d_out).astype(jnp.float32)
    return pl.pallas_call(
        _linear_kernel,
        out_shape=jax.ShapeDtypeStruct((n, d_out), out_dtype),
        grid_spec=pltpu.PrefetchScalarGridSpec(
            num_scalar_prefetch=0,
            grid=(n // tile,),
            in_specs=[
                pl.BlockSpec((tile, d_in), lambda i: (i, 0)),
                pl.BlockSpec((d_in, d_out), lambda i: (0, 0)),
                pl.BlockSpec((1, d_out), lambda i: (0, 0)),
            ],
            out_specs=pl.BlockSpec((tile, d_out), lambda i: (i, 0)),
        ),
        compiler_params=pltpu.CompilerParams(dimension_semantics=("parallel",)),
        cost_estimate=pl.CostEstimate(
            flops=2 * n * d_in * d_out,
            transcendentals=0,
            bytes_accessed=n * d_in * 2 + d_in * d_out * 2 + n * d_out * 2,
        ),
    )(x.astype(jnp.bfloat16), w.astype(jnp.bfloat16), b2)


# ----------------------------------------------------------------------------
# Kernel 2: literal -> clause mean aggregation, fused with the W_cl linear.
#   cembs[c, :] = relu( invdeg_c[c] * sum_l A[c, l] * XW[l, :] )       (f32 out,
#                                                            last iteration only)
#   ywT[:, c]   = W_cl^T @ cembs[c, :] + b_cl                          (bf16 out,
#                                                 pre-transposed: [vemb, n_c])
# Grid: (clause_tiles [parallel], literal_tiles [arbitrary reduction]).
# ----------------------------------------------------------------------------
def _l2c_fused_kernel(a_ref, xw_ref, inv_ref, wT_ref, bcol_ref, *refs,
                      emit_cembs):
    if emit_cembs:
        cembs_ref, ywT_ref, acc_ref = refs
    else:
        ywT_ref, acc_ref = refs

    @pl.when(pl.program_id(1) == 0)
    def _():
        acc_ref[...] = jnp.zeros_like(acc_ref)

    acc_ref[...] += jnp.dot(a_ref[...], xw_ref[...],
                            preferred_element_type=jnp.float32)

    @pl.when(pl.program_id(1) == pl.num_programs(1) - 1)
    def _():
        # mean-scale + relu, once per output tile, f32 on the VPU
        cembs = jnp.maximum(acc_ref[...] * inv_ref[...], 0.0)   # (T_C, cemb)
        if emit_cembs:
            cembs_ref[...] = cembs.astype(cembs_ref.dtype)
        # Fused W_cl linear, emitted transposed: one aligned (T_C,128)->(128,T_C)
        # f32 transpose, then a lane-wide (vemb, cemb) @ (cemb, T_C) bf16 matmul.
        cembT = jnp.transpose(cembs).astype(jnp.bfloat16)        # (cemb, T_C)
        ywT = jnp.dot(wT_ref[...], cembT,
                      preferred_element_type=jnp.float32) + bcol_ref[...]
        ywT_ref[...] = ywT.astype(ywT_ref.dtype)


def agg_lit_to_clause_fused(a_bf, xw_bf, invdeg_c, w_cl, b_cl,
                            *, t_c, t_l, emit_cembs):
    n_c, n_l = a_bf.shape
    cemb = xw_bf.shape[1]
    vemb = w_cl.shape[1]
    assert n_c % t_c == 0 and n_l % t_l == 0
    inv2 = invdeg_c.reshape(n_c, 1).astype(jnp.float32)
    # NOTE: the (T,1) invdeg block pads to 128 lanes in VMEM (~0.5 MiB at T=512)
    # but is not re-DMA'd across the reduction axis; acceptable at these tiles.
    wT = jnp.transpose(w_cl).astype(jnp.bfloat16)        # (vemb, cemb)
    bcol = b_cl.reshape(vemb, 1).astype(jnp.float32)

    if emit_cembs:
        out_shape = (jax.ShapeDtypeStruct((n_c, cemb), jnp.float32),
                     jax.ShapeDtypeStruct((vemb, n_c), jnp.bfloat16))
        out_specs = [pl.BlockSpec((t_c, cemb), lambda i, k: (i, 0)),
                     pl.BlockSpec((vemb, t_c), lambda i, k: (0, i))]
    else:
        out_shape = jax.ShapeDtypeStruct((vemb, n_c), jnp.bfloat16)
        out_specs = pl.BlockSpec((vemb, t_c), lambda i, k: (0, i))

    res = pl.pallas_call(
        functools.partial(_l2c_fused_kernel, emit_cembs=emit_cembs),
        out_shape=out_shape,
        grid_spec=pltpu.PrefetchScalarGridSpec(
            num_scalar_prefetch=0,
            grid=(n_c // t_c, n_l // t_l),
            in_specs=[
                pl.BlockSpec((t_c, t_l), lambda i, k: (i, k)),     # A tile
                pl.BlockSpec((t_l, cemb), lambda i, k: (k, 0)),    # XW tile
                pl.BlockSpec((t_c, 1), lambda i, k: (i, 0)),       # invdeg_c
                pl.BlockSpec((vemb, cemb), lambda i, k: (0, 0)),   # W_cl^T
                pl.BlockSpec((vemb, 1), lambda i, k: (0, 0)),      # b_cl column
            ],
            out_specs=out_specs,
            scratch_shapes=[pltpu.VMEM((t_c, cemb), jnp.float32)],
        ),
        compiler_params=pltpu.CompilerParams(
            dimension_semantics=("parallel", "arbitrary")),
        cost_estimate=pl.CostEstimate(
            flops=2 * n_c * n_l * cemb + 2 * n_c * cemb * vemb,
            transcendentals=0,
            bytes_accessed=(n_c * n_l * 2 + n_l * cemb * 2
                            + (n_c * cemb * 4 if emit_cembs else 0)
                            + vemb * n_c * 2),
        ),
    )(a_bf, xw_bf, inv2, wT, bcol)
    if emit_cembs:
        cembs, ywT = res
        return cembs, ywT
    return None, res


# ----------------------------------------------------------------------------
# Kernel 3: clause -> literal mean aggregation + LayerNorm + tie_literals.
# Consumes the pre-transposed ywT so the reduction is a STANDARD matmul
#   accT[vemb, l] += ywT[:, c_tile] @ A[c_tile, l_tile]      (N = T_L lanes)
# and only the small (vemb, T_L) f32 accumulator is transposed once in finalize:
#   pre = relu(invdeg_l * accT.T);  y = LN(pre)*gamma + beta
#   out[l, :] = concat([y[l], y[pair(l)]])        (interleaved pos/neg pair swap)
# Grid: (literal_tiles [parallel], clause_tiles [arbitrary reduction]).
# ----------------------------------------------------------------------------
def _c2l_ln_tie_kernel(ywT_ref, a_ref, inv_ref, g_ref, b_ref, o_ref, acc_ref):
    @pl.when(pl.program_id(1) == 0)
    def _():
        acc_ref[...] = jnp.zeros_like(acc_ref)

    acc_ref[...] += jnp.dot(ywT_ref[...], a_ref[...],
                            preferred_element_type=jnp.float32)

    @pl.when(pl.program_id(1) == pl.num_programs(1) - 1)
    def _():
        y = jnp.transpose(acc_ref[...])                  # (T_L, vemb) f32
        y = jnp.maximum(y * inv_ref[...], 0.0)
        # nn.LayerNorm(vemb_dim), eps=1e-5, affine — fused (tiny VPU/EUP work).
        mean = jnp.mean(y, axis=-1, keepdims=True)
        var = jnp.mean((y - mean) ** 2, axis=-1, keepdims=True)
        y = (y - mean) * jax.lax.rsqrt(var + 1e-5)
        y = y * g_ref[...] + b_ref[...]
        # tie_literals(interleaved=True): swap each (pos, neg) row pair.
        # Tile height is even and tiles start at even global rows, so pairs
        # never cross a tile boundary; XLU sublane rolls + select do the swap.
        n_rows = y.shape[0]
        down = pltpu.roll(y, shift=1, axis=0)            # down[i] = y[i-1]
        up = pltpu.roll(y, shift=n_rows - 1, axis=0)     # up[i]   = y[i+1]
        row = jax.lax.broadcasted_iota(jnp.int32, y.shape, 0)
        swapped = jnp.where((row % 2) == 0, up, down)
        # concat_origin=True -> lane-dense [T_L, 2*vemb] single bf16 store.
        o_ref[...] = jnp.concatenate([y, swapped], axis=1).astype(o_ref.dtype)


def agg_clause_to_lit_ln_tie(a_bf, ywT_bf, invdeg_l, gamma, beta, *, t_c, t_l):
    n_c, n_l = a_bf.shape
    vemb = ywT_bf.shape[0]
    assert n_l % t_l == 0 and n_c % t_c == 0 and t_l % 2 == 0
    inv2 = invdeg_l.reshape(n_l, 1).astype(jnp.float32)
    g2 = gamma.reshape(1, vemb).astype(jnp.float32)
    b2 = beta.reshape(1, vemb).astype(jnp.float32)
    return pl.pallas_call(
        _c2l_ln_tie_kernel,
        out_shape=jax.ShapeDtypeStruct((n_l, 2 * vemb), jnp.bfloat16),
        grid_spec=pltpu.PrefetchScalarGridSpec(
            num_scalar_prefetch=0,
            grid=(n_l // t_l, n_c // t_c),
            in_specs=[
                pl.BlockSpec((vemb, t_c), lambda j, k: (0, k)),    # ywT tile
                pl.BlockSpec((t_c, t_l), lambda j, k: (k, j)),     # A tile
                pl.BlockSpec((t_l, 1), lambda j, k: (j, 0)),       # invdeg_l
                pl.BlockSpec((1, vemb), lambda j, k: (0, 0)),      # gamma
                pl.BlockSpec((1, vemb), lambda j, k: (0, 0)),      # beta
            ],
            out_specs=pl.BlockSpec((t_l, 2 * vemb), lambda j, k: (j, 0)),
            scratch_shapes=[pltpu.VMEM((vemb, t_l), jnp.float32)],
        ),
        compiler_params=pltpu.CompilerParams(
            dimension_semantics=("parallel", "arbitrary")),
        cost_estimate=pl.CostEstimate(
            flops=2 * n_c * n_l * vemb,
            transcendentals=n_l,  # one rsqrt per literal row
            bytes_accessed=n_c * n_l * 2 + vemb * n_c * 2 + n_l * 2 * vemb * 2,
        ),
    )(ywT_bf, a_bf, inv2, g2, b2)


# ----------------------------------------------------------------------------
# Parameters & forward pass
# ----------------------------------------------------------------------------
def init_params(key, vlabel_dim, cemb_dim, vemb_dim, max_iters):
    params = []
    for i in range(max_iters):
        in_size = vlabel_dim if i == 0 else 2 * vemb_dim
        key, k1, k2, k3, k4 = jax.random.split(key, 5)
        params.append({
            "W_lit": jax.random.normal(k1, (in_size, cemb_dim), jnp.float32) * 0.1,
            "b_lit": jax.random.normal(k2, (cemb_dim,), jnp.float32) * 0.01,
            "W_cl": jax.random.normal(k3, (cemb_dim, vemb_dim), jnp.float32) * 0.1,
            "b_cl": jax.random.normal(k4, (vemb_dim,), jnp.float32) * 0.01,
            # nn.LayerNorm(vemb_dim) defaults
            "ln_gamma": jnp.ones((vemb_dim,), jnp.float32),
            "ln_beta": jnp.zeros((vemb_dim,), jnp.float32),
        })
    return params


def cnf_encoder_forward(params, A, vlabels, max_iters, *,
                        vemb_dim=None, cemb_dim=None):
    """CNFEncoder.forward with cp_normalization='layer', non_linearity=relu."""
    n_clauses, n_lits = A.shape

    if max_iters == 0:
        # zero-embedding branch (mirrors the PyTorch z.expand(...) outputs)
        vembs = jnp.zeros((n_lits, 2 * vemb_dim), jnp.float32)
        cembs = jnp.zeros((n_clauses, cemb_dim), jnp.float32)
        return vembs, cembs

    # Adaptive tiles: keep >=2 blocks on every parallel axis (v7x megacore),
    # but as large as possible for DMA efficiency / low grid overhead.
    t_l = _pick_tile(n_lits)
    t_c = _pick_tile(n_clauses)
    n_l_pad = _round_up(n_lits, t_l)
    n_c_pad = _round_up(n_clauses, t_c)

    # Mean-aggregation scales from the UNPADDED f32 A (loop-invariant).
    invdeg_c = 1.0 / jnp.maximum(jnp.sum(A, axis=1), 1.0)
    invdeg_l = 1.0 / jnp.maximum(jnp.sum(A, axis=0), 1.0)
    invdeg_c = jnp.zeros((n_c_pad,), jnp.float32).at[:n_clauses].set(invdeg_c)
    invdeg_l = jnp.zeros((n_l_pad,), jnp.float32).at[:n_lits].set(invdeg_l)

    # Pad A directly in bf16 (exact for 0/1); never materialize an f32 A_pad and
    # never transpose A in HBM.  Zero rows/cols of the padding contribute nothing.
    A_bf = jnp.zeros((n_c_pad, n_l_pad), jnp.bfloat16).at[
        :n_clauses, :n_lits].set(A.astype(jnp.bfloat16))

    # Literal features, bf16 handoff between iterations.
    feat = jnp.zeros((n_l_pad, vlabels.shape[1]), jnp.bfloat16).at[
        :n_lits].set(vlabels.astype(jnp.bfloat16))

    cembs = None
    for i in range(max_iters):
        p = params[i]
        last = (i == max_iters - 1)
        # CNFLayer: literal linear (bf16 MXU), then literal->clause mean + relu
        # fused with the clause linear (emitting ywT); cembs only on last iter.
        xw = linear(feat, p["W_lit"], p["b_lit"], tile=t_l)
        cembs, ywT = agg_lit_to_clause_fused(
            A_bf, xw, invdeg_c, p["W_cl"], p["b_cl"],
            t_c=t_c, t_l=t_l, emit_cembs=last)
        # clause->literal mean + relu + vnorm_layers[i] + tie_literals, fused.
        feat = agg_clause_to_lit_ln_tie(
            A_bf, ywT, invdeg_l, p["ln_gamma"], p["ln_beta"], t_c=t_c, t_l=t_l)

    vembs = feat[:n_lits].astype(jnp.float32)   # [n_lits, 2*vemb_dim]
    cembs = cembs[:n_clauses]                   # [n_clauses, cemb_dim] (f32)
    return vembs, cembs


# Pure-JAX reference (f32) for a numerical sanity check.
def _reference_forward(params, A, vlabels, max_iters):
    deg_c = jnp.maximum(jnp.sum(A, axis=1), 1.0)
    deg_l = jnp.maximum(jnp.sum(A, axis=0), 1.0)
    feat = vlabels
    cembs = None
    for i in range(max_iters):
        p = params[i]
        xw = feat @ p["W_lit"] + p["b_lit"]
        cembs = jax.nn.relu((A @ xw) / deg_c[:, None])
        yw = cembs @ p["W_cl"] + p["b_cl"]
        pre = jax.nn.relu((A.T @ yw) / deg_l[:, None])
        mean = jnp.mean(pre, axis=-1, keepdims=True)
        var = jnp.mean((pre - mean) ** 2, axis=-1, keepdims=True)
        pre = (pre - mean) * jax.lax.rsqrt(var + 1e-5)
        pre = pre * p["ln_gamma"] + p["ln_beta"]
        d = pre.shape[1]
        rc = pre.reshape(-1, 2, d)[:, ::-1, :].reshape(-1, d)
        feat = jnp.concatenate([pre, rc], axis=1)
    return feat, cembs


# ----------------------------------------------------------------------------
if __name__ == "__main__":
    # Settings (deterministic, small but tile-exercising; cemb_dim and
    # 2*vemb_dim are lane-dense multiples of 128).
    vlabel_dim = 8
    cemb_dim = 128
    vemb_dim = 64
    max_iters = 2
    n_vars = 128
    n_lits = 2 * n_vars        # 256, interleaved (pos, neg) literal pairs
    n_clauses = 384            # -> clause tile 256 (2 blocks), literal tile 128

    key = jax.random.PRNGKey(0)
    key, k_adj, k_feat, k_par = jax.random.split(key, 4)

    A = jax.random.bernoulli(k_adj, p=0.05,
                             shape=(n_clauses, n_lits)).astype(jnp.float32)
    vlabels = jax.random.normal(k_feat, (n_lits, vlabel_dim), jnp.float32)
    params = init_params(k_par, vlabel_dim, cemb_dim, vemb_dim, max_iters)

    fwd = jax.jit(functools.partial(cnf_encoder_forward, max_iters=max_iters))
    vembs, cembs = fwd(params, A, vlabels)
    vembs = jax.block_until_ready(vembs)
    cembs = jax.block_until_ready(cembs)

    assert vembs.shape == (n_lits, 2 * vemb_dim), vembs.shape
    assert cembs.shape == (n_clauses, cemb_dim), cembs.shape
    assert bool(jnp.all(jnp.isfinite(vembs))) and bool(jnp.all(jnp.isfinite(cembs)))

    # Loose sanity tolerance: the kernel path is an end-to-end bf16 MXU chain
    # (A, xw, ywT, feat handoff) with f32 accumulation, vs the f32 reference.
    v_ref, c_ref = _reference_forward(params, A, vlabels, max_iters)
    v_err = float(jnp.max(jnp.abs(vembs - v_ref)))
    c_err = float(jnp.max(jnp.abs(cembs - c_ref)))
    v_mae = float(jnp.mean(jnp.abs(vembs - v_ref)))
    c_mae = float(jnp.mean(jnp.abs(cembs - c_ref)))
    assert v_err < 0.5 and c_err < 0.5, (v_err, c_err)
    assert v_mae < 0.05 and c_mae < 0.05, (v_mae, c_mae)

    print("KERNEL_OK")
</pallas_src>

<mosaic_0001>
module attributes {stable_mosaic.version = 11 : i64} {
  func.func @_linear_kernel(%arg0: i32, %arg1: memref<128x8xbf16, #tpu.memory_space<vmem>>, %arg2: memref<8x128xbf16, #tpu.memory_space<vmem>>, %arg3: memref<1x128xf32, #tpu.memory_space<vmem>>, %arg4: memref<128x128xbf16, #tpu.memory_space<vmem>>) attributes {dimension_semantics = [#tpu.dimension_semantics<parallel>], iteration_bounds = array<i64: 2>, scalar_prefetch = 0 : i64, scratch_operands = 0 : i64, tpu.core_type = #tpu.core_type<tc>, window_params = [{transform_indices = @transform_0, window_bounds = array<i64: 128, 8>}, {pipeline_mode = #tpu.pipeline_mode<synchronous>, transform_indices = @transform_1, window_bounds = array<i64: 8, 128>}, {pipeline_mode = #tpu.pipeline_mode<synchronous>, transform_indices = @transform_2, window_bounds = array<i64: 1, 128>}, {transform_indices = @transform_3, window_bounds = array<i64: 128, 128>}]} {
    %c0 = arith.constant 0 : index
    %c0_0 = arith.constant 0 : index
    %0 = vector.load %arg1[%c0, %c0_0] : memref<128x8xbf16, #tpu.memory_space<vmem>>, vector<128x8xbf16>
    %c0_1 = arith.constant 0 : index
    %c0_2 = arith.constant 0 : index
    %1 = vector.load %arg2[%c0_1, %c0_2] : memref<8x128xbf16, #tpu.memory_space<vmem>>, vector<8x128xbf16>
    %cst = arith.constant dense<0.000000e+00> : vector<128x128xf32>
    %2 = tpu.matmul %0, %1, %cst {dimension_numbers = #tpu.dot_dimension_numbers<[1], [0], [0], [1], [0, 0, 1, 1], [], []>} : vector<128x8xbf16>, vector<8x128xbf16>, vector<128x128xf32> -> vector<128x128xf32>
    %c0_3 = arith.constant 0 : index
    %c0_4 = arith.constant 0 : index
    %3 = vector.load %arg3[%c0_3, %c0_4] : memref<1x128xf32, #tpu.memory_space<vmem>>, vector<1x128xf32>
    %4 = vector.broadcast %3 : vector<1x128xf32> to vector<128x128xf32>
    %5 = arith.addf %2, %4 : vector<128x128xf32>
    %6 = arith.truncf %5 : vector<128x128xf32> to vector<128x128xbf16>
    %c0_5 = arith.constant 0 : index
    %c0_6 = arith.constant 0 : index
    %7 = vector.load %arg4[%c0_5, %c0_6] : memref<128x128xbf16, #tpu.memory_space<vmem>>, vector<128x128xbf16>
    tpu.vector_store %arg4[%c0_5, %c0_6], %6 {strides = array<i32>} : memref<128x128xbf16, #tpu.memory_space<vmem>>, vector<128x128xbf16>,
    return
  }
  func.func @transform_0(%arg0: i32) -> (i32, i32) {
    %c0_i32 = arith.constant 0 : i32
    %c0_i32_0 = arith.constant 0 : i32
    return %arg0, %c0_i32 : i32, i32
  }
  func.func @transform_1(%arg0: i32) -> (i32, i32) {
    %c0_i32 = arith.constant 0 : i32
    %c0_i32_0 = arith.constant 0 : i32
    %c0_i32_1 = arith.constant 0 : i32
    return %c0_i32, %c0_i32_0 : i32, i32
  }
  func.func @transform_2(%arg0: i32) -> (i32, i32) {
    %c0_i32 = arith.constant 0 : i32
    %c0_i32_0 = arith.constant 0 : i32
    %c0_i32_1 = arith.constant 0 : i32
    return %c0_i32, %c0_i32_0 : i32, i32
  }
  func.func @transform_3(%arg0: i32) -> (i32, i32) {
    %c0_i32 = arith.constant 0 : i32
    %c0_i32_0 = arith.constant 0 : i32
    return %arg0, %c0_i32 : i32, i32
  }
}

module attributes {stable_mosaic.version = 11 : i64} {
  func.func @_c2l_ln_tie_kernel(%arg0: i32, %arg1: i32, %arg2: memref<64x256xbf16, #tpu.memory_space<vmem>>, %arg3: memref<256x128xbf16, #tpu.memory_space<vmem>>, %arg4: memref<128x1xf32, #tpu.memory_space<vmem>>, %arg5: memref<1x64xf32, #tpu.memory_space<vmem>>, %arg6: memref<1x64xf32, #tpu.memory_space<vmem>>, %arg7: memref<128x128xbf16, #tpu.memory_space<vmem>>, %arg8: memref<64x128xf32, #tpu.memory_space<vmem>>) attributes {dimension_semantics = [#tpu.dimension_semantics<parallel>, #tpu.dimension_semantics<arbitrary>], iteration_bounds = array<i64: 2, 2>, scalar_prefetch = 0 : i64, scratch_operands = 1 : i64, tpu.core_type = #tpu.core_type<tc>, window_params = [{transform_indices = @transform_0, window_bounds = array<i64: 64, 256>}, {transform_indices = @transform_1, window_bounds = array<i64: 256, 128>}, {transform_indices = @transform_2, window_bounds = array<i64: 128, 1>}, {pipeline_mode = #tpu.pipeline_mode<synchronous>, transform_indices = @transform_3, window_bounds = array<i64: 1, 64>}, {pipeline_mode = #tpu.pipeline_mode<synchronous>, transform_indices = @transform_4, window_bounds = array<i64: 1, 64>}, {transform_indices = @transform_5, window_bounds = array<i64: 128, 128>}]} {
    %c0_i32 = arith.constant 0 : i32
    %0 = arith.cmpi eq, %arg1, %c0_i32 : i32
    %1 = arith.extui %0 : i1 to i32
    %c0_i32_0 = arith.constant 0 : i32
    %2 = arith.cmpi ne, %1, %c0_i32_0 : i32
    scf.if %2 {
      %cst_9 = arith.constant 0.000000e+00 : f32
      %12 = vector.broadcast %cst_9 : f32 to vector<64x128xf32>
      %c0_10 = arith.constant 0 : index
      %c0_11 = arith.constant 0 : index
      %13 = vector.load %arg8[%c0_10, %c0_11] : memref<64x128xf32, #tpu.memory_space<vmem>>, vector<64x128xf32>
      tpu.vector_store %arg8[%c0_10, %c0_11], %12 {strides = array<i32>} : memref<64x128xf32, #tpu.memory_space<vmem>>, vector<64x128xf32>,
    } else {
    }
    %c0 = arith.constant 0 : index
    %c0_1 = arith.constant 0 : index
    %3 = vector.load %arg8[%c0, %c0_1] : memref<64x128xf32, #tpu.memory_space<vmem>>, vector<64x128xf32>
    %c0_2 = arith.constant 0 : index
    %c0_3 = arith.constant 0 : index
    %4 = vector.load %arg2[%c0_2, %c0_3] : memref<64x256xbf16, #tpu.memory_space<vmem>>, vector<64x256xbf16>
    %c0_4 = arith.constant 0 : index
    %c0_5 = arith.constant 0 : index
    %5 = vector.load %arg3[%c0_4, %c0_5] : memref<256x128xbf16, #tpu.memory_space<vmem>>, vector<256x128xbf16>
    %cst = arith.constant dense<0.000000e+00> : vector<64x128xf32>
    %6 = tpu.matmul %4, %5, %cst {dimension_numbers = #tpu.dot_dimension_numbers<[1], [0], [0], [1], [0, 0, 1, 1], [], []>} : vector<64x256xbf16>, vector<256x128xbf16>, vector<64x128xf32> -> vector<64x128xf32>
    %7 = arith.addf %3, %6 : vector<64x128xf32>
    %c0_6 = arith.constant 0 : index
    %c0_7 = arith.constant 0 : index
    %8 = vector.load %arg8[%c0_6, %c0_7] : memref<64x128xf32, #tpu.memory_space<vmem>>, vector<64x128xf32>
    tpu.vector_store %arg8[%c0_6, %c0_7], %7 {strides = array<i32>} : memref<64x128xf32, #tpu.memory_space<vmem>>, vector<64x128xf32>,
    %c1_i32 = arith.constant 1 : i32
    %9 = arith.cmpi eq, %arg1, %c1_i32 : i32
    %10 = arith.extui %9 : i1 to i32
    %c0_i32_8 = arith.constant 0 : i32
    %11 = arith.cmpi ne, %10, %c0_i32_8 : i32
    scf.if %11 {
      %c0_9 = arith.constant 0 : index
      %c0_10 = arith.constant 0 : index
      %12 = vector.load %arg8[%c0_9, %c0_10] : memref<64x128xf32, #tpu.memory_space<vmem>>, vector<64x128xf32>
      %13 = tpu.transpose %12, [1, 0] : vector<64x128xf32> -> vector<128x64xf32>
      %c0_11 = arith.constant 0 : index
      %c0_12 = arith.constant 0 : index
      %14 = vector.load %arg4[%c0_11, %c0_12] : memref<128x1xf32, #tpu.memory_space<vmem>>, vector<128x1xf32>
      %15 = vector.broadcast %14 : vector<128x1xf32> to vector<128x64xf32>
      %16 = arith.mulf %13, %15 : vector<128x64xf32>
      %cst_13 = arith.constant 0.000000e+00 : f32
      %17 = vector.broadcast %cst_13 : f32 to vector<128x64xf32>
      %18 = arith.maximumf %16, %17 : vector<128x64xf32>
      %cst_14 = arith.constant dense<0.000000e+00> : vector<128xf32>
      %19 = vector.multi_reduction <add>, %18, %cst_14 [1] : vector<128x64xf32> to vector<128xf32>
      %20 = vector.shape_cast %19 : vector<128xf32> to vector<128x1xf32>
      %cst_15 = arith.constant 6.400000e+01 : f32
      %21 = vector.broadcast %cst_15 : f32 to vector<128x1xf32>
      %22 = arith.divf %20, %21 : vector<128x1xf32>
      %23 = vector.broadcast %22 : vector<128x1xf32> to vector<128x64xf32>
      %24 = arith.subf %18, %23 : vector<128x64xf32>
      %25 = arith.mulf %24, %24 : vector<128x64xf32>
      %cst_16 = arith.constant dense<0.000000e+00> : vector<128xf32>
      %26 = vector.multi_reduction <add>, %25, %cst_16 [1] : vector<128x64xf32> to vector<128xf32>
      %27 = vector.shape_cast %26 : vector<128xf32> to vector<128x1xf32>
      %cst_17 = arith.constant 6.400000e+01 : f32
      %28 = vector.broadcast %cst_17 : f32 to vector<128x1xf32>
      %29 = arith.divf %27, %28 : vector<128x1xf32>
      %30 = vector.broadcast %22 : vector<128x1xf32> to vector<128x64xf32>
      %31 = arith.subf %18, %30 : vector<128x64xf32>
      %cst_18 = arith.constant 9.99999974E-6 : f32
      %32 = vector.broadcast %cst_18 : f32 to vector<128x1xf32>
      %33 = arith.addf %29, %32 : vector<128x1xf32>
      %34 = math.rsqrt %33 : vector<128x1xf32>
      %35 = vector.broadcast %34 : vector<128x1xf32> to vector<128x64xf32>
      %36 = arith.mulf %31, %35 : vector<128x64xf32>
      %c0_19 = arith.constant 0 : index
      %c0_20 = arith.constant 0 : index
      %37 = vector.load %arg5[%c0_19, %c0_20] : memref<1x64xf32, #tpu.memory_space<vmem>>, vector<1x64xf32>
      %38 = vector.broadcast %37 : vector<1x64xf32> to vector<128x64xf32>
      %39 = arith.mulf %36, %38 : vector<128x64xf32>
      %c0_21 = arith.constant 0 : index
      %c0_22 = arith.constant 0 : index
      %40 = vector.load %arg6[%c0_21, %c0_22] : memref<1x64xf32, #tpu.memory_space<vmem>>, vector<1x64xf32>
      %41 = vector.broadcast %40 : vector<1x64xf32> to vector<128x64xf32>
      %42 = arith.addf %39, %41 : vector<128x64xf32>
      %c1_i32_23 = arith.constant 1 : i32
      %43 = tpu.dynamic_rotate %42 by %c1_i32_23 dim 0 : vector<128x64xf32>, i32 -> vector<128x64xf32>
      %c127_i32 = arith.constant 127 : i32
      %44 = tpu.dynamic_rotate %42 by %c127_i32 dim 0 : vector<128x64xf32>, i32 -> vector<128x64xf32>
      %45 = tpu.iota {dimensions = array<i32: 0>} : vector<128x64xi32>
      %c2_i32 = arith.constant 2 : i32
      %c0_i32_24 = arith.constant 0 : i32
      %46 = arith.cmpi eq, %c2_i32, %c0_i32_24 : i32
      %c1_i32_25 = arith.constant 1 : i32
      %47 = arith.select %46, %c1_i32_25, %c2_i32 : i32
      %48 = vector.broadcast %47 : i32 to vector<128x64xi32>
      %49 = arith.remsi %45, %48 : vector<128x64xi32>
      %c0_i32_26 = arith.constant 0 : i32
      %50 = vector.broadcast %c0_i32_26 : i32 to vector<128x64xi32>
      %51 = arith.cmpi ne, %49, %50 : vector<128x64xi32>
      %c0_i32_27 = arith.constant 0 : i32
      %52 = vector.broadcast %c0_i32_27 : i32 to vector<128x64xi32>
      %53 = arith.cmpi slt, %49, %52 : vector<128x64xi32>
      %c0_i32_28 = arith.constant 0 : i32
      %54 = arith.cmpi slt, %47, %c0_i32_28 : i32
      %55 = vector.broadcast %54 : i1 to vector<128x64xi1>
      %56 = vector.broadcast %55 : vector<128x64xi1> to vector<128x64xi1>
      %57 = arith.xori %53, %56 : vector<128x64xi1>
      %58 = arith.andi %57, %51 : vector<128x64xi1>
      %59 = vector.broadcast %47 : i32 to vector<128x64xi32>
      %60 = arith.addi %49, %59 : vector<128x64xi32>
      %61 = arith.select %58, %60, %49 : vector<128x64xi1>, vector<128x64xi32>
      %c0_i32_29 = arith.constant 0 : i32
      %62 = vector.broadcast %c0_i32_29 : i32 to vector<128x64xi32>
      %63 = arith.cmpi eq, %61, %62 : vector<128x64xi32>
      %64 = arith.select %63, %44, %43 : vector<128x64xi1>, vector<128x64xf32>
      %65 = tpu.concatenate %42, %64 in 1 : vector<128x64xf32>, vector<128x64xf32> -> vector<128x128xf32>
      %66 = arith.truncf %65 : vector<128x128xf32> to vector<128x128xbf16>
      %c0_30 = arith.constant 0 : index
      %c0_31 = arith.constant 0 : index
      %67 = vector.load %arg7[%c0_30, %c0_31] : memref<128x128xbf16, #tpu.memory_space<vmem>>, vector<128x128xbf16>
      tpu.vector_store %arg7[%c0_30, %c0_31], %66 {strides = array<i32>} : memref<128x128xbf16, #tpu.memory_space<vmem>>, vector<128x128xbf16>,
    } else {
    }
    return
  }
  func.func @transform_0(%arg0: i32, %arg1: i32) -> (i32, i32) {
    %c0_i32 = arith.constant 0 : i32
    %c0_i32_0 = arith.constant 0 : i32
    return %c0_i32, %arg1 : i32, i32
  }
  func.func @transform_1(%arg0: i32, %arg1: i32) -> (i32, i32) {
    %c0_i32 = arith.constant 0 : i32
    return %arg1, %arg0 : i32, i32
  }
  func.func @transform_2(%arg0: i32, %arg1: i32) -> (i32, i32) {
    %c0_i32 = arith.constant 0 : i32
    %c0_i32_0 = arith.constant 0 : i32
    return %arg0, %c0_i32 : i32, i32
  }
  func.func @transform_3(%arg0: i32, %arg1: i32) -> (i32, i32) {
    %c0_i32 = arith.constant 0 : i32
    %c0_i32_0 = arith.constant 0 : i32
    %c0_i32_1 = arith.constant 0 : i32
    return %c0_i32, %c0_i32_0 : i32, i32
  }
  func.func @transform_4(%arg0: i32, %arg1: i32) -> (i32, i32) {
    %c0_i32 = arith.constant 0 : i32
    %c0_i32_0 = arith.constant 0 : i32
    %c0_i32_1 = arith.constant 0 : i32
    return %c0_i32, %c0_i32_0 : i32, i32
  }
  func.func @transform_5(%arg0: i32, %arg1: i32) -> (i32, i32) {
    %c0_i32 = arith.constant 0 : i32
    %c0_i32_0 = arith.constant 0 : i32
    return %arg0, %c0_i32 : i32, i32
  }
}

module attributes {stable_mosaic.version = 11 : i64} {
  func.func @_l2c_fused_kernel(%arg0: i32, %arg1: i32, %arg2: memref<256x128xbf16, #tpu.memory_space<vmem>>, %arg3: memref<128x128xbf16, #tpu.memory_space<vmem>>, %arg4: memref<256x1xf32, #tpu.memory_space<vmem>>, %arg5: memref<64x128xbf16, #tpu.memory_space<vmem>>, %arg6: memref<64x1xf32, #tpu.memory_space<vmem>>, %arg7: memref<64x256xbf16, #tpu.memory_space<vmem>>, %arg8: memref<256x128xf32, #tpu.memory_space<vmem>>) attributes {dimension_semantics = [#tpu.dimension_semantics<parallel>, #tpu.dimension_semantics<arbitrary>], iteration_bounds = array<i64: 2, 2>, scalar_prefetch = 0 : i64, scratch_operands = 1 : i64, tpu.core_type = #tpu.core_type<tc>, window_params = [{transform_indices = @transform_0, window_bounds = array<i64: 256, 128>}, {transform_indices = @transform_1, window_bounds = array<i64: 128, 128>}, {transform_indices = @transform_2, window_bounds = array<i64: 256, 1>}, {pipeline_mode = #tpu.pipeline_mode<synchronous>, transform_indices = @transform_3, window_bounds = array<i64: 64, 128>}, {pipeline_mode = #tpu.pipeline_mode<synchronous>, transform_indices = @transform_4, window_bounds = array<i64: 64, 1>}, {transform_indices = @transform_5, window_bounds = array<i64: 64, 256>}]} {
    %c0_i32 = arith.constant 0 : i32
    %0 = arith.cmpi eq, %arg1, %c0_i32 : i32
    %1 = arith.extui %0 : i1 to i32
    %c0_i32_0 = arith.constant 0 : i32
    %2 = arith.cmpi ne, %1, %c0_i32_0 : i32
    scf.if %2 {
      %cst_9 = arith.constant 0.000000e+00 : f32
      %12 = vector.broadcast %cst_9 : f32 to vector<256x128xf32>
      %c0_10 = arith.constant 0 : index
      %c0_11 = arith.constant 0 : index
      %13 = vector.load %arg8[%c0_10, %c0_11] : memref<256x128xf32, #tpu.memory_space<vmem>>, vector<256x128xf32>
      tpu.vector_store %arg8[%c0_10, %c0_11], %12 {strides = array<i32>} : memref<256x128xf32, #tpu.memory_space<vmem>>, vector<256x128xf32>,
    } else {
    }
    %c0 = arith.constant 0 : index
    %c0_1 = arith.constant 0 : index
    %3 = vector.load %arg8[%c0, %c0_1] : memref<256x128xf32, #tpu.memory_space<vmem>>, vector<256x128xf32>
    %c0_2 = arith.constant 0 : index
    %c0_3 = arith.constant 0 : index
    %4 = vector.load %arg2[%c0_2, %c0_3] : memref<256x128xbf16, #tpu.memory_space<vmem>>, vector<256x128xbf16>
    %c0_4 = arith.constant 0 : index
    %c0_5 = arith.constant 0 : index
    %5 = vector.load %arg3[%c0_4, %c0_5] : memref<128x128xbf16, #tpu.memory_space<vmem>>, vector<128x128xbf16>
    %cst = arith.constant dense<0.000000e+00> : vector<256x128xf32>
    %6 = tpu.matmul %4, %5, %cst {dimension_numbers = #tpu.dot_dimension_numbers<[1], [0], [0], [1], [0, 0, 1, 1], [], []>} : vector<256x128xbf16>, vector<128x128xbf16>, vector<256x128xf32> -> vector<256x128xf32>
    %7 = arith.addf %3, %6 : vector<256x128xf32>
    %c0_6 = arith.constant 0 : index
    %c0_7 = arith.constant 0 : index
    %8 = vector.load %arg8[%c0_6, %c0_7] : memref<256x128xf32, #tpu.memory_space<vmem>>, vector<256x128xf32>
    tpu.vector_store %arg8[%c0_6, %c0_7], %7 {strides = array<i32>} : memref<256x128xf32, #tpu.memory_space<vmem>>, vector<256x128xf32>,
    %c1_i32 = arith.constant 1 : i32
    %9 = arith.cmpi eq, %arg1, %c1_i32 : i32
    %10 = arith.extui %9 : i1 to i32
    %c0_i32_8 = arith.constant 0 : i32
    %11 = arith.cmpi ne, %10, %c0_i32_8 : i32
    scf.if %11 {
      %c0_9 = arith.constant 0 : index
      %c0_10 = arith.constant 0 : index
      %12 = vector.load %arg8[%c0_9, %c0_10] : memref<256x128xf32, #tpu.memory_space<vmem>>, vector<256x128xf32>
      %c0_11 = arith.constant 0 : index
      %c0_12 = arith.constant 0 : index
      %13 = vector.load %arg4[%c0_11, %c0_12] : memref<256x1xf32, #tpu.memory_space<vmem>>, vector<256x1xf32>
      %14 = vector.broadcast %13 : vector<256x1xf32> to vector<256x128xf32>
      %15 = arith.mulf %12, %14 : vector<256x128xf32>
      %cst_13 = arith.constant 0.000000e+00 : f32
      %16 = vector.broadcast %cst_13 : f32 to vector<256x128xf32>
      %17 = arith.maximumf %15, %16 : vector<256x128xf32>
      %18 = tpu.transpose %17, [1, 0] : vector<256x128xf32> -> vector<128x256xf32>
      %19 = arith.truncf %18 : vector<128x256xf32> to vector<128x256xbf16>
      %c0_14 = arith.constant 0 : index
      %c0_15 = arith.constant 0 : index
      %20 = vector.load %arg5[%c0_14, %c0_15] : memref<64x128xbf16, #tpu.memory_space<vmem>>, vector<64x128xbf16>
      %cst_16 = arith.constant dense<0.000000e+00> : vector<64x256xf32>
      %21 = tpu.matmul %20, %19, %cst_16 {dimension_numbers = #tpu.dot_dimension_numbers<[1], [0], [0], [1], [0, 0, 1, 1], [], []>} : vector<64x128xbf16>, vector<128x256xbf16>, vector<64x256xf32> -> vector<64x256xf32>
      %c0_17 = arith.constant 0 : index
      %c0_18 = arith.constant 0 : index
      %22 = vector.load %arg6[%c0_17, %c0_18] : memref<64x1xf32, #tpu.memory_space<vmem>>, vector<64x1xf32>
      %23 = vector.broadcast %22 : vector<64x1xf32> to vector<64x256xf32>
      %24 = arith.addf %21, %23 : vector<64x256xf32>
      %25 = arith.truncf %24 : vector<64x256xf32> to vector<64x256xbf16>
      %c0_19 = arith.constant 0 : index
      %c0_20 = arith.constant 0 : index
      %26 = vector.load %arg7[%c0_19, %c0_20] : memref<64x256xbf16, #tpu.memory_space<vmem>>, vector<64x256xbf16>
      tpu.vector_store %arg7[%c0_19, %c0_20], %25 {strides = array<i32>} : memref<64x256xbf16, #tpu.memory_space<vmem>>, vector<64x256xbf16>,
    } else {
    }
    return
  }
  func.func @transform_0(%arg0: i32, %arg1: i32) -> (i32, i32) {
    %c0_i32 = arith.constant 0 : i32
    return %arg0, %arg1 : i32, i32
  }
  func.func @transform_1(%arg0: i32, %arg1: i32) -> (i32, i32) {
    %c0_i32 = arith.constant 0 : i32
    %c0_i32_0 = arith.constant 0 : i32
    return %arg1, %c0_i32 : i32, i32
  }
  func.func @transform_2(%arg0: i32, %arg1: i32) -> (i32, i32) {
    %c0_i32 = arith.constant 0 : i32
    %c0_i32_0 = arith.constant 0 : i32
    return %arg0, %c0_i32 : i32, i32
  }
  func.func @transform_3(%arg0: i32, %arg1: i32) -> (i32, i32) {
    %c0_i32 = arith.constant 0 : i32
    %c0_i32_0 = arith.constant 0 : i32
    %c0_i32_1 = arith.constant 0 : i32
    return %c0_i32, %c0_i32_0 : i32, i32
  }
  func.func @transform_4(%arg0: i32, %arg1: i32) -> (i32, i32) {
    %c0_i32 = arith.constant 0 : i32
    %c0_i32_0 = arith.constant 0 : i32
    %c0_i32_1 = arith.constant 0 : i32
    return %c0_i32, %c0_i32_0 : i32, i32
  }
  func.func @transform_5(%arg0: i32, %arg1: i32) -> (i32, i32) {
    %c0_i32 = arith.constant 0 : i32
    %c0_i32_0 = arith.constant 0 : i32
    return %c0_i32, %arg0 : i32, i32
  }
}

module attributes {stable_mosaic.version = 11 : i64} {
  func.func @_linear_kernel(%arg0: i32, %arg1: memref<128x128xbf16, #tpu.memory_space<vmem>>, %arg2: memref<128x128xbf16, #tpu.memory_space<vmem>>, %arg3: memref<1x128xf32, #tpu.memory_space<vmem>>, %arg4: memref<128x128xbf16, #tpu.memory_space<vmem>>) attributes {dimension_semantics = [#tpu.dimension_semantics<parallel>], iteration_bounds = array<i64: 2>, scalar_prefetch = 0 : i64, scratch_operands = 0 : i64, tpu.core_type = #tpu.core_type<tc>, window_params = [{transform_indices = @transform_0, window_bounds = array<i64: 128, 128>}, {pipeline_mode = #tpu.pipeline_mode<synchronous>, transform_indices = @transform_1, window_bounds = array<i64: 128, 128>}, {pipeline_mode = #tpu.pipeline_mode<synchronous>, transform_indices = @transform_2, window_bounds = array<i64: 1, 128>}, {transform_indices = @transform_3, window_bounds = array<i64: 128, 128>}]} {
    %c0 = arith.constant 0 : index
    %c0_0 = arith.constant 0 : index
    %0 = vector.load %arg1[%c0, %c0_0] : memref<128x128xbf16, #tpu.memory_space<vmem>>, vector<128x128xbf16>
    %c0_1 = arith.constant 0 : index
    %c0_2 = arith.constant 0 : index
    %1 = vector.load %arg2[%c0_1, %c0_2] : memref<128x128xbf16, #tpu.memory_space<vmem>>, vector<128x128xbf16>
    %cst = arith.constant dense<0.000000e+00> : vector<128x128xf32>
    %2 = tpu.matmul %0, %1, %cst {dimension_numbers = #tpu.dot_dimension_numbers<[1], [0], [0], [1], [0, 0, 1, 1], [], []>} : vector<128x128xbf16>, vector<128x128xbf16>, vector<128x128xf32> -> vector<128x128xf32>
    %c0_3 = arith.constant 0 : index
    %c0_4 = arith.constant 0 : index
    %3 = vector.load %arg3[%c0_3, %c0_4] : memref<1x128xf32, #tpu.memory_space<vmem>>, vector<1x128xf32>
    %4 = vector.broadcast %3 : vector<1x128xf32> to vector<128x128xf32>
    %5 = arith.addf %2, %4 : vector<128x128xf32>
    %6 = arith.truncf %5 : vector<128x128xf32> to vector<128x128xbf16>
    %c0_5 = arith.constant 0 : index
    %c0_6 = arith.constant 0 : index
    %7 = vector.load %arg4[%c0_5, %c0_6] : memref<128x128xbf16, #tpu.memory_space<vmem>>, vector<128x128xbf16>
    tpu.vector_store %arg4[%c0_5, %c0_6], %6 {strides = array<i32>} : memref<128x128xbf16, #tpu.memory_space<vmem>>, vector<128x128xbf16>,
    return
  }
  func.func @transform_0(%arg0: i32) -> (i32, i32) {
    %c0_i32 = arith.constant 0 : i32
    %c0_i32_0 = arith.constant 0 : i32
    return %arg0, %c0_i32 : i32, i32
  }
  func.func @transform_1(%arg0: i32) -> (i32, i32) {
    %c0_i32 = arith.constant 0 : i32
    %c0_i32_0 = arith.constant 0 : i32
    %c0_i32_1 = arith.constant 0 : i32
    return %c0_i32, %c0_i32_0 : i32, i32
  }
  func.func @transform_2(%arg0: i32) -> (i32, i32) {
    %c0_i32 = arith.constant 0 : i32
    %c0_i32_0 = arith.constant 0 : i32
    %c0_i32_1 = arith.constant 0 : i32
    return %c0_i32, %c0_i32_0 : i32, i32
  }
  func.func @transform_3(%arg0: i32) -> (i32, i32) {
    %c0_i32 = arith.constant 0 : i32
    %c0_i32_0 = arith.constant 0 : i32
    return %arg0, %c0_i32 : i32, i32
  }
}

module attributes {stable_mosaic.version = 11 : i64} {
  func.func @_l2c_fused_kernel(%arg0: i32, %arg1: i32, %arg2: memref<256x128xbf16, #tpu.memory_space<vmem>>, %arg3: memref<128x128xbf16, #tpu.memory_space<vmem>>, %arg4: memref<256x1xf32, #tpu.memory_space<vmem>>, %arg5: memref<64x128xbf16, #tpu.memory_space<vmem>>, %arg6: memref<64x1xf32, #tpu.memory_space<vmem>>, %arg7: memref<256x128xf32, #tpu.memory_space<vmem>>, %arg8: memref<64x256xbf16, #tpu.memory_space<vmem>>, %arg9: memref<256x128xf32, #tpu.memory_space<vmem>>) attributes {dimension_semantics = [#tpu.dimension_semantics<parallel>, #tpu.dimension_semantics<arbitrary>], iteration_bounds = array<i64: 2, 2>, scalar_prefetch = 0 : i64, scratch_operands = 1 : i64, tpu.core_type = #tpu.core_type<tc>, window_params = [{transform_indices = @transform_0, window_bounds = array<i64: 256, 128>}, {transform_indices = @transform_1, window_bounds = array<i64: 128, 128>}, {transform_indices = @transform_2, window_bounds = array<i64: 256, 1>}, {pipeline_mode = #tpu.pipeline_mode<synchronous>, transform_indices = @transform_3, window_bounds = array<i64: 64, 128>}, {pipeline_mode = #tpu.pipeline_mode<synchronous>, transform_indices = @transform_4, window_bounds = array<i64: 64, 1>}, {transform_indices = @transform_5, window_bounds = array<i64: 256, 128>}, {transform_indices = @transform_6, window_bounds = array<i64: 64, 256>}]} {
    %c0_i32 = arith.constant 0 : i32
    %0 = arith.cmpi eq, %arg1, %c0_i32 : i32
    %1 = arith.extui %0 : i1 to i32
    %c0_i32_0 = arith.constant 0 : i32
    %2 = arith.cmpi ne, %1, %c0_i32_0 : i32
    scf.if %2 {
      %cst_9 = arith.constant 0.000000e+00 : f32
      %12 = vector.broadcast %cst_9 : f32 to vector<256x128xf32>
      %c0_10 = arith.constant 0 : index
      %c0_11 = arith.constant 0 : index
      %13 = vector.load %arg9[%c0_10, %c0_11] : memref<256x128xf32, #tpu.memory_space<vmem>>, vector<256x128xf32>
      tpu.vector_store %arg9[%c0_10, %c0_11], %12 {strides = array<i32>} : memref<256x128xf32, #tpu.memory_space<vmem>>, vector<256x128xf32>,
    } else {
    }
    %c0 = arith.constant 0 : index
    %c0_1 = arith.constant 0 : index
    %3 = vector.load %arg9[%c0, %c0_1] : memref<256x128xf32, #tpu.memory_space<vmem>>, vector<256x128xf32>
    %c0_2 = arith.constant 0 : index
    %c0_3 = arith.constant 0 : index
    %4 = vector.load %arg2[%c0_2, %c0_3] : memref<256x128xbf16, #tpu.memory_space<vmem>>, vector<256x128xbf16>
    %c0_4 = arith.constant 0 : index
    %c0_5 = arith.constant 0 : index
    %5 = vector.load %arg3[%c0_4, %c0_5] : memref<128x128xbf16, #tpu.memory_space<vmem>>, vector<128x128xbf16>
    %cst = arith.constant dense<0.000000e+00> : vector<256x128xf32>
    %6 = tpu.matmul %4, %5, %cst {dimension_numbers = #tpu.dot_dimension_numbers<[1], [0], [0], [1], [0, 0, 1, 1], [], []>} : vector<256x128xbf16>, vector<128x128xbf16>, vector<256x128xf32> -> vector<256x128xf32>
    %7 = arith.addf %3, %6 : vector<256x128xf32>
    %c0_6 = arith.constant 0 : index
    %c0_7 = arith.constant 0 : index
    %8 = vector.load %arg9[%c0_6, %c0_7] : memref<256x128xf32, #tpu.memory_space<vmem>>, vector<256x128xf32>
    tpu.vector_store %arg9[%c0_6, %c0_7], %7 {strides = array<i32>} : memref<256x128xf32, #tpu.memory_space<vmem>>, vector<256x128xf32>,
    %c1_i32 = arith.constant 1 : i32
    %9 = arith.cmpi eq, %arg1, %c1_i32 : i32
    %10 = arith.extui %9 : i1 to i32
    %c0_i32_8 = arith.constant 0 : i32
    %11 = arith.cmpi ne, %10, %c0_i32_8 : i32
    scf.if %11 {
      %c0_9 = arith.constant 0 : index
      %c0_10 = arith.constant 0 : index
      %12 = vector.load %arg9[%c0_9, %c0_10] : memref<256x128xf32, #tpu.memory_space<vmem>>, vector<256x128xf32>
      %c0_11 = arith.constant 0 : index
      %c0_12 = arith.constant 0 : index
      %13 = vector.load %arg4[%c0_11, %c0_12] : memref<256x1xf32, #tpu.memory_space<vmem>>, vector<256x1xf32>
      %14 = vector.broadcast %13 : vector<256x1xf32> to vector<256x128xf32>
      %15 = arith.mulf %12, %14 : vector<256x128xf32>
      %cst_13 = arith.constant 0.000000e+00 : f32
      %16 = vector.broadcast %cst_13 : f32 to vector<256x128xf32>
      %17 = arith.maximumf %15, %16 : vector<256x128xf32>
      %c0_14 = arith.constant 0 : index
      %c0_15 = arith.constant 0 : index
      %18 = vector.load %arg7[%c0_14, %c0_15] : memref<256x128xf32, #tpu.memory_space<vmem>>, vector<256x128xf32>
      tpu.vector_store %arg7[%c0_14, %c0_15], %17 {strides = array<i32>} : memref<256x128xf32, #tpu.memory_space<vmem>>, vector<256x128xf32>,
      %19 = tpu.transpose %17, [1, 0] : vector<256x128xf32> -> vector<128x256xf32>
      %20 = arith.truncf %19 : vector<128x256xf32> to vector<128x256xbf16>
      %c0_16 = arith.constant 0 : index
      %c0_17 = arith.constant 0 : index
      %21 = vector.load %arg5[%c0_16, %c0_17] : memref<64x128xbf16, #tpu.memory_space<vmem>>, vector<64x128xbf16>
      %cst_18 = arith.constant dense<0.000000e+00> : vector<64x256xf32>
      %22 = tpu.matmul %21, %20, %cst_18 {dimension_numbers = #tpu.dot_dimension_numbers<[1], [0], [0], [1], [0, 0, 1, 1], [], []>} : vector<64x128xbf16>, vector<128x256xbf16>, vector<64x256xf32> -> vector<64x256xf32>
      %c0_19 = arith.constant 0 : index
      %c0_20 = arith.constant 0 : index
      %23 = vector.load %arg6[%c0_19, %c0_20] : memref<64x1xf32, #tpu.memory_space<vmem>>, vector<64x1xf32>
      %24 = vector.broadcast %23 : vector<64x1xf32> to vector<64x256xf32>
      %25 = arith.addf %22, %24 : vector<64x256xf32>
      %26 = arith.truncf %25 : vector<64x256xf32> to vector<64x256xbf16>
      %c0_21 = arith.constant 0 : index
      %c0_22 = arith.constant 0 : index
      %27 = vector.load %arg8[%c0_21, %c0_22] : memref<64x256xbf16, #tpu.memory_space<vmem>>, vector<64x256xbf16>
      tpu.vector_store %arg8[%c0_21, %c0_22], %26 {strides = array<i32>} : memref<64x256xbf16, #tpu.memory_space<vmem>>, vector<64x256xbf16>,
    } else {
    }
    return
  }
  func.func @transform_0(%arg0: i32, %arg1: i32) -> (i32, i32) {
    %c0_i32 = arith.constant 0 : i32
    return %arg0, %arg1 : i32, i32
  }
  func.func @transform_1(%arg0: i32, %arg1: i32) -> (i32, i32) {
    %c0_i32 = arith.constant 0 : i32
    %c0_i32_0 = arith.constant 0 : i32
    return %arg1, %c0_i32 : i32, i32
  }
  func.func @transform_2(%arg0: i32, %arg1: i32) -> (i32, i32) {
    %c0_i32 = arith.constant 0 : i32
    %c0_i32_0 = arith.constant 0 : i32
    return %arg0, %c0_i32 : i32, i32
  }
  func.func @transform_3(%arg0: i32, %arg1: i32) -> (i32, i32) {
    %c0_i32 = arith.constant 0 : i32
    %c0_i32_0 = arith.constant 0 : i32
    %c0_i32_1 = arith.constant 0 : i32
    return %c0_i32, %c0_i32_0 : i32, i32
  }
  func.func @transform_4(%arg0: i32, %arg1: i32) -> (i32, i32) {
    %c0_i32 = arith.constant 0 : i32
    %c0_i32_0 = arith.constant 0 : i32
    %c0_i32_1 = arith.constant 0 : i32
    return %c0_i32, %c0_i32_0 : i32, i32
  }
  func.func @transform_5(%arg0: i32, %arg1: i32) -> (i32, i32) {
    %c0_i32 = arith.constant 0 : i32
    %c0_i32_0 = arith.constant 0 : i32
    return %arg0, %c0_i32 : i32, i32
  }
  func.func @transform_6(%arg0: i32, %arg1: i32) -> (i32, i32) {
    %c0_i32 = arith.constant 0 : i32
    %c0_i32_0 = arith.constant 0 : i32
    return %c0_i32, %arg0 : i32, i32
  }
}

</mosaic_0001>

<bundles_post_ra>
// kernel: cnf_encoder_forward.6
= control target key start
LH: loop header
LB: loop body
LE: loop exit
PB: predicated region body
PF: predicated region fallthrough
CT: control target
= control target key end

     0   :  { %8 = vsyncpa [#allocation3], 0  ;;  %s623_s12 = smov 0   ;;  %s671_s0 = inlined_call_operand.vmem [shape: bf16[256,8], index: 0, kind: input, shape index: {}]   ;;  %s672_s1 = inlined_call_operand.vmem [shape: bf16[8,128], index: 1, kind: input, shape index: {}]   ;;  %s673_s2 = inlined_call_operand.hbm [shape: f32[1,128], index: 2, kind: input, shape index: {}]   ;;  %s674_s3 = inlined_call_operand.vmem [shape: bf16[256,128], index: 3, kind: output, shape index: {}]  }
   0x1 LB: > { %s429_s13 = sadd.s32 4294967295, %s600_s12   ;;  %p431_p0 = scmp.ge.s32.totalorder %s600_s12, 1  ;;  %s600_s12 = sphi %s623_s12, %s14_s12  }
   0x2   : > { %p113_p1 = scmp.lt.s32.totalorder %s600_s12, 3  ;;  %s128_s16 = sshll.u32 %s673_s2, 4  ;;  %s129_s16 = int_to_ptr.hbm [resolvable:$true] %s128_s16 }
   0x3   : > { %p548_p3 = scmp.eq.s32.totalorder %s429_s13, 0  ;;  %s602_s17 = smov [#allocation2]  }
   0x4   : > { %p114_p2 = pnand %p431_p0, %p113_p1  ;;  %s130_s18 = sshll.u32 %s602_s17, 4  ;;  %s131_s18 = int_to_ptr.vmem [resolvable:$true] %s130_s18 }
   0x6   : > { %p544_p4 = pneg %p114_p2  ;;  %152 = sbr.rel (%p114_p2) target bundleno = 182 (0xb6), region = 32 }
   0x8   : > { %p545_p5 = pnand %p548_p3, %p544_p4 }
   0xa   : > { %547 = dma.hbm_to_vmem [thread:$0]  (!%p545_p5), %s129_s16, 16, %s131_s18, [#allocation3]  }
   0xb   : > { %595 = dma.done.wait (%p548_p3), [#allocation3], 16  }
   0xc   : > { %597 = vsyncadd (%p548_p3), [#allocation3], 4294967280  ;;  %s436_s19 = sshll.u32 %s429_s13, 4  ;;  %vm276_vm0 = vcmask 1043456   ;;  %v206_v0 = vld [vmem:[%s672_s1] sm:$0xf] }
   0xd   : > { %p178_p6 = scmp.lt.s32.totalorder %s436_s19, 31  ;;  %v278_v1 = vsel %vm276_vm0, %v206_v0, 0  ;;  %vm251_vm1 = vcmask 64512   ;;  %v559_v12 = vld [vmem:[#allocation2] ss:$0 sm:$0xff] }
   0xe   : > { %287 = vmatpush.bf16.msra.mxu0 %v278_v1  ;;  %537 = vmatpush.bf16.msra.mxu1 %v278_v1 }
   0xf   : > { %s676_s19 = smov (!%p178_p6, %s436_s19), 31  ;;  %538 = vmatpush.bf16.msra.mxu2 %v278_v1  ;;  %539 = vmatpush.bf16.msra.mxu3 %v278_v1 }
  0x10   : > { %s437_s20 = sshll.u32 %s676_s19, 2 }
  0x11   : > { %s181_s23 = scalar_lea.vmem %s671_s0, %s437_s20  ;;  %s658_s28 = scalar_lea.vmem %s674_s3, %s437_s20 }
  0x12   : > { %v482_v2 = vld [vmem:[%s181_s23] sm:$0xff]  ;;  %v484_v3 = vld [vmem:[%s181_s23 + $0x10] sm:$0xff]  ;;  %v483_v6 = vld [vmem:[%s181_s23 + $0x8] sm:$0xff] }
  0x13   : > { %v486_v4 = vld [vmem:[%s181_s23 + $0x20] sm:$0xff]  ;;  %v488_v5 = vld [vmem:[%s181_s23 + $0x30] sm:$0xff]  ;;  %472 = vmatmul.msk.bf16.vlgmr.msra.gmra.mxu0 %vm251_vm1, %v482_v2  ;;  %474 = vmatmul.msk.bf16.vlgmr.msra.gmra.mxu1 %vm251_vm1, %v484_v3  ;;  %v485_v7 = vld [vmem:[%s181_s23 + $0x18] sm:$0xff] }
  0x14   : > { %476 = vmatmul.msk.bf16.vlgmr.msra.gmra.mxu2 %vm251_vm1, %v486_v4  ;;  %478 = vmatmul.msk.bf16.vlgmr.msra.gmra.mxu3 %vm251_vm1, %v488_v5  ;;  %v487_v8 = vld [vmem:[%s181_s23 + $0x28] sm:$0xff]  ;;  %v489_v9 = vld [vmem:[%s181_s23 + $0x38] sm:$0xff] }
  0x23   : > { %473 = vmatmul.msk.bf16.gmra.mxu0 %vm251_vm1, %v483_v6  ;;  %475 = vmatmul.msk.bf16.gmra.mxu1 %vm251_vm1, %v485_v7 }
  0x24   : > { %477 = vmatmul.msk.bf16.gmra.mxu2 %vm251_vm1, %v487_v8  ;;  %479 = vmatmul.msk.bf16.gmra.mxu3 %vm251_vm1, %v489_v9 }
  0x90   : > { %v289_v10 = vpop.f32.mrf.mxu0  ;;  %v299_v11 = vpop.f32.mrf.mxu1 }
  0x91   : > { %v290_v17 = vadd.f32 %v559_v12, %v289_v10  ;;  %v300_v18 = vadd.f32 %v559_v12, %v299_v11 }
  0x97   : > { %v309_v13 = vpop.f32.mrf.mxu2  ;;  %v319_v14 = vpop.f32.mrf.mxu3 }
  0x98   : > { %v291_v15 = vpop.f32.mrf.mxu0  ;;  %v301_v16 = vpop.f32.mrf.mxu1  ;;  %v310_v25 = vadd.f32 %v559_v12, %v309_v13  ;;  %v320_v26 = vadd.f32 %v559_v12, %v319_v14 }
  0x99   : > { %v292_v19 = vadd.f32 %v559_v12, %v291_v15  ;;  %v302_v20 = vadd.f32 %v559_v12, %v301_v16 }
  0x9b   : > { %v493_v21 = vpack.c.bf16 %v292_v19, %v290_v17  ;;  %v503_v22 = vpack.c.bf16 %v302_v20, %v300_v18 }
  0x9d   : > { %494 = vst [vmem:[%s658_s28] sm:$0xff] %v493_v21  }
  0x9e   : > { %531 = vst [vmem:[%s658_s28 + $0x10] sm:$0xff] %v503_v22  }
  0x9f   : > { %v311_v23 = vpop.f32.mrf.mxu2  ;;  %v321_v24 = vpop.f32.mrf.mxu3 }
  0xa0   : > { %v312_v27 = vadd.f32 %v559_v12, %v311_v23  ;;  %v322_v28 = vadd.f32 %v559_v12, %v321_v24  ;;  %v294_v29 = vpop.f32.mrf.mxu0  ;;  %v304_v30 = vpop.f32.mrf.mxu1 }
  0xa1   : > { %v295_v37 = vadd.f32 %v559_v12, %v294_v29  ;;  %v305_v38 = vadd.f32 %v559_v12, %v304_v30 }
  0xa2   : > { %v513_v31 = vpack.c.bf16 %v312_v27, %v310_v25  ;;  %v523_v32 = vpack.c.bf16 %v322_v28, %v320_v26 }
  0xa4   : > { %533 = vst [vmem:[%s658_s28 + $0x20] sm:$0xff] %v513_v31  }
  0xa5   : > { %535 = vst [vmem:[%s658_s28 + $0x30] sm:$0xff] %v523_v32  }
  0xa7   : > { %v314_v33 = vpop.f32.mrf.mxu2  ;;  %v324_v34 = vpop.f32.mrf.mxu3 }
  0xa8   : > { %v296_v35 = vpop.f32.mrf.mxu0  ;;  %v306_v36 = vpop.f32.mrf.mxu1  ;;  %v315_v45 = vadd.f32 %v559_v12, %v314_v33  ;;  %v325_v46 = vadd.f32 %v559_v12, %v324_v34 }
  0xa9   : > { %v297_v39 = vadd.f32 %v559_v12, %v296_v35  ;;  %v307_v40 = vadd.f32 %v559_v12, %v306_v36 }
  0xab   : > { %v498_v41 = vpack.c.bf16 %v297_v39, %v295_v37  ;;  %v508_v42 = vpack.c.bf16 %v307_v40, %v305_v38 }
  0xad   : > { %530 = vst [vmem:[%s658_s28 + $0x8] sm:$0xff] %v498_v41  }
  0xae   : > { %532 = vst [vmem:[%s658_s28 + $0x18] sm:$0xff] %v508_v42  }
  0xaf   : > { %v316_v43 = vpop.f32.mrf.mxu2  ;;  %v326_v44 = vpop.f32.mrf.mxu3 }
  0xb0   : > { %v317_v47 = vadd.f32 %v559_v12, %v316_v43  ;;  %v327_v48 = vadd.f32 %v559_v12, %v326_v44 }
  0xb2   : > { %v518_v49 = vpack.c.bf16 %v317_v47, %v315_v45  ;;  %v528_v50 = vpack.c.bf16 %v327_v48, %v325_v46 }
  0xb4   : > { %534 = vst [vmem:[%s658_s28 + $0x28] sm:$0xff] %v518_v49  }
  0xb5   : > { %536 = vst [vmem:[%s658_s28 + $0x38] sm:$0xff] %v528_v50  }
  0xb6 PF: > { %s14_s12 = sadd.s32 1, %s600_s12  }
  0xb7   : > { %p11_p7 = scmp.ge.s32.totalorder %s14_s12, 4  }
  0xb9   :  { %13 = sbr.rel (!%p11_p7) target bundleno = 1 (0x1), region = 67 }
  0xbe   :  { %383 = vsyncpa [#allocation3], 1 }
  0xbf   :  { %385 = vsyncpa [#allocation3 + $0x1], 1 }

// kernel: cnf_encoder_forward.9
= control target key start
LH: loop header
LB: loop body
LE: loop exit
PB: predicated region body
PF: predicated region fallthrough
CT: control target
= control target key end

     0   :  { %s642_s12 = smov 0   ;;  %s703_s0 = inlined_call_operand.vmem [shape: bf16[256,128], index: 0, kind: input, shape index: {}]   ;;  %s704_s1 = inlined_call_operand.vmem [shape: bf16[128,128], index: 1, kind: input, shape index: {}]   ;;  %s705_s2 = inlined_call_operand.vmem [shape: f32[1,128], index: 2, kind: input, shape index: {}]   ;;  %s706_s3 = inlined_call_operand.vmem [shape: bf16[256,128], index: 3, kind: output, shape index: {}]  }
   0x1 LB: > { %s443_s13 = sadd.s32 4294967295, %s620_s12   ;;  %p447_p0 = scmp.ge.s32.totalorder %s620_s12, 1  ;;  %s620_s12 = sphi %s642_s12, %s13_s12  }
   0x2   : > { %p138_p1 = scmp.lt.s32.totalorder %s620_s12, 3 }
   0x4   : > { %p139_p2 = pnand %p447_p0, %p138_p1 }
   0x5   : > { %s448_s22 = sshll.u32 (!%p139_p2), %s443_s13, 4 }
   0x6   : > { %142 = sbr.rel (%p139_p2) target bundleno = 206 (0xce), region = 32  ;;  %p163_p3 = scmp.lt.s32.totalorder (!%p139_p2), %s448_s22, 31 }
   0xb   : > { %v533_v0 = vld [vmem:[%s704_s1 + $0x38] sm:$0xff]  ;;  %v532_v1 = vld [vmem:[%s704_s1 + $0x30] sm:$0xff]  ;;  %v531_v2 = vld [vmem:[%s704_s1 + $0x28] sm:$0xff]  ;;  %s708_s22 = smov (!%p163_p3, %s448_s22), 31 }
   0xc   : > { %306 = vmatpush.bf16.msra.mxu0 %v533_v0  ;;  %581 = vmatpush.bf16.msra.mxu1 %v533_v0  ;;  %v530_v3 = vld [vmem:[%s704_s1 + $0x20] sm:$0xff]  ;;  %v529_v4 = vld [vmem:[%s704_s1 + $0x18] sm:$0xff]  ;;  %v528_v5 = vld [vmem:[%s704_s1 + $0x10] sm:$0xff]  ;;  %s449_s29 = sshll.u32 %s708_s22, 2 }
   0xd   : > { %582 = vmatpush.bf16.msra.mxu2 %v533_v0  ;;  %583 = vmatpush.bf16.msra.mxu3 %v533_v0  ;;  %v527_v6 = vld [vmem:[%s704_s1 + $0x8] sm:$0xff]  ;;  %v526_v7 = vld [vmem:[%s704_s1] sm:$0xff]  ;;  %s166_s7 = scalar_lea.vmem %s703_s0, %s449_s29  ;;  %s690_s13 = scalar_lea.vmem %s706_s3, %s449_s29 }
   0xe   : > { %v518_v8 = vld [vmem:[%s166_s7] sm:$0xff]  ;;  %v520_v9 = vld [vmem:[%s166_s7 + $0x10] sm:$0xff]  ;;  %v519_v12 = vld [vmem:[%s166_s7 + $0x8] sm:$0xff] }
   0xf   : > { %v522_v10 = vld [vmem:[%s166_s7 + $0x20] sm:$0xff]  ;;  %v524_v11 = vld [vmem:[%s166_s7 + $0x30] sm:$0xff]  ;;  %v521_v13 = vld [vmem:[%s166_s7 + $0x18] sm:$0xff] }
  0x10   : > { %307 = vmatpush.bf16.msra.mxu0 %v532_v1  ;;  %584 = vmatpush.bf16.msra.mxu1 %v532_v1  ;;  %v523_v14 = vld [vmem:[%s166_s7 + $0x28] sm:$0xff]  ;;  %v525_v15 = vld [vmem:[%s166_s7 + $0x38] sm:$0xff]  ;;  %v613_v18 = vld [vmem:[%s705_s2] ss:$0 sm:$0xff] }
  0x11   : > { %585 = vmatpush.bf16.msra.mxu2 %v532_v1  ;;  %586 = vmatpush.bf16.msra.mxu3 %v532_v1 }
  0x14   : > { %308 = vmatpush.bf16.msra.mxu0 %v531_v2  ;;  %587 = vmatpush.bf16.msra.mxu1 %v531_v2 }
  0x15   : > { %588 = vmatpush.bf16.msra.mxu2 %v531_v2  ;;  %589 = vmatpush.bf16.msra.mxu3 %v531_v2 }
  0x18   : > { %309 = vmatpush.bf16.msra.mxu0 %v530_v3  ;;  %590 = vmatpush.bf16.msra.mxu1 %v530_v3 }
  0x19   : > { %591 = vmatpush.bf16.msra.mxu2 %v530_v3  ;;  %592 = vmatpush.bf16.msra.mxu3 %v530_v3 }
  0x1c   : > { %310 = vmatpush.bf16.msra.mxu0 %v529_v4  ;;  %593 = vmatpush.bf16.msra.mxu1 %v529_v4 }
  0x1d   : > { %594 = vmatpush.bf16.msra.mxu2 %v529_v4  ;;  %595 = vmatpush.bf16.msra.mxu3 %v529_v4 }
  0x20   : > { %311 = vmatpush.bf16.msra.mxu0 %v528_v5  ;;  %596 = vmatpush.bf16.msra.mxu1 %v528_v5 }
  0x21   : > { %597 = vmatpush.bf16.msra.mxu2 %v528_v5  ;;  %598 = vmatpush.bf16.msra.mxu3 %v528_v5 }
  0x24   : > { %312 = vmatpush.bf16.msra.mxu0 %v527_v6  ;;  %599 = vmatpush.bf16.msra.mxu1 %v527_v6 }
  0x25   : > { %600 = vmatpush.bf16.msra.mxu2 %v527_v6  ;;  %601 = vmatpush.bf16.msra.mxu3 %v527_v6 }
  0x28   : > { %313 = vmatpush.bf16.msra.mxu0 %v526_v7  ;;  %602 = vmatpush.bf16.msra.mxu1 %v526_v7 }
  0x29   : > { %603 = vmatpush.bf16.msra.mxu2 %v526_v7  ;;  %604 = vmatpush.bf16.msra.mxu3 %v526_v7 }
  0x2b   : > { %314 = vmatmul.bf16.vlgmr.msra.gmra.mxu0 %v518_v8  ;;  %324 = vmatmul.bf16.vlgmr.msra.gmra.mxu1 %v520_v9 }
  0x2c   : > { %334 = vmatmul.bf16.vlgmr.msra.gmra.mxu2 %v522_v10  ;;  %344 = vmatmul.bf16.vlgmr.msra.gmra.mxu3 %v524_v11 }
  0x3b   : > { %319 = vmatmul.bf16.gmra.mxu0 %v519_v12  ;;  %329 = vmatmul.bf16.gmra.mxu1 %v521_v13 }
  0x3c   : > { %339 = vmatmul.bf16.gmra.mxu2 %v523_v14  ;;  %349 = vmatmul.bf16.gmra.mxu3 %v525_v15 }
  0xa8   : > { %v315_v16 = vpop.f32.mrf.mxu0  ;;  %v325_v17 = vpop.f32.mrf.mxu1 }
  0xa9   : > { %v316_v23 = vadd.f32 %v613_v18, %v315_v16  ;;  %v326_v24 = vadd.f32 %v613_v18, %v325_v17 }
  0xaf   : > { %v335_v19 = vpop.f32.mrf.mxu2  ;;  %v345_v20 = vpop.f32.mrf.mxu3 }
  0xb0   : > { %v317_v21 = vpop.f32.mrf.mxu0  ;;  %v327_v22 = vpop.f32.mrf.mxu1  ;;  %v336_v31 = vadd.f32 %v613_v18, %v335_v19  ;;  %v346_v32 = vadd.f32 %v613_v18, %v345_v20 }
  0xb1   : > { %v318_v25 = vadd.f32 %v613_v18, %v317_v21  ;;  %v328_v26 = vadd.f32 %v613_v18, %v327_v22 }
  0xb3   : > { %v537_v27 = vpack.c.bf16 %v318_v25, %v316_v23  ;;  %v547_v28 = vpack.c.bf16 %v328_v26, %v326_v24 }
  0xb5   : > { %538 = vst [vmem:[%s690_s13] sm:$0xff] %v537_v27  }
  0xb6   : > { %575 = vst [vmem:[%s690_s13 + $0x10] sm:$0xff] %v547_v28  }
  0xb7   : > { %v337_v29 = vpop.f32.mrf.mxu2  ;;  %v347_v30 = vpop.f32.mrf.mxu3 }
  0xb8   : > { %v338_v33 = vadd.f32 %v613_v18, %v337_v29  ;;  %v348_v34 = vadd.f32 %v613_v18, %v347_v30  ;;  %v320_v35 = vpop.f32.mrf.mxu0  ;;  %v330_v36 = vpop.f32.mrf.mxu1 }
  0xb9   : > { %v321_v43 = vadd.f32 %v613_v18, %v320_v35  ;;  %v331_v44 = vadd.f32 %v613_v18, %v330_v36 }
  0xba   : > { %v557_v37 = vpack.c.bf16 %v338_v33, %v336_v31  ;;  %v567_v38 = vpack.c.bf16 %v348_v34, %v346_v32 }
  0xbc   : > { %577 = vst [vmem:[%s690_s13 + $0x20] sm:$0xff] %v557_v37  }
  0xbd   : > { %579 = vst [vmem:[%s690_s13 + $0x30] sm:$0xff] %v567_v38  }
  0xbf   : > { %v340_v39 = vpop.f32.mrf.mxu2  ;;  %v350_v40 = vpop.f32.mrf.mxu3 }
  0xc0   : > { %v322_v41 = vpop.f32.mrf.mxu0  ;;  %v332_v42 = vpop.f32.mrf.mxu1  ;;  %v341_v51 = vadd.f32 %v613_v18, %v340_v39  ;;  %v351_v52 = vadd.f32 %v613_v18, %v350_v40 }
  0xc1   : > { %v323_v45 = vadd.f32 %v613_v18, %v322_v41  ;;  %v333_v46 = vadd.f32 %v613_v18, %v332_v42 }
  0xc3   : > { %v542_v47 = vpack.c.bf16 %v323_v45, %v321_v43  ;;  %v552_v48 = vpack.c.bf16 %v333_v46, %v331_v44 }
  0xc5   : > { %574 = vst [vmem:[%s690_s13 + $0x8] sm:$0xff] %v542_v47  }
  0xc6   : > { %576 = vst [vmem:[%s690_s13 + $0x18] sm:$0xff] %v552_v48  }
  0xc7   : > { %v342_v49 = vpop.f32.mrf.mxu2  ;;  %v352_v50 = vpop.f32.mrf.mxu3 }
  0xc8   : > { %v343_v53 = vadd.f32 %v613_v18, %v342_v49  ;;  %v353_v54 = vadd.f32 %v613_v18, %v352_v50 }
  0xca   : > { %v562_v55 = vpack.c.bf16 %v343_v53, %v341_v51  ;;  %v572_v56 = vpack.c.bf16 %v353_v54, %v351_v52 }
  0xcc   : > { %578 = vst [vmem:[%s690_s13 + $0x28] sm:$0xff] %v562_v55  }
  0xcd   : > { %580 = vst [vmem:[%s690_s13 + $0x38] sm:$0xff] %v572_v56  }
  0xce PF: > { %s13_s12 = sadd.s32 1, %s620_s12  }
  0xcf   : > { %p10_p4 = scmp.ge.s32.totalorder %s13_s12, 4  }
  0xd1   :  { %12 = sbr.rel (!%p10_p4) target bundleno = 1 (0x1), region = 62 }

// kernel: cnf_encoder_forward.8
= control target key start
LH: loop header
LB: loop body
LE: loop exit
PB: predicated region body
PF: predicated region fallthrough
CT: control target
= control target key end

     0   :  { %s3408_s0 = inlined_call_operand.vmem [shape: bf16[64,512], index: 0, kind: input, shape index: {}]   ;;  %s3409_s1 = inlined_call_operand.vmem [shape: bf16[512,256], index: 1, kind: input, shape index: {}]   ;;  %s3410_s2 = inlined_call_operand.vmem [shape: f32[256,1], index: 2, kind: input, shape index: {}]   ;;  %s3411_s3 = inlined_call_operand.vmem [shape: f32[1,64], index: 3, kind: input, shape index: {}]   ;;  %s3412_s4 = inlined_call_operand.vmem [shape: f32[1,64], index: 4, kind: input, shape index: {}]   ;;  %s3413_s5 = inlined_call_operand.vmem [shape: bf16[256,128], index: 5, kind: output, shape index: {}]  }
   0x1   :  { %3414 = sst [smem:[#allocation5_spill]] %s3408_s0 }
   0x2   :  { %3415 = sst [smem:[#allocation6_spill]] %s3409_s1 }
   0x3   :  { %s2354_s18 = smov 0   ;;  %s2356_s19 = smov 0  }
   0x4   :  { %s2358_s20 = smov 0   ;;  %s2360_s21 = smov 0  }
   0x5   :  { %s2362_s22 = smov 0   ;;  %s2364_s23 = smov 0  }
   0x6   :  { %s2366_s24 = smov 0   ;;  %s2368_s25 = smov 0  }
   0x7   :  { %s2370_s26 = smov 0  }
   0x8 LB: > { %s24_s27 = sadd.s32 1, %s2310_s24  ;;  %s27_s28 = sadd.s32 1, %s2314_s25  ;;  %s2318_s26 = sphi %s2370_s26, %s15_s26   ;;  %s2314_s25 = sphi %s2368_s25, %s3459_s25   ;;  %s2310_s24 = sphi %s2366_s24, %s3458_s24   ;;  %s2306_s23 = sphi %s2364_s23, %s3457_s23   ;;  %s2302_s22 = sphi %s2362_s22, %s3456_s22   ;;  %s2298_s21 = sphi %s2360_s21, %s3455_s21   ;;  %s2294_s20 = sphi %s2358_s20, %s3454_s20   ;;  %s2290_s19 = sphi %s2356_s19, %s3453_s19   ;;  %s2286_s18 = sphi %s2354_s18, %s3452_s18  }
   0x9   : > { %p25_p0 = scmp.ge.s32.totalorder %s24_s27, 2  ;;  %s34_s29 = sadd.s32 1, %s2298_s21 }
   0xa   : > { %p41_p1 = scmp.ne.s32.totalorder %s2298_s21, %s2294_s20  ;;  %p42_p2 = scmp.eq.s32.totalorder %s2318_s26, 0 }
   0xb   : > { %s3461_s27 = smov (%p25_p0, %s24_s27), 0  ;;  %s3463_s28 = smov (!%p25_p0, %s27_s28), %s2314_s25 }
   0xc   : > { %s31_s30 = ssub.s32 %s2310_s24, %s3461_s27  ;;  %p2410_p3 = por %p42_p2, %p41_p1 }
   0xd   : > { %p29_p4 = scmp.ge.s32.totalorder %s3463_s28, 2  ;;  %p32_p5 = scmp.eq.s32.totalorder %s31_s30, 0 }
   0xe   : > { %p69_p6 = scmp.ne.s32.totalorder %s2290_s19, %s2286_s18  ;;  %s62_s11 = sadd.s32 1, %s2290_s19 }
   0xf   : > { %s3465_s28 = smov (%p29_p4, %s3463_s28), 0  ;;  %p1888_p9 = scmp.ge.s32.totalorder %s2318_s26, 4 }
  0x10   : > { %s2419_s7 = scalar_select %p32_p5, %s2298_s21, %s34_s29  }
  0x11   : > { %s58_s8 = ssub.s32 %s2314_s25, %s3465_s28  ;;  %p2423_p7 = por %p69_p6, %p42_p2 }
  0x12   : > { %s59_s10 = sor.u32 %s58_s8, %s31_s30  ;;  %195 = sbr.rel (%p1888_p9) target bundleno = 83 (0x53), region = 24 }
  0x13   : > { %p60_p8 = scmp.eq.s32.totalorder %s59_s10, 0 }
  0x15   : > { %s2429_s12 = scalar_select %p60_p8, %s2290_s19, %s62_s11  }
  0x17   : > { %198 = sbr.rel (!%p2410_p3) target bundleno = 41 (0x29), region = 28  ;;  %s200_s13 = sand.u32 (%p2410_p3), 1, %s2298_s21  }
  0x18   : > { %s2003_s14 = sshll.u32 (%p2410_p3), %s2310_s24, 3  ;;  %s1889_s15 = sshll.u32 (%p2410_p3), %s200_s13, 6 }
  0x19   : > { %s3418_s0 = sld [smem:[#allocation5_spill]] (%p2410_p3)  ;;  %s202_s30 = scalar_lea.vmem (%p2410_p3), [#allocation3], %s1889_s15 }
  0x1f   : > { %s205_s29 = scalar_lea.vmem %s3418_s0, %s2003_s14 }
  0x20   : > { %v248_v0 = vld [vmem:[%s205_s29] sm:$0xff]  ;;  %v250_v1 = vld [vmem:[%s205_s29 + $0x10] sm:$0xff] }
  0x21   : > { %v252_v2 = vld [vmem:[%s205_s29 + $0x20] sm:$0xff]  ;;  %249 = vst [vmem:[%s202_s30] sm:$0xff] %v248_v0  ;;  %v254_v3 = vld [vmem:[%s205_s29 + $0x30] sm:$0xff] }
  0x22   : > { %251 = vst [vmem:[%s202_s30 + $0x8] sm:$0xff] %v250_v1  ;;  %v256_v4 = vld [vmem:[%s205_s29 + $0x40] sm:$0xff]  ;;  %v258_v5 = vld [vmem:[%s205_s29 + $0x50] sm:$0xff] }
  0x23   : > { %253 = vst [vmem:[%s202_s30 + $0x10] sm:$0xff] %v252_v2  ;;  %v260_v6 = vld [vmem:[%s205_s29 + $0x60] sm:$0xff]  ;;  %v262_v7 = vld [vmem:[%s205_s29 + $0x70] sm:$0xff] }
  0x24   : > { %255 = vst [vmem:[%s202_s30 + $0x18] sm:$0xff] %v254_v3 }
  0x25   : > { %257 = vst [vmem:[%s202_s30 + $0x20] sm:$0xff] %v256_v4 }
  0x26   : > { %259 = vst [vmem:[%s202_s30 + $0x28] sm:$0xff] %v258_v5 }
  0x27   : > { %261 = vst [vmem:[%s202_s30 + $0x30] sm:$0xff] %v260_v6 }
  0x28   : > { %263 = vst [vmem:[%s202_s30 + $0x38] sm:$0xff] %v262_v7 }
  0x29 PF: > { %269 = sbr.rel (!%p2423_p7) target bundleno = 83 (0x53), region = 66  ;;  %s271_s6 = sand.u32 (%p2423_p7), 1, %s2290_s19  }
  0x2a   : > { %s2004_s8 = sshll.u32 (%p2423_p7), %s2310_s24, 6  ;;  %s1892_s10 = sshll.u32 (%p2423_p7), %s271_s6, 7 }
  0x2b   : > { %s276_s11 = sadd.s32 (%p2423_p7), %s2314_s25, %s2004_s8  ;;  %s3419_s1 = sld [smem:[#allocation6_spill]] (%p2423_p7) }
  0x2c   : > { %s1895_s13 = sshll.u32 (%p2423_p7), %s276_s11, 2  ;;  %s2452_s9 = scalar_lea.vmem (%p2423_p7), [#allocation4], %s1892_s10 }
  0x31   : > { %s2447_s16 = scalar_lea.vmem %s3419_s1, %s1895_s13 }
  0x32   : > { %v295_v8 = vld [vmem:[%s2447_s16] sm:$0xf]  ;;  %v297_v9 = vld [vmem:[%s2447_s16 + $0x8] sm:$0xf]  ;;  %v299_v10 = vld [vmem:[%s2447_s16 + $0x10] sm:$0xf] }
  0x33   : > { %296 = vst [vmem:[%s2452_s9] sm:$0xf] %v295_v8  ;;  %v301_v11 = vld [vmem:[%s2447_s16 + $0x18] sm:$0xf]  ;;  %v303_v12 = vld [vmem:[%s2447_s16 + $0x20] sm:$0xf] }
  0x34   : > { %298 = vst [vmem:[%s2452_s9 + $0x4] sm:$0xf] %v297_v9  ;;  %v305_v13 = vld [vmem:[%s2447_s16 + $0x28] sm:$0xf]  ;;  %v307_v14 = vld [vmem:[%s2447_s16 + $0x30] sm:$0xf] }
  0x35   : > { %300 = vst [vmem:[%s2452_s9 + $0x8] sm:$0xf] %v299_v10  ;;  %v309_v15 = vld [vmem:[%s2447_s16 + $0x38] sm:$0xf]  ;;  %v311_v16 = vld [vmem:[%s2447_s16 + $0x40] sm:$0xf] }
  0x36   : > { %302 = vst [vmem:[%s2452_s9 + $0xc] sm:$0xf] %v301_v11  ;;  %v313_v17 = vld [vmem:[%s2447_s16 + $0x48] sm:$0xf]  ;;  %v315_v18 = vld [vmem:[%s2447_s16 + $0x50] sm:$0xf] }
  0x37   : > { %304 = vst [vmem:[%s2452_s9 + $0x10] sm:$0xf] %v303_v12  ;;  %v317_v19 = vld [vmem:[%s2447_s16 + $0x58] sm:$0xf]  ;;  %v319_v20 = vld [vmem:[%s2447_s16 + $0x60] sm:$0xf] }
  0x38   : > { %306 = vst [vmem:[%s2452_s9 + $0x14] sm:$0xf] %v305_v13  ;;  %v321_v21 = vld [vmem:[%s2447_s16 + $0x68] sm:$0xf]  ;;  %v323_v22 = vld [vmem:[%s2447_s16 + $0x70] sm:$0xf] }
  0x39   : > { %308 = vst [vmem:[%s2452_s9 + $0x18] sm:$0xf] %v307_v14  ;;  %v325_v23 = vld [vmem:[%s2447_s16 + $0x78] sm:$0xf]  ;;  %v327_v24 = vld [vmem:[%s2447_s16 + $0x80] sm:$0xf] }
  0x3a   : > { %310 = vst [vmem:[%s2452_s9 + $0x1c] sm:$0xf] %v309_v15  ;;  %v329_v25 = vld [vmem:[%s2447_s16 + $0x88] sm:$0xf]  ;;  %v331_v26 = vld [vmem:[%s2447_s16 + $0x90] sm:$0xf] }
  0x3b   : > { %312 = vst [vmem:[%s2452_s9 + $0x20] sm:$0xf] %v311_v16  ;;  %v333_v27 = vld [vmem:[%s2447_s16 + $0x98] sm:$0xf]  ;;  %v335_v28 = vld [vmem:[%s2447_s16 + $0xa0] sm:$0xf] }
  0x3c   : > { %314 = vst [vmem:[%s2452_s9 + $0x24] sm:$0xf] %v313_v17  ;;  %v337_v29 = vld [vmem:[%s2447_s16 + $0xa8] sm:$0xf]  ;;  %v339_v30 = vld [vmem:[%s2447_s16 + $0xb0] sm:$0xf] }
  0x3d   : > { %316 = vst [vmem:[%s2452_s9 + $0x28] sm:$0xf] %v315_v18  ;;  %v341_v31 = vld [vmem:[%s2447_s16 + $0xb8] sm:$0xf]  ;;  %v343_v32 = vld [vmem:[%s2447_s16 + $0xc0] sm:$0xf] }
  0x3e   : > { %318 = vst [vmem:[%s2452_s9 + $0x2c] sm:$0xf] %v317_v19  ;;  %v345_v33 = vld [vmem:[%s2447_s16 + $0xc8] sm:$0xf]  ;;  %v347_v34 = vld [vmem:[%s2447_s16 + $0xd0] sm:$0xf] }
  0x3f   : > { %320 = vst [vmem:[%s2452_s9 + $0x30] sm:$0xf] %v319_v20  ;;  %v349_v35 = vld [vmem:[%s2447_s16 + $0xd8] sm:$0xf]  ;;  %v351_v36 = vld [vmem:[%s2447_s16 + $0xe0] sm:$0xf] }
  0x40   : > { %322 = vst [vmem:[%s2452_s9 + $0x34] sm:$0xf] %v321_v21  ;;  %v353_v37 = vld [vmem:[%s2447_s16 + $0xe8] sm:$0xf]  ;;  %v355_v38 = vld [vmem:[%s2447_s16 + $0xf0] sm:$0xf] }
  0x41   : > { %324 = vst [vmem:[%s2452_s9 + $0x38] sm:$0xf] %v323_v22  ;;  %v357_v39 = vld [vmem:[%s2447_s16 + $0xf8] sm:$0xf] }
  0x42   : > { %326 = vst [vmem:[%s2452_s9 + $0x3c] sm:$0xf] %v325_v23 }
  0x43   : > { %328 = vst [vmem:[%s2452_s9 + $0x40] sm:$0xf] %v327_v24 }
  0x44   : > { %330 = vst [vmem:[%s2452_s9 + $0x44] sm:$0xf] %v329_v25 }
  0x45   : > { %332 = vst [vmem:[%s2452_s9 + $0x48] sm:$0xf] %v331_v26 }
  0x46   : > { %334 = vst [vmem:[%s2452_s9 + $0x4c] sm:$0xf] %v333_v27 }
  0x47   : > { %336 = vst [vmem:[%s2452_s9 + $0x50] sm:$0xf] %v335_v28 }
  0x48   : > { %338 = vst [vmem:[%s2452_s9 + $0x54] sm:$0xf] %v337_v29 }
  0x49   : > { %340 = vst [vmem:[%s2452_s9 + $0x58] sm:$0xf] %v339_v30 }
  0x4a   : > { %342 = vst [vmem:[%s2452_s9 + $0x5c] sm:$0xf] %v341_v31 }
  0x4b   : > { %344 = vst [vmem:[%s2452_s9 + $0x60] sm:$0xf] %v343_v32 }
  0x4c   : > { %346 = vst [vmem:[%s2452_s9 + $0x64] sm:$0xf] %v345_v33 }
  0x4d   : > { %348 = vst [vmem:[%s2452_s9 + $0x68] sm:$0xf] %v347_v34 }
  0x4e   : > { %350 = vst [vmem:[%s2452_s9 + $0x6c] sm:$0xf] %v349_v35 }
  0x4f   : > { %352 = vst [vmem:[%s2452_s9 + $0x70] sm:$0xf] %v351_v36 }
  0x50   : > { %354 = vst [vmem:[%s2452_s9 + $0x74] sm:$0xf] %v353_v37 }
  0x51   : > { %356 = vst [vmem:[%s2452_s9 + $0x78] sm:$0xf] %v355_v38 }
  0x52   : > { %358 = vst [vmem:[%s2452_s9 + $0x7c] sm:$0xf] %v357_v39 }
  0x53 PF: > { %p1896_p10 = scmp.ge.s32.totalorder %s2318_s26, 1  ;;  %p454_p11 = scmp.lt.s32.totalorder %s2318_s26, 5 }
  0x55   : > { %p455_p12 = pnand %p1896_p10, %p454_p11 }
  0x56   : > { %s461_s17 = sand.u32 (!%p455_p12), 1, %s2294_s20   ;;  %s468_s29 = sand.u32 (!%p455_p12), 1, %s2286_s18  }
  0x57   : > { %458 = sbr.rel (%p455_p12) target bundleno = 993 (0x3e1), region = 111  ;;  %s1897_s30 = sshll.u32 (!%p455_p12), %s461_s17, 6 }
  0x58   : > { %s1898_s6 = sshll.u32 (!%p455_p12), %s468_s29, 7  ;;  %s1899_s8 = sshll.u32 (!%p455_p12), %s2306_s23, 4 }
  0x59   : > { %p507_p13 = scmp.lt.s32.totalorder (!%p455_p12), %s1899_s8, 31  ;;  %s2530_s1 = scalar_lea.vmem (!%p455_p12), [#allocation3], %s1897_s30 }
  0x5a   : > { %s2532_s18 = scalar_lea.vmem (!%p455_p12), [#allocation4], %s1898_s6  ;;  %p1903_p0 = scmp.ne.s32.totalorder (!%p455_p12), %s2302_s22, 0 }
  0x5c   : > { %s3467_s8 = smov (!%p507_p13, %s1899_s8), 31  ;;  %521 = sbr.rel (%p1903_p0) target bundleno = 106 (0x6a), region = 123 }
  0x5d   : > { %s1900_s10 = sshll.u32 %s3467_s8, 3  ;;  %s1902_s11 = sshll.u32 %s3467_s8, 2 }
  0x5e   : > { %s2523_s15 = scalar_lea.vmem %s3410_s2, %s1900_s10  ;;  %s2528_s0 = scalar_lea.vmem %s3413_s5, %s1902_s11 }
  0x61   : > { %v2320_v40 = vmov 0.0  }
  0x62   : > { %522 = vst [vmem:[#allocation2 + $0x30] sm:$0xff] %v2320_v40 }
  0x63   : > { %523 = vst [vmem:[#allocation2] sm:$0xff] %v2320_v40 }
  0x64   : > { %524 = vst [vmem:[#allocation2 + $0x18] sm:$0xff] %v2320_v40 }
  0x65   : > { %525 = vst [vmem:[#allocation2 + $0x10] sm:$0xff] %v2320_v40 }
  0x66   : > { %526 = vst [vmem:[#allocation2 + $0x8] sm:$0xff] %v2320_v40 }
  0x67   : > { %527 = vst [vmem:[#allocation2 + $0x20] sm:$0xff] %v2320_v40 }
  0x68   : > { %528 = vst [vmem:[#allocation2 + $0x28] sm:$0xff] %v2320_v40 }
  0x69   : > { %529 = vst [vmem:[#allocation2 + $0x38] sm:$0xff] %v2320_v40 }
  0x6a PF: > { %v2020_v41 = vld [vmem:[%s2532_s18 + $0x38] sm:$0xff]  ;;  %v2019_v43 = vld [vmem:[%s2532_s18 + $0x30] sm:$0xff]  ;;  %v2018_v45 = vld [vmem:[%s2532_s18 + $0x28] sm:$0xff]  ;;  %p2000_p1 = scmp.ne.s32.totalorder %s2302_s22, 1 }
  0x6b   : > { %v2028_v42 = vld [vmem:[%s2532_s18 + $0x78] sm:$0xff]  ;;  %714 = vmatpush.bf16.msra.mxu0 %v2020_v41  ;;  %2076 = vmatpush.bf16.msra.mxu2 %v2020_v41  ;;  %v2027_v44 = vld [vmem:[%s2532_s18 + $0x70] sm:$0xff]  ;;  %v2026_v46 = vld [vmem:[%s2532_s18 + $0x68] sm:$0xff]  ;;  %s2323_s17 = smov (!%p2000_p1), 64  }
  0x6c   : > { %743 = vmatpush.bf16.msra.mxu1 %v2028_v42  ;;  %2084 = vmatpush.bf16.msra.mxu3 %v2028_v42  ;;  %v2017_v47 = vld [vmem:[%s2532_s18 + $0x20] sm:$0xff]  ;;  %v2016_v49 = vld [vmem:[%s2532_s18 + $0x18] sm:$0xff]  ;;  %v2015_v51 = vld [vmem:[%s2532_s18 + $0x10] sm:$0xff] }
  0x6d   : > { %v2025_v48 = vld [vmem:[%s2532_s18 + $0x60] sm:$0xff]  ;;  %v2024_v50 = vld [vmem:[%s2532_s18 + $0x58] sm:$0xff]  ;;  %v2023_v52 = vld [vmem:[%s2532_s18 + $0x50] sm:$0xff] }
  0x6e   : > { %v2014_v53 = vld [vmem:[%s2532_s18 + $0x8] sm:$0xff]  ;;  %v2013_v55 = vld [vmem:[%s2532_s18] sm:$0xff]  ;;  %v1914_v5 = vld [vmem:[%s2530_s1 + $0x10] sm:$0xf] }
  0x6f   : > { %715 = vmatpush.bf16.msra.mxu0 %v2019_v43  ;;  %2077 = vmatpush.bf16.msra.mxu2 %v2019_v43  ;;  %v2022_v54 = vld [vmem:[%s2532_s18 + $0x48] sm:$0xff]  ;;  %v2021_v56 = vld [vmem:[%s2532_s18 + $0x40] sm:$0xff]  ;;  %v2008_v6 = vld [vmem:[%s2530_s1 + $0x14] sm:$0xf0] }
  0x70   : > { %744 = vmatpush.bf16.msra.mxu1 %v2027_v44  ;;  %2085 = vmatpush.bf16.msra.mxu3 %v2027_v44  ;;  %v1906_v57 = vld [vmem:[%s2530_s1] sm:$0xf]  ;;  %v2006_v58 = vld [vmem:[%s2530_s1 + $0x4] sm:$0xf0]  ;;  %v2005_v61 = vld [vmem:[%s2530_s1 + $0x4] sm:$0xf]  ;;  %v1915_v13 = vor.u32 %v2008_v6, %v1914_v5 }
  0x71   : > { %v1922_v59 = vld [vmem:[%s2530_s1 + $0x20] sm:$0xf]  ;;  %v2010_v60 = vld [vmem:[%s2530_s1 + $0x24] sm:$0xf0]  ;;  %v1908_v62 = vld [vmem:[%s2530_s1 + $0x8] sm:$0xf0]  ;;  %v1907_v1 = vor.u32 %v2006_v58, %v1906_v57 }
  0x72   : > { %v2009_v63 = vld [vmem:[%s2530_s1 + $0x24] sm:$0xf]  ;;  %v1924_v0 = vld [vmem:[%s2530_s1 + $0x28] sm:$0xf0]  ;;  %v1923_v2 = vor.u32 %v2010_v60, %v1922_v59  ;;  %v1911_v3 = vor.u32 %v2005_v61, %v1908_v62  ;;  %v1930_v7 = vld [vmem:[%s2530_s1 + $0x30] sm:$0xf] }
  0x73   : > { %716 = vmatpush.bf16.msra.mxu0 %v2018_v45  ;;  %2078 = vmatpush.bf16.msra.mxu2 %v2018_v45  ;;  %v1927_v4 = vor.u32 %v2009_v63, %v1924_v0  ;;  %v2012_v8 = vld [vmem:[%s2530_s1 + $0x34] sm:$0xf0]  ;;  %v2007_v9 = vld [vmem:[%s2530_s1 + $0x14] sm:$0xf]  ;;  %v1916_v10 = vld [vmem:[%s2530_s1 + $0x18] sm:$0xf0] }
  0x74   : > { %745 = vmatpush.bf16.msra.mxu1 %v2026_v46  ;;  %2086 = vmatpush.bf16.msra.mxu3 %v2026_v46  ;;  %v2011_v11 = vld [vmem:[%s2530_s1 + $0x34] sm:$0xf]  ;;  %v1932_v12 = vld [vmem:[%s2530_s1 + $0x38] sm:$0xf0]  ;;  %v1931_v14 = vor.u32 %v2012_v8, %v1930_v7  ;;  %v1919_v15 = vor.u32 %v2007_v9, %v1916_v10  ;;  %v534_v23 = vld [vmem:[#allocation2 + $0x8] sm:$0xff] }
  0x75   : > { %v1935_v16 = vor.u32 %v2011_v11, %v1932_v12  ;;  %v530_v18 = vld [vmem:[#allocation2 + $0x30] sm:$0xff]  ;;  %v531_v27 = vld [vmem:[#allocation2] sm:$0xff]  ;;  %v532_v37 = vld [vmem:[#allocation2 + $0x18] sm:$0xff] }
  0x76   : > { %v535_v33 = vld [vmem:[#allocation2 + $0x20] sm:$0xff]  ;;  %v536_v43 = vld [vmem:[#allocation2 + $0x28] sm:$0xff] }
  0x77   : > { %717 = vmatpush.bf16.msra.mxu0 %v2017_v47  ;;  %2079 = vmatpush.bf16.msra.mxu2 %v2017_v47  ;;  %v533_v47 = vld [vmem:[#allocation2 + $0x10] sm:$0xff] }
  0x78   : > { %746 = vmatpush.bf16.msra.mxu1 %v2025_v48  ;;  %2087 = vmatpush.bf16.msra.mxu3 %v2025_v48 }
  0x7b   : > { %718 = vmatpush.bf16.msra.mxu0 %v2016_v49  ;;  %2080 = vmatpush.bf16.msra.mxu2 %v2016_v49 }
  0x7c   : > { %747 = vmatpush.bf16.msra.mxu1 %v2024_v50  ;;  %2088 = vmatpush.bf16.msra.mxu3 %v2024_v50 }
  0x7f   : > { %719 = vmatpush.bf16.msra.mxu0 %v2015_v51  ;;  %2081 = vmatpush.bf16.msra.mxu2 %v2015_v51 }
  0x80   : > { %748 = vmatpush.bf16.msra.mxu1 %v2023_v52  ;;  %2089 = vmatpush.bf16.msra.mxu3 %v2023_v52 }
  0x83   : > { %720 = vmatpush.bf16.msra.mxu0 %v2014_v53  ;;  %2082 = vmatpush.bf16.msra.mxu2 %v2014_v53  ;;  %v537_v53 = vld [vmem:[#allocation2 + $0x38] sm:$0xff] }
  0x84   : > { %749 = vmatpush.bf16.msra.mxu1 %v2022_v54  ;;  %2090 = vmatpush.bf16.msra.mxu3 %v2022_v54 }
  0x87   : > { %721 = vmatpush.bf16.msra.mxu0 %v2013_v55  ;;  %2083 = vmatpush.bf16.msra.mxu2 %v2013_v55 }
  0x88   : > { %750 = vmatpush.bf16.msra.mxu1 %v2021_v56  ;;  %2091 = vmatpush.bf16.msra.mxu3 %v2021_v56 }
  0x8a   : > { %722 = vmatmul.bf16.vlgmr.msra.gmra.mxu0 %v1907_v1  ;;  %732 = vmatmul.bf16.vlgmr.msra.gmra.mxu2 %v1923_v2 }
  0x8b   : > { %751 = vmatmul.bf16.vlgmr.msra.gmra.mxu1 %v1911_v3  ;;  %761 = vmatmul.bf16.vlgmr.msra.gmra.mxu3 %v1927_v4 }
  0x9a   : > { %727 = vmatmul.bf16.gmra.mxu0 %v1915_v13  ;;  %737 = vmatmul.bf16.gmra.mxu2 %v1931_v14 }
  0x9b   : > { %756 = vmatmul.bf16.gmra.mxu1 %v1919_v15  ;;  %766 = vmatmul.bf16.gmra.mxu3 %v1935_v16 }
 0x107   : > { %v723_v17 = vpop.f32.mrf.mxu0 }
 0x108   : > { %v752_v19 = vpop.f32.mrf.mxu1 }
 0x109   : > { %v753_v20 = vadd.f32 %v752_v19, %v723_v17 }
 0x10b   : > { %v772_v21 = vadd.f32 %v753_v20, %v530_v18 }
 0x10d   : > { %780 = vst [vmem:[#allocation2 + $0x30] sm:$0xff] %v772_v21  ;;  %v733_v22 = vpop.f32.mrf.mxu2 }
 0x10e   : > { %v762_v24 = vpop.f32.mrf.mxu3 }
 0x10f   : > { %v763_v25 = vadd.f32 %v762_v24, %v733_v22  ;;  %v725_v26 = vpop.f32.mrf.mxu0 }
 0x110   : > { %v754_v28 = vpop.f32.mrf.mxu1 }
 0x111   : > { %v776_v29 = vadd.f32 %v763_v25, %v534_v23  ;;  %v755_v30 = vadd.f32 %v754_v28, %v725_v26 }
 0x113   : > { %784 = vst [vmem:[#allocation2 + $0x8] sm:$0xff] %v776_v29  ;;  %v773_v31 = vadd.f32 %v755_v30, %v531_v27 }
 0x115   : > { %781 = vst [vmem:[#allocation2] sm:$0xff] %v773_v31  ;;  %v735_v32 = vpop.f32.mrf.mxu2 }
 0x116   : > { %v764_v34 = vpop.f32.mrf.mxu3 }
 0x117   : > { %v765_v35 = vadd.f32 %v764_v34, %v735_v32  ;;  %v728_v36 = vpop.f32.mrf.mxu0 }
 0x118   : > { %v757_v38 = vpop.f32.mrf.mxu1 }
 0x119   : > { %v777_v39 = vadd.f32 %v765_v35, %v535_v33  ;;  %v758_v40 = vadd.f32 %v757_v38, %v728_v36 }
 0x11b   : > { %785 = vst [vmem:[#allocation2 + $0x20] sm:$0xff] %v777_v39  ;;  %v774_v41 = vadd.f32 %v758_v40, %v532_v37 }
 0x11d   : > { %782 = vst [vmem:[#allocation2 + $0x18] sm:$0xff] %v774_v41  ;;  %v738_v42 = vpop.f32.mrf.mxu2 }
 0x11e   : > { %v767_v44 = vpop.f32.mrf.mxu3 }
 0x11f   : > { %v768_v45 = vadd.f32 %v767_v44, %v738_v42  ;;  %v730_v46 = vpop.f32.mrf.mxu0 }
 0x120   : > { %v759_v48 = vpop.f32.mrf.mxu1 }
 0x121   : > { %v778_v49 = vadd.f32 %v768_v45, %v536_v43  ;;  %v760_v50 = vadd.f32 %v759_v48, %v730_v46 }
 0x123   : > { %786 = vst [vmem:[#allocation2 + $0x28] sm:$0xff] %v778_v49  ;;  %v775_v51 = vadd.f32 %v760_v50, %v533_v47 }
 0x125   : > { %783 = vst [vmem:[#allocation2 + $0x10] sm:$0xff] %v775_v51  ;;  %v740_v52 = vpop.f32.mrf.mxu2 }
 0x126   : > { %v769_v54 = vpop.f32.mrf.mxu3 }
 0x127   : > { %v770_v55 = vadd.f32 %v769_v54, %v740_v52  ;;  %791 = sbr.rel (%p2000_p1) target bundleno = 993 (0x3e1), region = 127 }
 0x129   : > { %v779_v56 = vadd.f32 %v770_v55, %v537_v53 }
 0x12b   : > { %787 = vst [vmem:[#allocation2 + $0x38] sm:$0xff] %v779_v56 }
 0x12c   : > { %v792_v57 = vld [vmem:[#allocation2 + $0x30] sm:$0xff]  ;;  %v793_v58 = vld [vmem:[#allocation2] sm:$0xff]  ;;  %v794_v59 = vld [vmem:[#allocation2 + $0x18] sm:$0xff]  ;;  %v2321_v61 = vmov 0   ;;  %vm960_vm0 = vcmask 523264  }
 0x12d   : > { %800 = vxpose.xlu0.b32.start [1/8] (short) %v792_v57, 128  ;;  %v832_v60 = vld [vmem:[%s2523_s15] sm:$0xff]  ;;  %2169 = vset.pattern.permute.xlu1 %v2321_v61  ;;  %v795_v62 = vld [vmem:[#allocation2 + $0x10] sm:$0xff]  ;;  %v833_v63 = vld [vmem:[%s2523_s15 + $0x8] sm:$0xff] }
 0x12e   : > { %2170 = vset.pattern.permute.xlu2 %v2321_v61  ;;  %850 = vperm.xlu1 %2169, %v832_v60   ;;  %v834_v0 = vld [vmem:[%s2523_s15 + $0x10] sm:$0xff]  ;;  %v796_v1 = vld [vmem:[#allocation2 + $0x8] sm:$0xff]  ;;  %v836_v2 = vld [vmem:[%s2523_s15 + $0x20] sm:$0xff] }
 0x12f   : > { %860 = vperm.xlu2 %2170, %v834_v0   ;;  %v835_v3 = vld [vmem:[%s2523_s15 + $0x18] sm:$0xff]  ;;  %v797_v4 = vld [vmem:[#allocation2 + $0x20] sm:$0xff]  ;;  %v838_v5 = vld [vmem:[%s2523_s15 + $0x30] sm:$0xff] }
 0x130   : > { %v837_v6 = vld [vmem:[%s2523_s15 + $0x28] sm:$0xff]  ;;  %v840_v8 = vld [vmem:[%s2523_s15 + $0x40] sm:$0xff]  ;;  %v839_v9 = vld [vmem:[%s2523_s15 + $0x38] sm:$0xff] }
 0x131   : > { %v798_v7 = vld [vmem:[#allocation2 + $0x28] sm:$0xff]  ;;  %v842_v11 = vld [vmem:[%s2523_s15 + $0x50] sm:$0xff]  ;;  %v844_v13 = vld [vmem:[%s2523_s15 + $0x60] sm:$0xff] }
 0x132   : > { %v799_v10 = vld [vmem:[#allocation2 + $0x38] sm:$0xff]  ;;  %v841_v12 = vld [vmem:[%s2523_s15 + $0x48] sm:$0xff]  ;;  %v846_v15 = vld [vmem:[%s2523_s15 + $0x70] sm:$0xff] }
 0x133   : > { %v843_v14 = vld [vmem:[%s2523_s15 + $0x58] sm:$0xff]  ;;  %v845_v16 = vld [vmem:[%s2523_s15 + $0x68] sm:$0xff] }
 0x134   : > { %v847_v17 = vld [vmem:[%s2523_s15 + $0x78] sm:$0xff] }
 0x135   : > { %801 = vxpose.xlu0.b32.cont [2/8] (short) %v793_v58, 128 }
 0x136   : > { %855 = vperm.xlu1 %2169, %v833_v63  }
 0x137   : > { %865 = vperm.xlu2 %2170, %v835_v3  }
 0x13d   : > { %802 = vxpose.xlu0.b32.cont [3/8] (short) %v794_v59, 128 }
 0x13e   : > { %870 = vperm.xlu1 %2169, %v836_v2  }
 0x13f   : > { %875 = vperm.xlu2 %2170, %v837_v6  }
 0x145   : > { %803 = vxpose.xlu0.b32.cont [4/8] (short) %v795_v62, 128 }
 0x146   : > { %880 = vperm.xlu1 %2169, %v838_v5  }
 0x147   : > { %885 = vperm.xlu2 %2170, %v839_v9  }
 0x14d   : > { %804 = vxpose.xlu0.b32.cont [5/8] (short) %v796_v1, 128 }
 0x14e   : > { %890 = vperm.xlu1 %2169, %v840_v8  }
 0x14f   : > { %895 = vperm.xlu2 %2170, %v841_v12  }
 0x155   : > { %805 = vxpose.xlu0.b32.cont [6/8] (short) %v797_v4, 128 }
 0x156   : > { %900 = vperm.xlu1 %2169, %v842_v11  }
 0x157   : > { %905 = vperm.xlu2 %2170, %v843_v14  }
 0x15d   : > { %806 = vxpose.xlu0.b32.cont [7/8] (short) %v798_v7, 128 }
 0x15e   : > { %910 = vperm.xlu1 %2169, %v844_v13  }
 0x15f   : > { %915 = vperm.xlu2 %2170, %v845_v16  }
 0x165   : > { %807 = vxpose.xlu0.b32.end [8/8] (short) %v799_v10, 128 }
 0x166   : > { %920 = vperm.xlu1 %2169, %v846_v15  }
 0x167   : > { %925 = vperm.xlu2 %2170, %v847_v17  }
 0x189   : > { %v861_v25 = vpop.permute.xlu2 %860 }
 0x191   : > { %v866_v30 = vpop.permute.xlu2 %865 }
 0x199   : > { %v876_v40 = vpop.permute.xlu2 %875 }
 0x1a0   : > { %v851_v18 = vpop.permute.xlu1 %850 }
 0x1a1   : > { %v886_v50 = vpop.permute.xlu2 %885 }
 0x1a8   : > { %v856_v20 = vpop.permute.xlu1 %855 }
 0x1a9   : > { %v896_v63 = vpop.permute.xlu2 %895 }
 0x1b0   : > { %v871_v35 = vpop.permute.xlu1 %870 }
 0x1b1   : > { %v906_v9 = vpop.permute.xlu2 %905 }
 0x1b8   : > { %v881_v45 = vpop.permute.xlu1 %880 }
 0x1c0   : > { %v891_v57 = vpop.permute.xlu1 %890 }
 0x1c8   : > { %v901_v4 = vpop.permute.xlu1 %900 }
 0x1cc   : > { %2211 = vset.pattern.permute.xlu0 %v2321_v61 }
 0x1d0   : > { %v911_v14 = vpop.permute.xlu1 %910 }
 0x1d1   : > { %v816_v19 = vpop.trf.xlu0 }
 0x1d2   : > { %v2623_v54 = vmul.f32 %v851_v18, %v816_v19  ;;  %v2322_v19 = vmov 64.0  }
 0x1d3   : > { %2214 = vrcp.f32 %v2322_v19 }
 0x1d4   : > { %v944_v56 = vmax.f32 %v2623_v54, 0.0 }
 0x1d6   : > { %v961_v61 = vsel %vm960_vm0, %v944_v56, 0.0 }
 0x1d9   : > { %v817_v21 = vpop.trf.xlu0 }
 0x1da   : > { %v2584_v22 = vmul.f32 %v856_v20, %v817_v21  ;;  %v916_v20 = vpop.permute.xlu2 %915 }
 0x1dc   : > { %v945_v23 = vmax.f32 %v2584_v22, 0.0 }
 0x1de   : > { %v964_v24 = vsel %vm960_vm0, %v945_v23, 0.0 }
 0x1df   : > { %965 = vadd.xlane.f32.xlu1 %v964_v24 }
 0x1e1   : > { %v818_v26 = vpop.trf.xlu0 }
 0x1e2   : > { %v2590_v27 = vmul.f32 %v861_v25, %v818_v26  ;;  %v2215_v26 = vpop.eup %2214 }
 0x1e3   : > { %vm1014_vm1 = vweird.f32 %v2215_v26 }
 0x1e4   : > { %v946_v28 = vmax.f32 %v2590_v27, 0.0 }
 0x1e6   : > { %v967_v29 = vsel %vm960_vm0, %v946_v28, 0.0 }
 0x1e7   : > { %968 = vadd.xlane.f32.xlu2 %v967_v29 }
 0x1e9   : > { %v819_v31 = vpop.trf.xlu0 }
 0x1ea   : > { %v2596_v32 = vmul.f32 %v866_v30, %v819_v31  ;;  %v1010_v30 = vmul.f32 64.0, %v2215_v26  ;;  %v921_v31 = vpop.permute.xlu1 %920 }
 0x1ec   : > { %v947_v33 = vmax.f32 %v2596_v32, 0.0 }
 0x1ee   : > { %v970_v34 = vsel %vm960_vm0, %v947_v33, 0.0 }
 0x1ef   : > { %971 = vadd.xlane.f32.xlu2 %v970_v34 }
 0x1f1   : > { %v820_v36 = vpop.trf.xlu0 }
 0x1f2   : > { %v2602_v37 = vmul.f32 %v871_v35, %v820_v36 }
 0x1f4   : > { %v948_v38 = vmax.f32 %v2602_v37, 0.0 }
 0x1f6   : > { %v973_v39 = vsel %vm960_vm0, %v948_v38, 0.0 }
 0x1f7   : > { %974 = vadd.xlane.f32.xlu1 %v973_v39  ;;  %v1011_v39 = vsub.f32 1.0, %v1010_v30 }
 0x1f9   : > { %v821_v41 = vpop.trf.xlu0 }
 0x1fa   : > { %v2608_v42 = vmul.f32 %v876_v40, %v821_v41  ;;  %v1012_v41 = vmul.f32 %v2215_v26, %v1011_v39 }
 0x1fc   : > { %v949_v43 = vmax.f32 %v2608_v42, 0.0 }
 0x1fe   : > { %v976_v44 = vsel %vm960_vm0, %v949_v43, 0.0 }
 0x1ff   : > { %977 = vadd.xlane.f32.xlu2 %v976_v44  ;;  %v926_v44 = vpop.permute.xlu2 %925 }
 0x201   : > { %v822_v46 = vpop.trf.xlu0 }
 0x202   : > { %v2614_v47 = vmul.f32 %v881_v45, %v822_v46 }
 0x204   : > { %v950_v48 = vmax.f32 %v2614_v47, 0.0 }
 0x206   : > { %v979_v49 = vsel %vm960_vm0, %v950_v48, 0.0 }
 0x207   : > { %980 = vadd.xlane.f32.xlu1 %v979_v49 }
 0x209   : > { %v823_v51 = vpop.trf.xlu0 }
 0x20a   : > { %v2620_v52 = vmul.f32 %v886_v50, %v823_v51  ;;  %v1013_v50 = vadd.f32 %v2215_v26, %v1012_v41 }
 0x20c   : > { %v951_v53 = vmax.f32 %v2620_v52, 0.0 }
 0x20e   : > { %v982_v55 = vsel %vm960_vm0, %v951_v53, 0.0 }
 0x20f   : > { %983 = vadd.xlane.f32.xlu2 %v982_v55  ;;  %v2680_v55 = vsel %vm1014_vm1, %v2215_v26, %v1013_v50 }
 0x211   : > { %v824_v58 = vpop.trf.xlu0 }
 0x212   : > { %v2629_v59 = vmul.f32 %v891_v57, %v824_v58 }
 0x214   : > { %v952_v60 = vmax.f32 %v2629_v59, 0.0 }
 0x216   : > { %962 = vadd.xlane.f32.xlu0 %v961_v61  ;;  %v985_v62 = vsel %vm960_vm0, %v952_v60, 0.0 }
 0x217   : > { %986 = vadd.xlane.f32.xlu1 %v985_v62 }
 0x219   : > { %v825_v0 = vpop.trf.xlu0 }
 0x21a   : > { %v2638_v1 = vmul.f32 %v896_v63, %v825_v0 }
 0x21c   : > { %v953_v2 = vmax.f32 %v2638_v1, 0.0 }
 0x21e   : > { %v988_v3 = vsel %vm960_vm0, %v953_v2, 0.0 }
 0x21f   : > { %989 = vadd.xlane.f32.xlu2 %v988_v3 }
 0x221   : > { %v826_v5 = vpop.trf.xlu0 }
 0x222   : > { %v2644_v6 = vmul.f32 %v901_v4, %v826_v5 }
 0x224   : > { %v954_v7 = vmax.f32 %v2644_v6, 0.0 }
 0x226   : > { %v991_v8 = vsel %vm960_vm0, %v954_v7, 0.0 }
 0x227   : > { %992 = vadd.xlane.f32.xlu1 %v991_v8 }
 0x229   : > { %v827_v10 = vpop.trf.xlu0 }
 0x22a   : > { %v2650_v11 = vmul.f32 %v906_v9, %v827_v10 }
 0x22c   : > { %v955_v12 = vmax.f32 %v2650_v11, 0.0 }
 0x22e   : > { %v994_v13 = vsel %vm960_vm0, %v955_v12, 0.0 }
 0x22f   : > { %995 = vadd.xlane.f32.xlu2 %v994_v13 }
 0x231   : > { %v828_v15 = vpop.trf.xlu0 }
 0x232   : > { %v2656_v16 = vmul.f32 %v911_v14, %v828_v15 }
 0x234   : > { %v956_v17 = vmax.f32 %v2656_v16, 0.0 }
 0x236   : > { %v997_v18 = vsel %vm960_vm0, %v956_v17, 0.0 }
 0x237   : > { %998 = vadd.xlane.f32.xlu1 %v997_v18 }
 0x239   : > { %v829_v21 = vpop.trf.xlu0 }
 0x23a   : > { %v2662_v24 = vmul.f32 %v916_v20, %v829_v21 }
 0x23c   : > { %v957_v25 = vmax.f32 %v2662_v24, 0.0 }
 0x23e   : > { %v1000_v29 = vsel %vm960_vm0, %v957_v25, 0.0 }
 0x23f   : > { %1001 = vadd.xlane.f32.xlu2 %v1000_v29 }
 0x241   : > { %v830_v34 = vpop.trf.xlu0 }
 0x242   : > { %v2668_v35 = vmul.f32 %v921_v31, %v830_v34 }
 0x244   : > { %v958_v36 = vmax.f32 %v2668_v35, 0.0 }
 0x246   : > { %v1003_v40 = vsel %vm960_vm0, %v958_v36, 0.0 }
 0x247   : > { %1004 = vadd.xlane.f32.xlu1 %v1003_v40 }
 0x249   : > { %v831_v45 = vpop.trf.xlu0 }
 0x24a   : > { %v2674_v46 = vmul.f32 %v926_v44, %v831_v45 }
 0x24c   : > { %v959_v49 = vmax.f32 %v2674_v46, 0.0 }
 0x24e   : > { %v1006_v51 = vsel %vm960_vm0, %v959_v49, 0.0 }
 0x24f   : > { %1007 = vadd.xlane.f32.xlu2 %v1006_v51 }
 0x252   : > { %v966_v57 = vpop.xlane.xlu1 %965 }
 0x253   : > { %v1017_v58 = vmul.f32 %v2680_v55, %v966_v57 }
 0x255   : > { %v2685_v61 = vsub.f32 %v945_v23, %v1017_v58 }
 0x257   : > { %v1049_v62 = vmul.f32 %v2685_v61, %v2685_v61 }
 0x259   : > { %v1067_v63 = vsel %vm960_vm0, %v1049_v62, 0.0 }
 0x25a   : > { %v969_v0 = vpop.xlane.xlu2 %968  ;;  %1068 = vadd.xlane.f32.xlu2 %v1067_v63 }
 0x25b   : > { %v1018_v20 = vmul.f32 %v2680_v55, %v969_v0 }
 0x262   : > { %v972_v3 = vpop.xlane.xlu2 %971 }
 0x263   : > { %v1019_v4 = vmul.f32 %v2680_v55, %v972_v3 }
 0x265   : > { %v2693_v5 = vsub.f32 %v947_v33, %v1019_v4 }
 0x267   : > { %v1051_v8 = vmul.f32 %v2693_v5, %v2693_v5 }
 0x269   : > { %v1073_v22 = vsel %vm960_vm0, %v1051_v8, 0.0 }
 0x26a   : > { %1074 = vadd.xlane.f32.xlu2 %v1073_v22  ;;  %v975_v29 = vpop.xlane.xlu1 %974 }
 0x26b   : > { %v1020_v34 = vmul.f32 %v2680_v55, %v975_v29 }
 0x272   : > { %v978_v23 = vpop.xlane.xlu2 %977 }
 0x273   : > { %v1021_v9 = vmul.f32 %v2680_v55, %v978_v23 }
 0x275   : > { %v2701_v10 = vsub.f32 %v949_v43, %v1021_v9 }
 0x277   : > { %v1053_v13 = vmul.f32 %v2701_v10, %v2701_v10 }
 0x279   : > { %v1079_v32 = vsel %vm960_vm0, %v1053_v13, 0.0 }
 0x27a   : > { %1080 = vadd.xlane.f32.xlu2 %v1079_v32  ;;  %v981_v40 = vpop.xlane.xlu1 %980 }
 0x27b   : > { %v1022_v44 = vmul.f32 %v2680_v55, %v981_v40 }
 0x282   : > { %v984_v33 = vpop.xlane.xlu2 %983 }
 0x283   : > { %v1023_v14 = vmul.f32 %v2680_v55, %v984_v33 }
 0x285   : > { %v2709_v15 = vsub.f32 %v951_v53, %v1023_v14  ;;  %v2724_v53 = vsub.f32 %v946_v28, %v1018_v20  ;;  %v2739_v28 = vsub.f32 %v948_v38, %v1020_v34 }
 0x287   : > { %v1055_v18 = vmul.f32 %v2709_v15, %v2709_v15  ;;  %v1050_v54 = vmul.f32 %v2724_v53, %v2724_v53  ;;  %v1052_v1 = vmul.f32 %v2739_v28, %v2739_v28 }
 0x289   : > { %v963_v19 = vpop.xlane.xlu0 %962  ;;  %v1085_v42 = vsel %vm960_vm0, %v1055_v18, 0.0  ;;  %v1070_v39 = vsel %vm960_vm0, %v1050_v54, 0.0  ;;  %v1076_v37 = vsel %vm960_vm0, %v1052_v1, 0.0 }
 0x28a   : > { %v1016_v43 = vmul.f32 %v2680_v55, %v963_v19  ;;  %1086 = vadd.xlane.f32.xlu2 %v1085_v42  ;;  %v987_v38 = vpop.xlane.xlu1 %986 }
 0x28b   : > { %v1024_v51 = vmul.f32 %v2680_v55, %v987_v38 }
 0x28c   : > { %v2718_v21 = vsub.f32 %v944_v56, %v1016_v43 }
 0x28e   : > { %v1048_v52 = vmul.f32 %v2718_v21, %v2718_v21 }
 0x290   : > { %v1064_v26 = vsel %vm960_vm0, %v1048_v52, 0.0 }
 0x291   : > { %1065 = vadd.xlane.f32.xlu1 %v1064_v26 }
 0x292   : > { %v990_v30 = vpop.xlane.xlu2 %989 }
 0x293   : > { %v1025_v31 = vmul.f32 %v2680_v55, %v990_v30 }
 0x295   : > { %v2733_v56 = vsub.f32 %v953_v2, %v1025_v31  ;;  %v2748_v2 = vsub.f32 %v950_v48, %v1022_v44  ;;  %v2763_v48 = vsub.f32 %v952_v60, %v1024_v51 }
 0x297   : > { %v1057_v27 = vmul.f32 %v2733_v56, %v2733_v56  ;;  %v1054_v57 = vmul.f32 %v2748_v2, %v2748_v2  ;;  %v1056_v11 = vmul.f32 %v2763_v48, %v2763_v48 }
 0x299   : > { %1071 = vadd.xlane.f32.xlu1 %v1070_v39  ;;  %v1091_v41 = vsel %vm960_vm0, %v1057_v27, 0.0  ;;  %v1082_v62 = vsel %vm960_vm0, %v1054_v57, 0.0  ;;  %v1088_v59 = vsel %vm960_vm0, %v1056_v11, 0.0 }
 0x29a   : > { %1092 = vadd.xlane.f32.xlu2 %v1091_v41  ;;  %v993_v63 = vpop.xlane.xlu1 %992 }
 0x29b   : > { %v1026_v3 = vmul.f32 %v2680_v55, %v993_v63 }
 0x2a1   : > { %1077 = vadd.xlane.f32.xlu1 %v1076_v37 }
 0x2a2   : > { %v996_v45 = vpop.xlane.xlu2 %995 }
 0x2a3   : > { %v1027_v50 = vmul.f32 %v2680_v55, %v996_v45 }
 0x2a5   : > { %v2757_v58 = vsub.f32 %v955_v12, %v1027_v50  ;;  %v2772_v12 = vsub.f32 %v954_v7, %v1026_v3 }
 0x2a7   : > { %v1059_v47 = vmul.f32 %v2757_v58, %v2757_v58  ;;  %v1058_v23 = vmul.f32 %v2772_v12, %v2772_v12 }
 0x2a9   : > { %1083 = vadd.xlane.f32.xlu1 %v1082_v62  ;;  %v1097_v0 = vsel %vm960_vm0, %v1059_v47, 0.0  ;;  %v1094_v13 = vsel %vm960_vm0, %v1058_v23, 0.0 }
 0x2aa   : > { %1098 = vadd.xlane.f32.xlu2 %v1097_v0  ;;  %v999_v60 = vpop.xlane.xlu1 %998 }
 0x2ab   : > { %v1028_v22 = vmul.f32 %v2680_v55, %v999_v60 }
 0x2ad   : > { %v2787_v7 = vsub.f32 %v956_v17, %v1028_v22 }
 0x2af   : > { %v1060_v24 = vmul.f32 %v2787_v7, %v2787_v7 }
 0x2b1   : > { %1089 = vadd.xlane.f32.xlu1 %v1088_v59  ;;  %v1100_v16 = vsel %vm960_vm0, %v1060_v24, 0.0 }
 0x2b2   : > { %v1002_v4 = vpop.xlane.xlu2 %1001 }
 0x2b3   : > { %v1029_v8 = vmul.f32 %v2680_v55, %v1002_v4 }
 0x2b5   : > { %v2781_v9 = vsub.f32 %v957_v25, %v1029_v8 }
 0x2b7   : > { %v1061_v6 = vmul.f32 %v2781_v9, %v2781_v9 }
 0x2b9   : > { %1095 = vadd.xlane.f32.xlu1 %v1094_v13  ;;  %v1103_v32 = vsel %vm960_vm0, %v1061_v6, 0.0 }
 0x2ba   : > { %v1005_v33 = vpop.xlane.xlu1 %1004  ;;  %1104 = vadd.xlane.f32.xlu2 %v1103_v32 }
 0x2bb   : > { %v1030_v14 = vmul.f32 %v2680_v55, %v1005_v33 }
 0x2bd   : > { %v2796_v25 = vsub.f32 %v958_v36, %v1030_v14 }
 0x2bf   : > { %v1062_v19 = vmul.f32 %v2796_v25, %v2796_v25 }
 0x2c1   : > { %1101 = vadd.xlane.f32.xlu1 %v1100_v16  ;;  %v1106_v35 = vsel %vm960_vm0, %v1062_v19, 0.0 }
 0x2c2   : > { %v1008_v17 = vpop.xlane.xlu2 %1007 }
 0x2c3   : > { %v1031_v18 = vmul.f32 %v2680_v55, %v1008_v17 }
 0x2c5   : > { %v2804_v42 = vsub.f32 %v959_v49, %v1031_v18  ;;  %v2826_v18 = vld [vmem:[%s3411_s3] ss:$0 sm:$0xff] }
 0x2c7   : > { %v1063_v43 = vmul.f32 %v2804_v42, %v2804_v42 }
 0x2c9   : > { %1107 = vadd.xlane.f32.xlu1 %v1106_v35  ;;  %v1109_v36 = vsel %vm960_vm0, %v1063_v43, 0.0 }
 0x2ca   : > { %1110 = vadd.xlane.f32.xlu2 %v1109_v36 }
 0x2cd   : > { %v1069_v20 = vpop.xlane.xlu2 %1068 }
 0x2ce   : > { %v1113_v26 = vmul.f32 %v1069_v20, %v2680_v55 }
 0x2d0   : > { %v1129_v30 = vadd.f32 1e-05, %v1113_v26 }
 0x2d2   : > { %2216 = vrsqrt.f32 %v1129_v30  ;;  %vm1160_vm4 = vweird.f32 %v1129_v30 }
 0x2d8   : > { %v2217_v54 = vpop.eup %2216 }
 0x2d9   : > { %v1155_v39 = vmul.f32 %v2217_v54, %v1129_v30  ;;  %vm1161_vm2 = vweird.f32 %v2217_v54 }
 0x2da   : > { %vm1162_vm5 = vmor %vm1160_vm4, %vm1161_vm2 }
 0x2db   : > { %v1156_v44 = vmul.f32 %v2217_v54, %v1155_v39 }
 0x2dd   : > { %v1075_v52 = vpop.xlane.xlu2 %1074  ;;  %v1157_v50 = vmul.f32 0.5, %v1156_v44 }
 0x2de   : > { %v1115_v29 = vmul.f32 %v1075_v52, %v2680_v55 }
 0x2df   : > { %v1158_v62 = vsub.f32 1.5, %v1157_v50 }
 0x2e0   : > { %v1131_v31 = vadd.f32 1e-05, %v1115_v29 }
 0x2e1   : > { %v1159_v59 = vmul.f32 %v2217_v54, %v1158_v62 }
 0x2e2   : > { %2218 = vrsqrt.f32 %v1131_v31  ;;  %vm1180_vm6 = vweird.f32 %v1131_v31 }
 0x2e3   : > { %v1163_v6 = vsel %vm1162_vm5, %v2217_v54, %v1159_v59 }
 0x2e4   : > { %v1305_v19 = vmul.f32 %v1163_v6, %v2685_v61  ;;  %v2843_v61 = vld [vmem:[%s3412_s4] ss:$0 sm:$0xff] }
 0x2e8   : > { %v2219_v27 = vpop.eup %2218 }
 0x2e9   : > { %v1175_v40 = vmul.f32 %v2219_v27, %v1131_v31  ;;  %vm1181_vm3 = vweird.f32 %v2219_v27 }
 0x2ea   : > { %vm1182_vm7 = vmor %vm1180_vm6, %vm1181_vm3 }
 0x2eb   : > { %v1176_v1 = vmul.f32 %v2219_v27, %v1175_v40 }
 0x2ed   : > { %v1081_v46 = vpop.xlane.xlu2 %1080  ;;  %v1177_v51 = vmul.f32 0.5, %v1176_v1 }
 0x2ee   : > { %v1117_v49 = vmul.f32 %v1081_v46, %v2680_v55  ;;  %v1376_v46 = vlaneseq }
 0x2ef   : > { %v1178_v63 = vsub.f32 1.5, %v1177_v51 }
 0x2f0   : > { %v1133_v34 = vadd.f32 1e-05, %v1117_v49  ;;  %v2856_v44 = vshrl.u32 %v1376_v46, 7 }
 0x2f1   : > { %v1179_v8 = vmul.f32 %v2219_v27, %v1178_v63 }
 0x2f2   : > { %2220 = vrsqrt.f32 %v1133_v34  ;;  %vm1200_vm9 = vweird.f32 %v1133_v34  ;;  %v2904_v46 = vadd.s32 32, %v2856_v44 }
 0x2f3   : > { %v1183_v32 = vsel %vm1182_vm7, %v2219_v27, %v1179_v8 }
 0x2f4   : > { %v1307_v36 = vmul.f32 %v1183_v32, %v2693_v5  ;;  %v1325_v5 = vmul.f32 %v2826_v18, %v1305_v19 }
 0x2f6   : > { %v1327_v49 = vmul.f32 %v2826_v18, %v1307_v36  ;;  %v2854_v40 = vadd.f32 %v2843_v61, %v1325_v5 }
 0x2f8   : > { %v2221_v41 = vpop.eup %2220 }
 0x2f9   : > { %v1195_v37 = vmul.f32 %v2221_v41, %v1133_v34  ;;  %vm1201_vm8 = vweird.f32 %v2221_v41 }
 0x2fa   : > { %vm1202_vm10 = vmor %vm1200_vm9, %vm1201_vm8 }
 0x2fb   : > { %v1196_v47 = vmul.f32 %v2221_v41, %v1195_v37  ;;  %v2859_v37 = vadd.f32 %v2843_v61, %v1327_v49 }
 0x2fd   : > { %v1087_v38 = vpop.xlane.xlu2 %1086  ;;  %v1197_v3 = vmul.f32 0.5, %v1196_v47  ;;  %v1398_v8 = vrot.slane %v2859_v37, 1 }
 0x2fe   : > { %v1119_v45 = vmul.f32 %v1087_v38, %v2680_v55 }
 0x2ff   : > { %v1198_v22 = vsub.f32 1.5, %v1197_v3  ;;  %v1396_v3 = vrot.slane %v2854_v40, 1 }
 0x300   : > { %v1135_v57 = vadd.f32 1e-05, %v1119_v45 }
 0x301   : > { %v1199_v14 = vmul.f32 %v2221_v41, %v1198_v22 }
 0x302   : > { %2222 = vrsqrt.f32 %v1135_v57  ;;  %vm1220_vm12 = vweird.f32 %v1135_v57 }
 0x303   : > { %v1203_v30 = vsel %vm1202_vm10, %v2221_v41, %v1199_v14  ;;  %v1430_v14 = vadd.s32 24, %v2856_v44  ;;  %vm1378_vm10 = vcmp.lt.s32.totalorder %v2856_v44, 1 }
 0x304   : > { %v1066_v0 = vpop.xlane.xlu1 %1065  ;;  %v1309_v34 = vmul.f32 %v1203_v30, %v2701_v10 }
 0x305   : > { %v1112_v11 = vmul.f32 %v1066_v0, %v2680_v55  ;;  %v1361_v0 = vrot.slane %v2854_v40, 7 }
 0x306   : > { %v1329_v45 = vmul.f32 %v2826_v18, %v1309_v34 }
 0x307   : > { %v2815_v60 = vadd.f32 1e-05, %v1112_v11 }
 0x308   : > { %v2817_v4 = vpop.eup %2222  ;;  %v2881_v22 = vadd.f32 %v2843_v61, %v1329_v45 }
 0x309   : > { %v1215_v23 = vmul.f32 %v2817_v4, %v1135_v57  ;;  %2224 = vrsqrt.f32 %v2815_v60  ;;  %vm1221_vm11 = vweird.f32 %v2817_v4  ;;  %v2869_v57 = vadd.s32 16, %v2856_v44 }
 0x30a   : > { %vm1222_vm13 = vmor %vm1220_vm12, %vm1221_vm11  ;;  %vm1150_vm14 = vweird.f32 %v2815_v60  ;;  %v1400_v49 = vrot.slane %v2881_v22, 1  ;;  %vm1411_vm11 = vcmp.lt.s32.totalorder %v2856_v44, 7 }
 0x30b   : > { %v1216_v13 = vmul.f32 %v2817_v4, %v1215_v23 }
 0x30c   : > { %v1072_v33 = vpop.xlane.xlu1 %1071 }
 0x30d   : > { %v1217_v24 = vmul.f32 0.5, %v1216_v13  ;;  %v1114_v16 = vmul.f32 %v1072_v33, %v2680_v55  ;;  %v1093_v17 = vpop.xlane.xlu2 %1092  ;;  %v1461_v13 = vand.u32 1, %v2869_v57  ;;  %v1468_v57 = vand.u32 1, %v1430_v14 }
 0x30e   : > { %v1121_v43 = vmul.f32 %v1093_v17, %v2680_v55 }
 0x30f   : > { %v2830_v35 = vpop.eup %2224  ;;  %v2833_v20 = vadd.f32 1e-05, %v1114_v16  ;;  %v1218_v52 = vsub.f32 1.5, %v1217_v24 }
 0x310   : > { %v1145_v26 = vmul.f32 %v2830_v35, %v2815_v60  ;;  %v2837_v29 = vadd.f32 1e-05, %v1121_v43  ;;  %vm1151_vm15 = vweird.f32 %v2830_v35  ;;  %v2910_v60 = vadd.s32 8, %v2856_v44 }
 0x311   : > { %2226 = vrsqrt.f32 %v2833_v20  ;;  %v1219_v54 = vmul.f32 %v2817_v4, %v1218_v52  ;;  %vm1170_vm2 = vweird.f32 %v2833_v20  ;;  %vm2896_vm3 = vmor %vm1150_vm14, %vm1151_vm15  ;;  %vm2968_vm14 = vcmp.eq.s32.totalorder %v1468_v57, 0 }
 0x312   : > { %v1146_v31 = vmul.f32 %v2830_v35, %v1145_v26  ;;  %2228 = vrsqrt.f32 %v2837_v29  ;;  %vm1240_vm6 = vweird.f32 %v2837_v29 }
 0x313   : > { %v1223_v50 = vsel %vm1222_vm13, %v2817_v4, %v1219_v54  ;;  %v1363_v4 = vrot.slane %v2859_v37, 7  ;;  %vm2964_vm13 = vcmp.eq.s32.totalorder %v1461_v13, 0 }
 0x314   : > { %v1078_v27 = vpop.xlane.xlu1 %1077  ;;  %v1147_v41 = vmul.f32 0.5, %v1146_v31  ;;  %v1311_v11 = vmul.f32 %v1223_v50, %v2709_v15 }
 0x315   : > { %v1116_v39 = vmul.f32 %v1078_v27, %v2680_v55 }
 0x316   : > { %v1148_v62 = vsub.f32 1.5, %v1147_v41  ;;  %v1331_v43 = vmul.f32 %v2826_v18, %v1311_v11 }
 0x317   : > { %v2227_v1 = vpop.eup %2226  ;;  %v2861_v10 = vadd.f32 1e-05, %v1116_v39 }
 0x318   : > { %v2863_v38 = vpop.eup %2228  ;;  %v1165_v51 = vmul.f32 %v2227_v1, %v2833_v20  ;;  %v1149_v24 = vmul.f32 %v2830_v35, %v1148_v62  ;;  %vm1171_vm1 = vweird.f32 %v2227_v1  ;;  %v1365_v20 = vrot.slane %v2881_v22, 7 }
 0x319   : > { %v1235_v47 = vmul.f32 %v2863_v38, %v2837_v29  ;;  %2230 = vrsqrt.f32 %v2861_v10  ;;  %vm1172_vm4 = vmor %vm1170_vm2, %vm1171_vm1  ;;  %v2917_v39 = vadd.f32 %v2843_v61, %v1331_v43  ;;  %vm1241_vm5 = vweird.f32 %v2863_v38 }
 0x31a   : > { %v1166_v63 = vmul.f32 %v2227_v1, %v1165_v51  ;;  %v1153_v34 = vsel %vm2896_vm3, %v2830_v35, %v1149_v24  ;;  %v1475_v35 = vand.u32 1, %v2904_v46  ;;  %vm2930_vm7 = vmor %vm1240_vm6, %vm1241_vm5  ;;  %v2935_v29 = vadd.s32 48, %v2856_v44 }
 0x31b   : > { %v1236_v59 = vmul.f32 %v2863_v38, %v1235_v47  ;;  %vm1190_vm9 = vweird.f32 %v2861_v10 }
 0x31c   : > { %v1167_v23 = vmul.f32 0.5, %v1166_v63  ;;  %v1084_v6 = vpop.xlane.xlu1 %1083  ;;  %v2928_v63 = vadd.s32 40, %v2856_v44  ;;  %vm3023_vm5 = vcmp.eq.s32.totalorder %v1475_v35, 0  ;;  %v1437_v35 = vadd.s32 80, %v2856_v44 }
 0x31d   : > { %v1237_v32 = vmul.f32 0.5, %v1236_v59  ;;  %v1118_v15 = vmul.f32 %v1084_v6, %v2680_v55  ;;  %v1099_v33 = vpop.xlane.xlu2 %1098  ;;  %v1454_v59 = vand.u32 1, %v2910_v60 }
 0x31e   : > { %v1168_v16 = vsub.f32 1.5, %v1167_v23  ;;  %v1123_v17 = vmul.f32 %v1099_v33, %v2680_v55 }
 0x31f   : > { %v2231_v19 = vpop.eup %2230  ;;  %v1238_v36 = vsub.f32 1.5, %v1237_v32  ;;  %v2892_v52 = vadd.f32 1e-05, %v1118_v15  ;;  %v1367_v32 = vrot.slane %v2917_v39, 7 }
 0x320   : > { %v1169_v30 = vmul.f32 %v2227_v1, %v1168_v16  ;;  %v1185_v5 = vmul.f32 %v2231_v19, %v2861_v10  ;;  %v2901_v31 = vadd.f32 1e-05, %v1123_v17  ;;  %vm1191_vm8 = vweird.f32 %v2231_v19 }
 0x321   : > { %2232 = vrsqrt.f32 %v2892_v52  ;;  %v1239_v45 = vmul.f32 %v2863_v38, %v1238_v36  ;;  %vm1192_vm12 = vmor %vm1190_vm9, %vm1191_vm8  ;;  %v1482_v36 = vand.u32 1, %v2928_v63  ;;  %vm1210_vm15 = vweird.f32 %v2892_v52 }
 0x322   : > { %v1173_v54 = vsel %vm1172_vm4, %v2227_v1, %v1169_v30  ;;  %v1186_v27 = vmul.f32 %v2231_v19, %v1185_v5  ;;  %2234 = vrsqrt.f32 %v2901_v31  ;;  %v1304_v1 = vmul.f32 %v1153_v34, %v2718_v21 }
 0x323   : > { %v1306_v41 = vmul.f32 %v1173_v54, %v2724_v53  ;;  %v1243_v21 = vsel %vm2930_vm7, %v2863_v38, %v1239_v45  ;;  %v1402_v38 = vrot.slane %v2917_v39, 1  ;;  %v1489_v34 = vand.u32 1, %v2935_v29 }
 0x324   : > { %v1187_v50 = vmul.f32 0.5, %v1186_v27  ;;  %v1090_v51 = vpop.xlane.xlu1 %1089  ;;  %v2958_v10 = vmul.f32 %v2826_v18, %v1304_v1  ;;  %v1313_v26 = vmul.f32 %v1243_v21, %v2733_v56  ;;  %vm1260_vm1 = vweird.f32 %v2901_v31 }
 0x325   : > { %v1326_v47 = vmul.f32 %v2826_v18, %v1306_v41  ;;  %v1120_v62 = vmul.f32 %v1090_v51, %v2680_v55  ;;  %v2985_v56 = vadd.s32 64, %v2856_v44  ;;  %vm3030_vm6 = vcmp.eq.s32.totalorder %v1482_v36, 0 }
 0x326   : > { %v1188_v11 = vsub.f32 1.5, %v1187_v50  ;;  %v2982_v50 = vadd.s32 56, %v2856_v44 }
 0x327   : > { %v2938_v23 = vpop.eup %2232  ;;  %v2944_v6 = vadd.f32 1e-05, %v1120_v62  ;;  %v2951_v33 = vadd.f32 %v2843_v61, %v1326_v47  ;;  %v1333_v47 = vmul.f32 %v2826_v18, %v1313_v26  ;;  %v1503_v17 = vand.u32 1, %v2985_v56 }
 0x328   : > { %v2948_v15 = vpop.eup %2234  ;;  %v1189_v14 = vmul.f32 %v2231_v19, %v1188_v11  ;;  %v1205_v24 = vmul.f32 %v2938_v23, %v2892_v52  ;;  %vm1211_vm2 = vweird.f32 %v2938_v23 }
 0x329   : > { %v1255_v16 = vmul.f32 %v2948_v15, %v2901_v31  ;;  %2236 = vrsqrt.f32 %v2944_v6  ;;  %v1362_v45 = vrot.slane %v2951_v33, 7  ;;  %v1397_v1 = vrot.slane %v2951_v33, 1  ;;  %vm1212_vm4 = vmor %vm1210_vm15, %vm1211_vm2 }
 0x32a   : > { %v1193_v30 = vsel %vm1192_vm12, %v2231_v19, %v1189_v14  ;;  %v1206_v5 = vmul.f32 %v2938_v23, %v1205_v24  ;;  %vm1261_vm3 = vweird.f32 %v2948_v15  ;;  %vm1230_vm9 = vweird.f32 %v2944_v6 }
 0x32b   : > { %v1308_v54 = vmul.f32 %v1193_v30, %v2739_v28  ;;  %v1256_v13 = vmul.f32 %v2948_v15, %v1255_v16  ;;  %v1392_v30 = vsel %vm1378_vm10, %v1361_v0, %v1362_v45  ;;  %vm3043_vm7 = vmor %vm1260_vm1, %vm1261_vm3  ;;  %vm3143_vm2 = vcmp.eq.s32.totalorder %v1503_v17, 0 }
 0x32c   : > { %v1207_v27 = vmul.f32 0.5, %v1206_v5  ;;  %v1096_v41 = vpop.xlane.xlu1 %1095 }
 0x32d   : > { %v1328_v19 = vmul.f32 %v2826_v18, %v1308_v54  ;;  %v1257_v51 = vmul.f32 0.5, %v1256_v13  ;;  %v1122_v28 = vmul.f32 %v1096_v41, %v2680_v55  ;;  %v1105_v57 = vpop.xlane.xlu2 %1104  ;;  %v1424_v13 = vsel %vm1411_vm11, %v1397_v1, %v1398_v8 }
 0x32e   : > { %v1208_v62 = vsub.f32 1.5, %v1207_v27  ;;  %v1125_v63 = vmul.f32 %v1105_v57, %v2680_v55  ;;  %v1653_v57 = vsel %vm2964_vm13, %v1424_v13, %v1392_v30  ;;  %vm3100_vm13 = vcmp.eq.s32.totalorder %v1489_v34, 0 }
 0x32f   : > { %v2993_v53 = vpop.eup %2236  ;;  %v2996_v11 = vadd.f32 %v2843_v61, %v1328_v19  ;;  %v1258_v21 = vsub.f32 1.5, %v1257_v51  ;;  %v2999_v14 = vadd.f32 1e-05, %v1122_v28  ;;  %v1496_v51 = vand.u32 1, %v2982_v50 }
 0x330   : > { %v1209_v24 = vmul.f32 %v2938_v23, %v1208_v62  ;;  %v1225_v16 = vmul.f32 %v2993_v53, %v2944_v6  ;;  %v3004_v26 = vadd.f32 1e-05, %v1125_v63  ;;  %v3036_v28 = vadd.f32 %v2843_v61, %v1333_v47 }
 0x331   : > { %v1259_v5 = vmul.f32 %v2948_v15, %v1258_v21  ;;  %2238 = vrsqrt.f32 %v2999_v14  ;;  %v1399_v54 = vrot.slane %v2996_v11, 1  ;;  %v1364_v21 = vrot.slane %v2996_v11, 7 }
 0x332   : > { %v1213_v52 = vsel %vm1212_vm4, %v2938_v23, %v1209_v24  ;;  %v1226_v41 = vmul.f32 %v2993_v53, %v1225_v16  ;;  %2240 = vrsqrt.f32 %v3004_v26  ;;  %v1391_v23 = vsel %vm1378_vm10, %v1362_v45, %v1363_v4 }
 0x333   : > { %v1310_v46 = vmul.f32 %v1213_v52, %v2748_v2  ;;  %v1423_v36 = vsel %vm1411_vm11, %v1398_v8, %v1399_v54  ;;  %v1263_v2 = vsel %vm3043_vm7, %v2948_v15, %v1259_v5  ;;  %v3067_v8 = vadd.f32 %v2843_v61, %v2958_v10 }
 0x334   : > { %v1227_v50 = vmul.f32 0.5, %v1226_v41  ;;  %v1102_v31 = vpop.xlane.xlu1 %1101  ;;  %v1654_v47 = vsel %vm2968_vm14, %v1423_v36, %v1391_v23  ;;  %vm1231_vm8 = vweird.f32 %v2993_v53  ;;  %v1315_v16 = vmul.f32 %v1263_v2, %v2757_v58 }
 0x335   : > { %v1330_v62 = vmul.f32 %v2826_v18, %v1310_v46  ;;  %v1124_v45 = vmul.f32 %v1102_v31, %v2680_v55  ;;  %v2171_v63 = vpack.i.bf16 %v1654_v47, %v1653_v57  ;;  %v1369_v56 = vrot.slane %v3036_v28, 7  ;;  %vm1232_vm12 = vmor %vm1230_vm9, %vm1231_vm8 }
 0x336   : > { %v1228_v15 = vsub.f32 1.5, %v1227_v50  ;;  %v3085_v52 = vadd.s32 72, %v2856_v44  ;;  %v1390_v6 = vsel %vm1378_vm10, %v1363_v4, %v1364_v21  ;;  %v1422_v41 = vsel %vm1411_vm11, %v1399_v54, %v1400_v49 }
 0x337   : > { %v2239_v24 = vpop.eup %2238  ;;  %v3072_v43 = vadd.f32 %v2843_v61, %v1330_v62  ;;  %v3076_v30 = vadd.f32 1e-05, %v1124_v45  ;;  %2172 = vrot.lane.b32.xlu2 %v2171_v63, %s2323_s17  ;;  %vm3104_vm14 = vcmp.eq.s32.totalorder %v1496_v51, 0  ;;  %vm1250_vm15 = vweird.f32 %v2999_v14 }
 0x338   : > { %v3079_v10 = vpop.eup %2240  ;;  %v1229_v5 = vmul.f32 %v2993_v53, %v1228_v15  ;;  %v1245_v13 = vmul.f32 %v2239_v24, %v2999_v14  ;;  %v1335_v2 = vmul.f32 %v2826_v18, %v1315_v16  ;;  %v1389_v34 = vsel %vm1378_vm10, %v1364_v21, %v1365_v20 }
 0x339   : > { %v1275_v58 = vmul.f32 %v3079_v10, %v3004_v26  ;;  %2242 = vrsqrt.f32 %v3076_v30  ;;  %v1401_v4 = vrot.slane %v3072_v43, 1  ;;  %v1655_v31 = vsel %vm3023_vm5, %v1422_v41, %v1390_v6 }
 0x33a   : > { %v1233_v23 = vsel %vm1232_vm12, %v2993_v53, %v1229_v5  ;;  %v1246_v36 = vmul.f32 %v2239_v24, %v1245_v13  ;;  %v1366_v57 = vrot.slane %v3072_v43, 7  ;;  %vm1251_vm1 = vweird.f32 %v2239_v24 }
 0x33b   : > { %v1312_v54 = vmul.f32 %v1233_v23, %v2763_v48  ;;  %v1276_v29 = vmul.f32 %v3079_v10, %v1275_v58  ;;  %v1421_v53 = vsel %vm1411_vm11, %v1400_v49, %v1401_v4  ;;  %v1510_v58 = vand.u32 1, %v3085_v52  ;;  %vm1252_vm3 = vmor %vm1250_vm15, %vm1251_vm1 }
 0x33c   : > { %v1247_v51 = vmul.f32 0.5, %v1246_v36  ;;  %v1108_v50 = vpop.xlane.xlu1 %1107  ;;  %v1656_v63 = vsel %vm3030_vm6, %v1421_v53, %v1389_v34  ;;  %v3137_v6 = vadd.f32 %v2843_v61, %v1335_v2  ;;  %v1388_v52 = vsel %vm1378_vm10, %v1365_v20, %v1366_v57 }
 0x33d   : > { %v1332_v48 = vmul.f32 %v2826_v18, %v1312_v54  ;;  %v1277_v47 = vmul.f32 0.5, %v1276_v29  ;;  %v1126_v62 = vmul.f32 %v1108_v50, %v2680_v55  ;;  %v1111_v45 = vpop.xlane.xlu2 %1110  ;;  %v2176_v16 = vpack.i.bf16 %v1656_v63, %v1655_v31 }
 0x33e   : > { %v1248_v21 = vsub.f32 1.5, %v1247_v51  ;;  %v1127_v15 = vmul.f32 %v1111_v45, %v2680_v55  ;;  %v1420_v17 = vsel %vm1411_vm11, %v1401_v4, %v1402_v38  ;;  %vm1281_vm4 = vweird.f32 %v3079_v10 }
 0x33f   : > { %v2243_v49 = vpop.eup %2242  ;;  %v3131_v27 = vadd.f32 %v2843_v61, %v1332_v48  ;;  %v1278_v5 = vsub.f32 1.5, %v1277_v47  ;;  %v3133_v13 = vadd.f32 1e-05, %v1126_v62  ;;  %2177 = vrot.lane.b32.xlu0 %v2176_v16, %s2323_s17  ;;  %v1387_v20 = vsel %vm1378_vm10, %v1366_v57, %v1367_v32 }
 0x340   : > { %v1249_v41 = vmul.f32 %v2239_v24, %v1248_v21  ;;  %v1265_v19 = vmul.f32 %v2243_v49, %v3076_v30  ;;  %v3140_v23 = vadd.f32 1e-05, %v1127_v15  ;;  %v1657_v34 = vsel %vm3100_vm13, %v1420_v17, %v1388_v52 }
 0x341   : > { %2244 = vrsqrt.f32 %v3133_v13  ;;  %v1403_v36 = vrot.slane %v3131_v27, 1  ;;  %v1279_v29 = vmul.f32 %v3079_v10, %v1278_v5  ;;  %vm1280_vm5 = vweird.f32 %v3004_v26 }
 0x342   : > { %v1253_v2 = vsel %vm1252_vm3, %v2239_v24, %v1249_v41  ;;  %v1266_v54 = vmul.f32 %v2243_v49, %v1265_v19  ;;  %2246 = vrsqrt.f32 %v3140_v23  ;;  %v1404_v31 = vrot.slane %v3036_v28, 1  ;;  %vm3181_vm6 = vmor %vm1280_vm5, %vm1281_vm4 }
 0x343   : > { %v1314_v14 = vmul.f32 %v1253_v2, %v2772_v12  ;;  %v1419_v4 = vsel %vm1411_vm11, %v1402_v38, %v1403_v36  ;;  %v1368_v12 = vrot.slane %v3131_v27, 7  ;;  %vm1270_vm7 = vweird.f32 %v3076_v30 }
 0x344   : > { %v1267_v24 = vmul.f32 0.5, %v1266_v54  ;;  %v1658_v51 = vsel %vm3104_vm14, %v1419_v4, %v1387_v20  ;;  %vm1271_vm8 = vweird.f32 %v2243_v49  ;;  %v1283_v26 = vsel %vm3181_vm6, %v3079_v10, %v1279_v29 }
 0x345   : > { %v1334_v50 = vmul.f32 %v2826_v18, %v1314_v14  ;;  %v2181_v53 = vpack.i.bf16 %v1658_v51, %v1657_v34  ;;  %vm3194_vm9 = vcmp.eq.s32.totalorder %v1510_v58, 0  ;;  %v1371_v62 = vrot.slane %v3137_v6, 7  ;;  %vm1272_vm13 = vmor %vm1270_vm7, %vm1271_vm8 }
 0x346   : > { %v1268_v46 = vsub.f32 1.5, %v1267_v24  ;;  %vm1290_vm12 = vweird.f32 %v3133_v13  ;;  %v1386_v15 = vsel %vm1378_vm10, %v1367_v32, %v1368_v12  ;;  %v1418_v10 = vsel %vm1411_vm11, %v1403_v36, %v1404_v31 }
 0x347   : > { %v2245_v57 = vpop.eup %2244  ;;  %v3188_v48 = vadd.f32 %v2843_v61, %v1334_v50  ;;  %2182 = vrot.lane.b32.xlu1 %v2181_v53, %s2323_s17  ;;  %vm1300_vm14 = vweird.f32 %v3140_v23  ;;  %v1438_v58 = vadd.s32 88, %v2856_v44  ;;  %v1317_v41 = vmul.f32 %v1283_v26, %v2781_v9 }
 0x348   : > { %v2247_v45 = vpop.eup %2246  ;;  %v1269_v63 = vmul.f32 %v2243_v49, %v1268_v46  ;;  %v1285_v21 = vmul.f32 %v2245_v57, %v3133_v13  ;;  %v1385_v32 = vsel %vm1378_vm10, %v1368_v12, %v1369_v56  ;;  %v1659_v2 = vsel %vm3143_vm2, %v1418_v10, %v1386_v15 }
 0x349   : > { %v1295_v16 = vmul.f32 %v2247_v45, %v3140_v23  ;;  %v1405_v5 = vrot.slane %v3188_v48, 1  ;;  %v1517_v14 = vand.u32 1, %v1437_v35  ;;  %v1524_v24 = vand.u32 1, %v1438_v58 }
 0x34a   : > { %v1273_v19 = vsel %vm1272_vm13, %v2243_v49, %v1269_v63  ;;  %v1286_v52 = vmul.f32 %v2245_v57, %v1285_v21  ;;  %v1370_v49 = vrot.slane %v3188_v48, 7  ;;  %vm1291_vm15 = vweird.f32 %v2245_v57 }
 0x34b   : > { %v1316_v30 = vmul.f32 %v1273_v19, %v2787_v7  ;;  %v1296_v36 = vmul.f32 %v2247_v45, %v1295_v16  ;;  %v1417_v17 = vsel %vm1411_vm11, %v1404_v31, %v1405_v5  ;;  %v1337_v7 = vmul.f32 %v2826_v18, %v1317_v41  ;;  %vm1292_vm3 = vmor %vm1290_vm12, %vm1291_vm15 }
 0x34c   : > { %v1287_v54 = vmul.f32 0.5, %v1286_v52  ;;  %v1660_v9 = vsel %vm3194_vm9, %v1417_v17, %v1385_v32  ;;  %v1406_v51 = vrot.slane %v3137_v6, 1  ;;  %vm1301_vm1 = vweird.f32 %v2247_v45 }
 0x34d   : > { %v1336_v29 = vmul.f32 %v2826_v18, %v1316_v30  ;;  %v1297_v20 = vmul.f32 0.5, %v1296_v36  ;;  %v2186_v4 = vpack.i.bf16 %v1660_v9, %v1659_v2  ;;  %v1439_v50 = vadd.s32 96, %v2856_v44  ;;  %vm1302_vm5 = vmor %vm1300_vm14, %vm1301_vm1 }
 0x34e   : > { %v1288_v34 = vsub.f32 1.5, %v1287_v54  ;;  %v1384_v31 = vsel %vm1378_vm10, %v1369_v56, %v1370_v49  ;;  %v1416_v38 = vsel %vm1411_vm11, %v1405_v5, %v1406_v51  ;;  %vm3240_vm2 = vcmp.eq.s32.totalorder %v1517_v14, 0 }
 0x34f   : > { %v3230_v55 = vadd.f32 %v2843_v61, %v1336_v29  ;;  %v1298_v12 = vsub.f32 1.5, %v1297_v20  ;;  %2187 = vrot.lane.b32.xlu2 %v2186_v4, %s2323_s17  ;;  %vm3247_vm4 = vcmp.eq.s32.totalorder %v1524_v24, 0  ;;  %v1440_v63 = vadd.s32 104, %v2856_v44 }
 0x350   : > { %v1289_v53 = vmul.f32 %v2245_v57, %v1288_v34  ;;  %v3253_v56 = vadd.f32 %v2843_v61, %v1337_v7  ;;  %v1383_v13 = vsel %vm1378_vm10, %v1370_v49, %v1371_v62  ;;  %v1360_v15 = vrot.slane %v3067_v8, 7 }
 0x351   : > { %v1299_v35 = vmul.f32 %v2247_v45, %v1298_v12  ;;  %v1407_v26 = vrot.slane %v3230_v55, 1  ;;  %v1661_v58 = vsel %vm3240_vm2, %v1416_v38, %v1384_v31  ;;  %v1372_v41 = vrot.slane %v3230_v55, 7 }
 0x352   : > { %v1293_v21 = vsel %vm1292_vm3, %v2245_v57, %v1289_v53  ;;  %v1531_v19 = vand.u32 1, %v1439_v50  ;;  %v1538_v30 = vand.u32 1, %v1440_v63  ;;  %v1408_v36 = vrot.slane %v3253_v56, 1 }
 0x353   : > { %v1318_v10 = vmul.f32 %v1293_v21, %v2796_v25  ;;  %v1303_v16 = vsel %vm1302_vm5, %v2247_v45, %v1299_v35  ;;  %v1415_v5 = vsel %vm1411_vm11, %v1406_v51, %v1407_v26  ;;  %v1395_v25 = vrot.slane %v3067_v8, 1 }
 0x354   : > { %v1319_v57 = vmul.f32 %v1303_v16, %v2804_v42  ;;  %v1662_v23 = vsel %vm3247_vm4, %v1415_v5, %v1383_v13  ;;  %v1447_v17 = vand.u32 1, %v2856_v44  ;;  %v1441_v42 = vadd.s32 112, %v2856_v44 }
 0x355   : > { %v1338_v52 = vmul.f32 %v2826_v18, %v1318_v10  ;;  %v2191_v32 = vpack.i.bf16 %v1662_v23, %v1661_v58  ;;  %v1393_v54 = vsel %vm1378_vm10, %v1360_v15, %v1361_v0  ;;  %vm3287_vm6 = vcmp.eq.s32.totalorder %v1454_v59, 0 }
 0x356   : > { %v1339_v45 = vmul.f32 %v2826_v18, %v1319_v57  ;;  %v1442_v9 = vadd.s32 120, %v2856_v44  ;;  %v1382_v14 = vsel %vm1378_vm10, %v1371_v62, %v1372_v41  ;;  %v1414_v29 = vsel %vm1411_vm11, %v1407_v26, %v1408_v36 }
 0x357   : > { %v3278_v2 = vadd.f32 %v2843_v61, %v1338_v52  ;;  %2192 = vrot.lane.b32.xlu1 %v2191_v32, %s2323_s17  ;;  %vm3301_vm7 = vcmp.eq.s32.totalorder %v1531_v19, 0  ;;  %v1373_v60 = vrot.slane %v3253_v56, 7  ;;  %vm1648_vm8 = vcmp.eq.s32.totalorder %v1538_v30, 0 }
 0x358   : > { %v3293_v49 = vadd.f32 %v2843_v61, %v1339_v45  ;;  %v1426_v61 = vsel %vm1411_vm11, %v1395_v25, %v1396_v3  ;;  %v1425_v62 = vsel %vm1411_vm11, %v1396_v3, %v1397_v1  ;;  %vm1635_vm9 = vcmp.eq.s32.totalorder %v1447_v17, 0 }
 0x359   : > { %v1409_v59 = vrot.slane %v3278_v2, 1  ;;  %v1545_v4 = vand.u32 1, %v1441_v42  ;;  %v1381_v24 = vsel %vm1378_vm10, %v1372_v41, %v1373_v60  ;;  %v1663_v34 = vsel %vm3301_vm7, %v1414_v29, %v1382_v14 }
 0x35a   : > { %v1375_v20 = vrot.slane %v3293_v49, 7  ;;  %v1552_v51 = vand.u32 1, %v1442_v9  ;;  %v1374_v53 = vrot.slane %v3278_v2, 7  ;;  %v1410_v3 = vrot.slane %v3293_v49, 1 }
 0x35b   : > { %v1413_v7 = vsel %vm1411_vm11, %v1408_v36, %v1409_v59  ;;  %v1652_v38 = vsel %vm3287_vm6, %v1425_v62, %v1393_v54  ;;  %vm1649_vm12 = vcmp.eq.s32.totalorder %v1545_v4, 0 }
 0x35c   : > { %v1664_v12 = vsel %vm1648_vm8, %v1413_v7, %v1381_v24  ;;  %v1394_v50 = vsel %vm1378_vm10, %v1375_v20, %v1360_v15  ;;  %vm1650_vm13 = vcmp.eq.s32.totalorder %v1552_v51, 0  ;;  %v1379_v35 = vsel %vm1378_vm10, %v1374_v53, %v1375_v20 }
 0x35d   : > { %v2201_v1 = vpack.i.bf16 %v1664_v12, %v1663_v34  ;;  %v1651_v31 = vsel %vm1635_vm9, %v1426_v61, %v1394_v50  ;;  %v1380_v26 = vsel %vm1378_vm10, %v1373_v60, %v1374_v53  ;;  %v1412_v47 = vsel %vm1411_vm11, %v1409_v59, %v1410_v3 }
 0x35e   : > { %v2196_v46 = vpack.i.bf16 %v1652_v38, %v1651_v31  ;;  %v1427_v63 = vsel %vm1411_vm11, %v1410_v3, %v1395_v25  ;;  %v1665_v21 = vsel %vm1649_vm12, %v1412_v47, %v1380_v26 }
 0x35f   : > { %2202 = vrot.lane.b32.xlu2 %v2201_v1, %s2323_s17  ;;  %v1666_v13 = vsel %vm1650_vm13, %v1427_v63, %v1379_v35 }
 0x360   : > { %2197 = vrot.lane.b32.xlu1 %v2196_v46, %s2323_s17  ;;  %v2206_v15 = vpack.i.bf16 %v1666_v13, %v1665_v21 }
 0x368   : > { %2207 = vrot.lane.b32.xlu1 %v2206_v15, %s2323_s17 }
 0x391   : > { %v2173_v10 = vpop.permute.xlu2 %2172 }
 0x392   : > { %v2175_v16 = vunpack.i.h.bf16 %v2173_v10  ;;  %v2174_v5 = vunpack.i.l.bf16 %v2173_v10 }
 0x394   : > { %v1734_v58 = vsel %vm960_vm0, %v2859_v37, %v2175_v16  ;;  %v1733_v57 = vsel %vm960_vm0, %v2951_v33, %v2174_v5 }
 0x395   : > { %v2037_v23 = vpack.c.bf16 %v1734_v58, %v1733_v57 }
 0x397   : > { %2069 = vst [vmem:[%s2528_s0 + $0x8] sm:$0xff] %v2037_v23  }
 0x3a9   : > { %v2188_v44 = vpop.permute.xlu2 %2187 }
 0x3aa   : > { %v2190_v41 = vunpack.i.h.bf16 %v2188_v44  ;;  %v2189_v19 = vunpack.i.l.bf16 %v2188_v44 }
 0x3ac   : > { %v1740_v52 = vsel %vm960_vm0, %v3036_v28, %v2190_v41  ;;  %v1739_v32 = vsel %vm960_vm0, %v3131_v27, %v2189_v19 }
 0x3ad   : > { %v2052_v30 = vpack.c.bf16 %v1740_v52, %v1739_v32 }
 0x3af   : > { %2072 = vst [vmem:[%s2528_s0 + $0x20] sm:$0xff] %v2052_v30  }
 0x3b1   : > { %v2178_v25 = vpop.permute.xlu0 %2177 }
 0x3b2   : > { %v2180_v45 = vunpack.i.h.bf16 %v2178_v25  ;;  %v2179_v37 = vunpack.i.l.bf16 %v2178_v25 }
 0x3b4   : > { %v1736_v33 = vsel %vm960_vm0, %v2881_v22, %v2180_v45  ;;  %v1735_v36 = vsel %vm960_vm0, %v2996_v11, %v2179_v37 }
 0x3b5   : > { %v2042_v17 = vpack.c.bf16 %v1736_v33, %v1735_v36 }
 0x3b7   : > { %2070 = vst [vmem:[%s2528_s0 + $0x10] sm:$0xff] %v2042_v17  }
 0x3b9   : > { %v2203_v42 = vpop.permute.xlu2 %2202  ;;  %v2183_v28 = vpop.permute.xlu1 %2182 }
 0x3ba   : > { %v2205_v54 = vunpack.i.h.bf16 %v2203_v42  ;;  %v2204_v18 = vunpack.i.l.bf16 %v2203_v42  ;;  %v2185_v27 = vunpack.i.h.bf16 %v2183_v28  ;;  %v2184_v9 = vunpack.i.l.bf16 %v2183_v28 }
 0x3bc   : > { %v1744_v14 = vsel %vm960_vm0, %v3253_v56, %v2205_v54  ;;  %v1743_v22 = vsel %vm960_vm0, %v3230_v55, %v2204_v18  ;;  %v1738_v29 = vsel %vm960_vm0, %v2917_v39, %v2185_v27  ;;  %v1737_v11 = vsel %vm960_vm0, %v3072_v43, %v2184_v9 }
 0x3bd   : > { %v2062_v0 = vpack.c.bf16 %v1744_v14, %v1743_v22  ;;  %v2047_v60 = vpack.c.bf16 %v1738_v29, %v1737_v11 }
 0x3bf   : > { %2074 = vst [vmem:[%s2528_s0 + $0x30] sm:$0xff] %v2062_v0  }
 0x3c0   : > { %2071 = vst [vmem:[%s2528_s0 + $0x18] sm:$0xff] %v2047_v60  }
 0x3c9   : > { %v2193_v59 = vpop.permute.xlu1 %2192 }
 0x3ca   : > { %v2195_v61 = vunpack.i.h.bf16 %v2193_v59  ;;  %v2194_v20 = vunpack.i.l.bf16 %v2193_v59 }
 0x3cc   : > { %v1742_v56 = vsel %vm960_vm0, %v3137_v6, %v2195_v61  ;;  %v1741_v55 = vsel %vm960_vm0, %v3188_v48, %v2194_v20 }
 0x3cd   : > { %v2057_v62 = vpack.c.bf16 %v1742_v56, %v1741_v55 }
 0x3cf   : > { %2073 = vst [vmem:[%s2528_s0 + $0x28] sm:$0xff] %v2057_v62  }
 0x3d2   : > { %v2198_v39 = vpop.permute.xlu1 %2197 }
 0x3d3   : > { %v2200_v4 = vunpack.i.h.bf16 %v2198_v39  ;;  %v2199_v43 = vunpack.i.l.bf16 %v2198_v39 }
 0x3d5   : > { %v1732_v24 = vsel %vm960_vm0, %v2854_v40, %v2200_v4  ;;  %v1731_v7 = vsel %vm960_vm0, %v3067_v8, %v2199_v43 }
 0x3d6   : > { %v2032_v34 = vpack.c.bf16 %v1732_v24, %v1731_v7 }
 0x3d8   : > { %2033 = vst [vmem:[%s2528_s0] sm:$0xff] %v2032_v34  }
 0x3da   : > { %v2208_v51 = vpop.permute.xlu1 %2207 }
 0x3db   : > { %v2210_v12 = vunpack.i.h.bf16 %v2208_v51  ;;  %v2209_v6 = vunpack.i.l.bf16 %v2208_v51 }
 0x3dd   : > { %v1746_v48 = vsel %vm960_vm0, %v3293_v49, %v2210_v12  ;;  %v1745_v50 = vsel %vm960_vm0, %v3278_v2, %v2209_v6 }
 0x3de   : > { %v2067_v53 = vpack.c.bf16 %v1746_v48, %v1745_v50 }
 0x3e0   : > { %2075 = vst [vmem:[%s2528_s0 + $0x38] sm:$0xff] %v2067_v53  }
 0x3e1 PF: > { %s15_s26 = sadd.s32 1, %s2318_s26   ;;  %s3452_s18 = smov %s2290_s19 }
 0x3e2   : > { %p12_p2 = scmp.ge.s32.totalorder %s15_s26, 6   ;;  %s3453_s19 = smov %s2429_s12 }
 0x3e3   : > { %s3454_s20 = smov %s2298_s21  ;;  %s3455_s21 = smov %s2419_s7 }
 0x3e4   : > { %s3456_s22 = smov %s2310_s24  ;;  %s3457_s23 = smov %s2314_s25 }
 0x3e5   : > { %s3458_s24 = smov %s3461_s27  ;;  %s3459_s25 = smov %s3465_s28 }
 0x3e6   :  { %14 = sbr.rel (!%p12_p2) target bundleno = 8 (0x8), region = 173 }

// kernel: cnf_encoder_forward.7
= control target key start
LH: loop header
LB: loop body
LE: loop exit
PB: predicated region body
PF: predicated region fallthrough
CT: control target
= control target key end

     0   :  { %s2388_s0 = inlined_call_operand.vmem [shape: bf16[512,256], index: 0, kind: input, shape index: {}]   ;;  %s2389_s1 = inlined_call_operand.vmem [shape: bf16[256,128], index: 1, kind: input, shape index: {}]   ;;  %s2390_s2 = inlined_call_operand.vmem [shape: f32[512,1], index: 2, kind: input, shape index: {}]   ;;  %s2391_s3 = inlined_call_operand.vmem [shape: bf16[64,128], index: 3, kind: input, shape index: {}]   ;;  %s2392_s4 = inlined_call_operand.vmem [shape: f32[64,1], index: 4, kind: input, shape index: {}]   ;;  %s2393_s5 = inlined_call_operand.vmem [shape: bf16[64,512], index: 5, kind: output, shape index: {}]  }
   0x1   :  { %2395 = sst [smem:[#allocation6_spill]] %s2388_s0 }
   0x2   :  { %s2050_s18 = smov 0   ;;  %s2052_s19 = smov 0  }
   0x3   :  { %s2054_s20 = smov 0   ;;  %s2056_s21 = smov 0  }
   0x4   :  { %s2058_s22 = smov 0   ;;  %s2060_s23 = smov 0  }
   0x5   :  { %s2062_s24 = smov 0   ;;  %s2064_s25 = smov 0  }
   0x6   :  { %s2066_s26 = smov 0  }
   0x7 LB: > { %s24_s27 = sadd.s32 1, %s2008_s24  ;;  %s27_s28 = sadd.s32 1, %s2012_s25  ;;  %s2016_s26 = sphi %s2066_s26, %s15_s26   ;;  %s2012_s25 = sphi %s2064_s25, %s2408_s25   ;;  %s2008_s24 = sphi %s2062_s24, %s2407_s24   ;;  %s2004_s23 = sphi %s2060_s23, %s2406_s23   ;;  %s2000_s22 = sphi %s2058_s22, %s2405_s22   ;;  %s1996_s21 = sphi %s2056_s21, %s2404_s21   ;;  %s1992_s20 = sphi %s2054_s20, %s2403_s20   ;;  %s1988_s19 = sphi %s2052_s19, %s2402_s19   ;;  %s1984_s18 = sphi %s2050_s18, %s2401_s18  }
   0x8   : > { %p25_p0 = scmp.ge.s32.totalorder %s24_s27, 2  ;;  %p43_p1 = scmp.ne.s32.totalorder %s1996_s21, %s1992_s20 }
   0x9   : > { %s1553_s29 = sadd.s32 4294967295, %s2016_s26   ;;  %p44_p2 = scmp.eq.s32.totalorder %s2016_s26, 0 }
   0xa   : > { %s2410_s27 = smov (%p25_p0, %s24_s27), 0  ;;  %s2412_s28 = smov (!%p25_p0, %s27_s28), %s2012_s25 }
   0xb   : > { %p29_p3 = scmp.ge.s32.totalorder %s2412_s28, 2  ;;  %s32_s30 = ssub.s32 %s2008_s24, %s2410_s27 }
   0xc   : > { %p2106_p4 = por %p44_p2, %p43_p1  ;;  %p166_p5 = scmp.ne.s32.totalorder %s1988_s19, %s1984_s18 }
   0xd   : > { %s2414_s28 = smov (%p29_p3, %s2412_s28), 0  ;;  %s36_s7 = sadd.s32 1, %s1996_s21 }
   0xe   : > { %2397 = sst [smem:[#allocation5_spill]] %s2414_s28  ;;  %p167_p6 = scmp.eq.s32.totalorder %s1553_s29, 3 }
   0xf   : > { %s31_s8 = ssub.s32 %s2012_s25, %s2414_s28  ;;  %s156_s9 = sadd.s32 1, %s1988_s19 }
  0x10   : > { %s33_s10 = sor.u32 %s32_s30, %s31_s8  ;;  %p154_p7 = scmp.eq.s32.totalorder %s31_s8, 0 }
  0x11   : > { %p34_p8 = scmp.eq.s32.totalorder %s33_s10, 0  ;;  %p2118_p9 = por %p167_p6, %p166_p5 }
  0x12   : > { %s2123_s12 = scalar_select %p154_p7, %s1988_s19, %s156_s9  }
  0x13   : > { %s2126_s13 = scalar_select %p34_p8, %s1996_s21, %s36_s7  }
  0x14   : > { %p1556_p10 = scmp.ge.s32.totalorder %s2016_s26, 4 }
  0x16   : > { %195 = sbr.rel (%p1556_p10) target bundleno = 69 (0x45), region = 24 }
  0x1b   : > { %198 = sbr.rel (!%p2106_p4) target bundleno = 69 (0x45), region = 28  ;;  %s200_s14 = sand.u32 (%p2106_p4), 1, %s1996_s21  }
  0x1c   : > { %s1687_s15 = sshll.u32 (%p2106_p4), %s2012_s25, 6  ;;  %s1557_s16 = sshll.u32 (%p2106_p4), %s200_s14, 7 }
  0x1d   : > { %s205_s17 = sadd.s32 (%p2106_p4), %s2008_s24, %s1687_s15  ;;  %s2399_s0 = sld [smem:[#allocation6_spill]] (%p2106_p4) }
  0x1e   : > { %s1560_s29 = sshll.u32 (%p2106_p4), %s205_s17, 2  ;;  %s2142_s6 = scalar_lea.vmem (%p2106_p4), [#allocation3], %s1557_s16 }
  0x23   : > { %s2137_s9 = scalar_lea.vmem %s2399_s0, %s1560_s29 }
  0x24   : > { %v224_v0 = vld [vmem:[%s2137_s9] sm:$0xf]  ;;  %v226_v1 = vld [vmem:[%s2137_s9 + $0x8] sm:$0xf]  ;;  %v228_v2 = vld [vmem:[%s2137_s9 + $0x10] sm:$0xf] }
  0x25   : > { %225 = vst [vmem:[%s2142_s6] sm:$0xf] %v224_v0  ;;  %v230_v3 = vld [vmem:[%s2137_s9 + $0x18] sm:$0xf]  ;;  %v232_v4 = vld [vmem:[%s2137_s9 + $0x20] sm:$0xf] }
  0x26   : > { %227 = vst [vmem:[%s2142_s6 + $0x4] sm:$0xf] %v226_v1  ;;  %v234_v5 = vld [vmem:[%s2137_s9 + $0x28] sm:$0xf]  ;;  %v236_v6 = vld [vmem:[%s2137_s9 + $0x30] sm:$0xf] }
  0x27   : > { %229 = vst [vmem:[%s2142_s6 + $0x8] sm:$0xf] %v228_v2  ;;  %v238_v7 = vld [vmem:[%s2137_s9 + $0x38] sm:$0xf]  ;;  %v240_v8 = vld [vmem:[%s2137_s9 + $0x40] sm:$0xf] }
  0x28   : > { %231 = vst [vmem:[%s2142_s6 + $0xc] sm:$0xf] %v230_v3  ;;  %v242_v9 = vld [vmem:[%s2137_s9 + $0x48] sm:$0xf]  ;;  %v244_v10 = vld [vmem:[%s2137_s9 + $0x50] sm:$0xf] }
  0x29   : > { %233 = vst [vmem:[%s2142_s6 + $0x10] sm:$0xf] %v232_v4  ;;  %v246_v11 = vld [vmem:[%s2137_s9 + $0x58] sm:$0xf]  ;;  %v248_v12 = vld [vmem:[%s2137_s9 + $0x60] sm:$0xf] }
  0x2a   : > { %235 = vst [vmem:[%s2142_s6 + $0x14] sm:$0xf] %v234_v5  ;;  %v250_v13 = vld [vmem:[%s2137_s9 + $0x68] sm:$0xf]  ;;  %v252_v14 = vld [vmem:[%s2137_s9 + $0x70] sm:$0xf] }
  0x2b   : > { %237 = vst [vmem:[%s2142_s6 + $0x18] sm:$0xf] %v236_v6  ;;  %v254_v15 = vld [vmem:[%s2137_s9 + $0x78] sm:$0xf]  ;;  %v256_v16 = vld [vmem:[%s2137_s9 + $0x80] sm:$0xf] }
  0x2c   : > { %239 = vst [vmem:[%s2142_s6 + $0x1c] sm:$0xf] %v238_v7  ;;  %v258_v17 = vld [vmem:[%s2137_s9 + $0x88] sm:$0xf]  ;;  %v260_v18 = vld [vmem:[%s2137_s9 + $0x90] sm:$0xf] }
  0x2d   : > { %241 = vst [vmem:[%s2142_s6 + $0x20] sm:$0xf] %v240_v8  ;;  %v262_v19 = vld [vmem:[%s2137_s9 + $0x98] sm:$0xf]  ;;  %v264_v20 = vld [vmem:[%s2137_s9 + $0xa0] sm:$0xf] }
  0x2e   : > { %243 = vst [vmem:[%s2142_s6 + $0x24] sm:$0xf] %v242_v9  ;;  %v266_v21 = vld [vmem:[%s2137_s9 + $0xa8] sm:$0xf]  ;;  %v268_v22 = vld [vmem:[%s2137_s9 + $0xb0] sm:$0xf] }
  0x2f   : > { %245 = vst [vmem:[%s2142_s6 + $0x28] sm:$0xf] %v244_v10  ;;  %v270_v23 = vld [vmem:[%s2137_s9 + $0xb8] sm:$0xf]  ;;  %v272_v24 = vld [vmem:[%s2137_s9 + $0xc0] sm:$0xf] }
  0x30   : > { %247 = vst [vmem:[%s2142_s6 + $0x2c] sm:$0xf] %v246_v11  ;;  %v274_v25 = vld [vmem:[%s2137_s9 + $0xc8] sm:$0xf]  ;;  %v276_v26 = vld [vmem:[%s2137_s9 + $0xd0] sm:$0xf] }
  0x31   : > { %249 = vst [vmem:[%s2142_s6 + $0x30] sm:$0xf] %v248_v12  ;;  %v278_v27 = vld [vmem:[%s2137_s9 + $0xd8] sm:$0xf]  ;;  %v280_v28 = vld [vmem:[%s2137_s9 + $0xe0] sm:$0xf] }
  0x32   : > { %251 = vst [vmem:[%s2142_s6 + $0x34] sm:$0xf] %v250_v13  ;;  %v282_v29 = vld [vmem:[%s2137_s9 + $0xe8] sm:$0xf]  ;;  %v284_v30 = vld [vmem:[%s2137_s9 + $0xf0] sm:$0xf] }
  0x33   : > { %253 = vst [vmem:[%s2142_s6 + $0x38] sm:$0xf] %v252_v14  ;;  %v286_v31 = vld [vmem:[%s2137_s9 + $0xf8] sm:$0xf] }
  0x34   : > { %255 = vst [vmem:[%s2142_s6 + $0x3c] sm:$0xf] %v254_v15 }
  0x35   : > { %257 = vst [vmem:[%s2142_s6 + $0x40] sm:$0xf] %v256_v16 }
  0x36   : > { %259 = vst [vmem:[%s2142_s6 + $0x44] sm:$0xf] %v258_v17 }
  0x37   : > { %261 = vst [vmem:[%s2142_s6 + $0x48] sm:$0xf] %v260_v18 }
  0x38   : > { %263 = vst [vmem:[%s2142_s6 + $0x4c] sm:$0xf] %v262_v19 }
  0x39   : > { %265 = vst [vmem:[%s2142_s6 + $0x50] sm:$0xf] %v264_v20 }
  0x3a   : > { %267 = vst [vmem:[%s2142_s6 + $0x54] sm:$0xf] %v266_v21 }
  0x3b   : > { %269 = vst [vmem:[%s2142_s6 + $0x58] sm:$0xf] %v268_v22 }
  0x3c   : > { %271 = vst [vmem:[%s2142_s6 + $0x5c] sm:$0xf] %v270_v23 }
  0x3d   : > { %273 = vst [vmem:[%s2142_s6 + $0x60] sm:$0xf] %v272_v24 }
  0x3e   : > { %275 = vst [vmem:[%s2142_s6 + $0x64] sm:$0xf] %v274_v25 }
  0x3f   : > { %277 = vst [vmem:[%s2142_s6 + $0x68] sm:$0xf] %v276_v26 }
  0x40   : > { %279 = vst [vmem:[%s2142_s6 + $0x6c] sm:$0xf] %v278_v27 }
  0x41   : > { %281 = vst [vmem:[%s2142_s6 + $0x70] sm:$0xf] %v280_v28 }
  0x42   : > { %283 = vst [vmem:[%s2142_s6 + $0x74] sm:$0xf] %v282_v29 }
  0x43   : > { %285 = vst [vmem:[%s2142_s6 + $0x78] sm:$0xf] %v284_v30 }
  0x44   : > { %287 = vst [vmem:[%s2142_s6 + $0x7c] sm:$0xf] %v286_v31 }
  0x45 PF: > { %p1561_p11 = scmp.ge.s32.totalorder %s2016_s26, 1  ;;  %p392_p12 = scmp.lt.s32.totalorder %s2016_s26, 5 }
  0x47   : > { %p393_p13 = pnand %p1561_p11, %p392_p12 }
  0x48   : > { %s399_s7 = sand.u32 (!%p393_p13), 1, %s1992_s20   ;;  %s432_s10 = sand.u32 (!%p393_p13), 1, %s1984_s18  }
  0x49   : > { %396 = sbr.rel (%p393_p13) target bundleno = 965 (0x3c5), region = 77  ;;  %s1562_s14 = sshll.u32 (!%p393_p13), %s399_s7, 7 }
  0x4a   : > { %s1563_s15 = sshll.u32 (!%p393_p13), %s432_s10, 6  ;;  %s1564_s16 = sshll.u32 (!%p393_p13), %s2000_s22, 4 }
  0x4b   : > { %s1566_s17 = sshll.u32 (!%p393_p13), %s2004_s23, 5  ;;  %p437_p0 = scmp.lt.s32.totalorder (!%p393_p13), %s1564_s16, 31 }
  0x4c   : > { %p443_p1 = scmp.lt.s32.totalorder (!%p393_p13), %s1566_s17, 63  ;;  %s2221_s18 = scalar_lea.vmem (!%p393_p13), [#allocation3], %s1562_s14 }
  0x4d   : > { %s2223_s7 = scalar_lea.vmem (!%p393_p13), [#allocation4], %s1563_s15  ;;  %p1568_p2 = scmp.ne.s32.totalorder (!%p393_p13), %s2000_s22, 0 }
  0x4e   : > { %s2416_s16 = smov (!%p437_p0, %s1564_s16), 31  ;;  %s2418_s17 = smov (!%p443_p1, %s1566_s17), 63 }
  0x4f   : > { %s1565_s29 = sshll.u32 %s2416_s16, 2  ;;  %s1567_s6 = sshll.u32 %s2418_s17, 3 }
  0x50   : > { %s2214_s9 = scalar_lea.vmem %s2389_s1, %s1565_s29  ;;  %s2219_s20 = scalar_lea.vmem %s2390_s2, %s1567_s6 }
  0x51   : > { %452 = sbr.rel (%p1568_p2) target bundleno = 119 (0x77), region = 85 }
  0x56   : > { %v2018_v32 = vmov 0.0  }
  0x57   : > { %453 = vst [vmem:[#allocation2 + $0xb0] sm:$0xff] %v2018_v32 }
  0x58   : > { %454 = vst [vmem:[#allocation2] sm:$0xff] %v2018_v32 }
  0x59   : > { %455 = vst [vmem:[#allocation2 + $0xd8] sm:$0xff] %v2018_v32 }
  0x5a   : > { %456 = vst [vmem:[#allocation2 + $0x18] sm:$0xff] %v2018_v32 }
  0x5b   : > { %457 = vst [vmem:[#allocation2 + $0x50] sm:$0xff] %v2018_v32 }
  0x5c   : > { %458 = vst [vmem:[#allocation2 + $0x68] sm:$0xff] %v2018_v32 }
  0x5d   : > { %459 = vst [vmem:[#allocation2 + $0x30] sm:$0xff] %v2018_v32 }
  0x5e   : > { %460 = vst [vmem:[#allocation2 + $0x48] sm:$0xff] %v2018_v32 }
  0x5f   : > { %461 = vst [vmem:[#allocation2 + $0x80] sm:$0xff] %v2018_v32 }
  0x60   : > { %462 = vst [vmem:[#allocation2 + $0x88] sm:$0xff] %v2018_v32 }
  0x61   : > { %463 = vst [vmem:[#allocation2 + $0xe8] sm:$0xff] %v2018_v32 }
  0x62   : > { %464 = vst [vmem:[#allocation2 + $0xb8] sm:$0xff] %v2018_v32 }
  0x63   : > { %465 = vst [vmem:[#allocation2 + $0x60] sm:$0xff] %v2018_v32 }
  0x64   : > { %466 = vst [vmem:[#allocation2 + $0xf0] sm:$0xff] %v2018_v32 }
  0x65   : > { %467 = vst [vmem:[#allocation2 + $0x8] sm:$0xff] %v2018_v32 }
  0x66   : > { %468 = vst [vmem:[#allocation2 + $0x78] sm:$0xff] %v2018_v32 }
  0x67   : > { %469 = vst [vmem:[#allocation2 + $0x38] sm:$0xff] %v2018_v32 }
  0x68   : > { %470 = vst [vmem:[#allocation2 + $0x58] sm:$0xff] %v2018_v32 }
  0x69   : > { %471 = vst [vmem:[#allocation2 + $0x40] sm:$0xff] %v2018_v32 }
  0x6a   : > { %472 = vst [vmem:[#allocation2 + $0xc8] sm:$0xff] %v2018_v32 }
  0x6b   : > { %473 = vst [vmem:[#allocation2 + $0xe0] sm:$0xff] %v2018_v32 }
  0x6c   : > { %474 = vst [vmem:[#allocation2 + $0x90] sm:$0xff] %v2018_v32 }
  0x6d   : > { %475 = vst [vmem:[#allocation2 + $0x70] sm:$0xff] %v2018_v32 }
  0x6e   : > { %476 = vst [vmem:[#allocation2 + $0xc0] sm:$0xff] %v2018_v32 }
  0x6f   : > { %477 = vst [vmem:[#allocation2 + $0xa8] sm:$0xff] %v2018_v32 }
  0x70   : > { %478 = vst [vmem:[#allocation2 + $0xd0] sm:$0xff] %v2018_v32 }
  0x71   : > { %479 = vst [vmem:[#allocation2 + $0x10] sm:$0xff] %v2018_v32 }
  0x72   : > { %480 = vst [vmem:[#allocation2 + $0x28] sm:$0xff] %v2018_v32 }
  0x73   : > { %481 = vst [vmem:[#allocation2 + $0xa0] sm:$0xff] %v2018_v32 }
  0x74   : > { %482 = vst [vmem:[#allocation2 + $0xf8] sm:$0xff] %v2018_v32 }
  0x75   : > { %483 = vst [vmem:[#allocation2 + $0x20] sm:$0xff] %v2018_v32 }
  0x76   : > { %484 = vst [vmem:[#allocation2 + $0x98] sm:$0xff] %v2018_v32 }
  0x77 PF: > { %v1711_v33 = vld [vmem:[%s2214_s9 + $0x38] sm:$0xff]  ;;  %v1710_v34 = vld [vmem:[%s2214_s9 + $0x30] sm:$0xff]  ;;  %v1709_v35 = vld [vmem:[%s2214_s9 + $0x28] sm:$0xff]  ;;  %p1665_p3 = scmp.ne.s32.totalorder %s2000_s22, 1 }
  0x78   : > { %709 = vmatpush.bf16.msra.mxu0 %v1711_v33  ;;  %1717 = vmatpush.bf16.msra.mxu1 %v1711_v33  ;;  %v1708_v36 = vld [vmem:[%s2214_s9 + $0x20] sm:$0xff]  ;;  %v1707_v37 = vld [vmem:[%s2214_s9 + $0x18] sm:$0xff]  ;;  %v1706_v38 = vld [vmem:[%s2214_s9 + $0x10] sm:$0xff] }
  0x79   : > { %1718 = vmatpush.bf16.msra.mxu2 %v1711_v33  ;;  %1719 = vmatpush.bf16.msra.mxu3 %v1711_v33  ;;  %v1705_v39 = vld [vmem:[%s2214_s9 + $0x8] sm:$0xff]  ;;  %v1704_v40 = vld [vmem:[%s2214_s9] sm:$0xff]  ;;  %v1690_v49 = vld [vmem:[%s2221_s18 + $0x10] sm:$0xff] }
  0x7a   : > { %v1688_v41 = vld [vmem:[%s2221_s18] sm:$0xff]  ;;  %v1689_v45 = vld [vmem:[%s2221_s18 + $0x8] sm:$0xff]  ;;  %v1694_v50 = vld [vmem:[%s2221_s18 + $0x30] sm:$0xff] }
  0x7b   : > { %v1692_v42 = vld [vmem:[%s2221_s18 + $0x20] sm:$0xff]  ;;  %v1693_v46 = vld [vmem:[%s2221_s18 + $0x28] sm:$0xff]  ;;  %v1698_v51 = vld [vmem:[%s2221_s18 + $0x50] sm:$0xff] }
  0x7c   : > { %710 = vmatpush.bf16.msra.mxu0 %v1710_v34  ;;  %1720 = vmatpush.bf16.msra.mxu1 %v1710_v34  ;;  %v1696_v43 = vld [vmem:[%s2221_s18 + $0x40] sm:$0xff]  ;;  %v1697_v47 = vld [vmem:[%s2221_s18 + $0x48] sm:$0xff]  ;;  %v1702_v52 = vld [vmem:[%s2221_s18 + $0x70] sm:$0xff] }
  0x7d   : > { %1721 = vmatpush.bf16.msra.mxu2 %v1710_v34  ;;  %1722 = vmatpush.bf16.msra.mxu3 %v1710_v34  ;;  %v1700_v44 = vld [vmem:[%s2221_s18 + $0x60] sm:$0xff]  ;;  %v1701_v48 = vld [vmem:[%s2221_s18 + $0x68] sm:$0xff]  ;;  %v1691_v53 = vld [vmem:[%s2221_s18 + $0x18] sm:$0xff] }
  0x7e   : > { %v1695_v54 = vld [vmem:[%s2221_s18 + $0x38] sm:$0xff]  ;;  %v485_v57 = vld [vmem:[#allocation2 + $0xb0] sm:$0xff]  ;;  %v493_v58 = vld [vmem:[#allocation2 + $0x80] sm:$0xff] }
  0x7f   : > { %v1699_v55 = vld [vmem:[%s2221_s18 + $0x58] sm:$0xff]  ;;  %v509_v0 = vld [vmem:[#allocation2 + $0xa8] sm:$0xff]  ;;  %v486_v1 = vld [vmem:[#allocation2] sm:$0xff] }
  0x80   : > { %711 = vmatpush.bf16.msra.mxu0 %v1709_v35  ;;  %1723 = vmatpush.bf16.msra.mxu1 %v1709_v35  ;;  %v1703_v56 = vld [vmem:[%s2221_s18 + $0x78] sm:$0xff]  ;;  %v494_v2 = vld [vmem:[#allocation2 + $0x88] sm:$0xff]  ;;  %v510_v12 = vld [vmem:[#allocation2 + $0xd0] sm:$0xff] }
  0x81   : > { %1724 = vmatpush.bf16.msra.mxu2 %v1709_v35  ;;  %1725 = vmatpush.bf16.msra.mxu3 %v1709_v35  ;;  %v501_v63 = vld [vmem:[#allocation2 + $0x38] sm:$0xff]  ;;  %v495_v14 = vld [vmem:[#allocation2 + $0xe8] sm:$0xff]  ;;  %v503_v23 = vld [vmem:[#allocation2 + $0x40] sm:$0xff] }
  0x82   : > { %v502_v11 = vld [vmem:[#allocation2 + $0x58] sm:$0xff]  ;;  %v511_v24 = vld [vmem:[#allocation2 + $0x10] sm:$0xff]  ;;  %v504_v35 = vld [vmem:[#allocation2 + $0xc8] sm:$0xff] }
  0x83   : > { %v487_v13 = vld [vmem:[#allocation2 + $0xd8] sm:$0xff] }
  0x84   : > { %712 = vmatpush.bf16.msra.mxu0 %v1708_v36  ;;  %1726 = vmatpush.bf16.msra.mxu1 %v1708_v36  ;;  %v488_v25 = vld [vmem:[#allocation2 + $0x18] sm:$0xff] }
  0x85   : > { %1727 = vmatpush.bf16.msra.mxu2 %v1708_v36  ;;  %1728 = vmatpush.bf16.msra.mxu3 %v1708_v36  ;;  %v496_v26 = vld [vmem:[#allocation2 + $0xb8] sm:$0xff]  ;;  %v512_v36 = vld [vmem:[#allocation2 + $0x28] sm:$0xff] }
  0x88   : > { %713 = vmatpush.bf16.msra.mxu0 %v1707_v37  ;;  %1729 = vmatpush.bf16.msra.mxu1 %v1707_v37 }
  0x89   : > { %1730 = vmatpush.bf16.msra.mxu2 %v1707_v37  ;;  %1731 = vmatpush.bf16.msra.mxu3 %v1707_v37  ;;  %v489_v37 = vld [vmem:[#allocation2 + $0x50] sm:$0xff] }
  0x8c   : > { %714 = vmatpush.bf16.msra.mxu0 %v1706_v38  ;;  %1732 = vmatpush.bf16.msra.mxu1 %v1706_v38 }
  0x8d   : > { %1733 = vmatpush.bf16.msra.mxu2 %v1706_v38  ;;  %1734 = vmatpush.bf16.msra.mxu3 %v1706_v38  ;;  %v497_v38 = vld [vmem:[#allocation2 + $0x60] sm:$0xff] }
  0x90   : > { %715 = vmatpush.bf16.msra.mxu0 %v1705_v39  ;;  %1735 = vmatpush.bf16.msra.mxu1 %v1705_v39 }
  0x91   : > { %1736 = vmatpush.bf16.msra.mxu2 %v1705_v39  ;;  %1737 = vmatpush.bf16.msra.mxu3 %v1705_v39 }
  0x94   : > { %716 = vmatpush.bf16.msra.mxu0 %v1704_v40  ;;  %1738 = vmatpush.bf16.msra.mxu1 %v1704_v40 }
  0x95   : > { %1739 = vmatpush.bf16.msra.mxu2 %v1704_v40  ;;  %1740 = vmatpush.bf16.msra.mxu3 %v1704_v40 }
  0x97   : > { %717 = vmatmul.bf16.vlgmr.msra.gmra.mxu0 %v1688_v41  ;;  %737 = vmatmul.bf16.vlgmr.msra.gmra.mxu1 %v1692_v42 }
  0x98   : > { %757 = vmatmul.bf16.vlgmr.msra.gmra.mxu2 %v1696_v43  ;;  %777 = vmatmul.bf16.vlgmr.msra.gmra.mxu3 %v1700_v44 }
  0xa7   : > { %722 = vmatmul.bf16.gmra.mxu0 %v1689_v45  ;;  %742 = vmatmul.bf16.gmra.mxu1 %v1693_v46 }
  0xa8   : > { %762 = vmatmul.bf16.gmra.mxu2 %v1697_v47  ;;  %782 = vmatmul.bf16.gmra.mxu3 %v1701_v48  ;;  %v505_v47 = vld [vmem:[#allocation2 + $0xe0] sm:$0xff] }
  0xa9   : > { %v513_v48 = vld [vmem:[#allocation2 + $0xa0] sm:$0xff] }
  0xb7   : > { %727 = vmatmul.bf16.gmra.mxu0 %v1690_v49  ;;  %747 = vmatmul.bf16.gmra.mxu1 %v1694_v50  ;;  %v490_v49 = vld [vmem:[#allocation2 + $0x68] sm:$0xff]  ;;  %v498_v50 = vld [vmem:[#allocation2 + $0xf0] sm:$0xff] }
  0xb8   : > { %767 = vmatmul.bf16.gmra.mxu2 %v1698_v51  ;;  %787 = vmatmul.bf16.gmra.mxu3 %v1702_v52 }
  0xc7   : > { %732 = vmatmul.bf16.gmra.mxu0 %v1691_v53  ;;  %752 = vmatmul.bf16.gmra.mxu1 %v1695_v54 }
  0xc8   : > { %772 = vmatmul.bf16.gmra.mxu2 %v1699_v55  ;;  %792 = vmatmul.bf16.gmra.mxu3 %v1703_v56 }
 0x114   : > { %v718_v59 = vpop.f32.mrf.mxu0  ;;  %v738_v60 = vpop.f32.mrf.mxu1 }
 0x115   : > { %v798_v61 = vadd.f32 %v718_v59, %v485_v57  ;;  %v806_v62 = vadd.f32 %v738_v60, %v493_v58  ;;  %v506_v59 = vld [vmem:[#allocation2 + $0x90] sm:$0xff]  ;;  %v514_v60 = vld [vmem:[#allocation2 + $0xf8] sm:$0xff] }
 0x117   : > { %830 = vst [vmem:[#allocation2 + $0xb0] sm:$0xff] %v798_v61  ;;  %v491_v61 = vld [vmem:[#allocation2 + $0x30] sm:$0xff] }
 0x118   : > { %838 = vst [vmem:[#allocation2 + $0x80] sm:$0xff] %v806_v62  ;;  %v499_v62 = vld [vmem:[#allocation2 + $0x8] sm:$0xff] }
 0x11b   : > { %v758_v3 = vpop.f32.mrf.mxu2  ;;  %v778_v4 = vpop.f32.mrf.mxu3 }
 0x11c   : > { %v814_v5 = vadd.f32 %v758_v3, %v501_v63  ;;  %v822_v6 = vadd.f32 %v778_v4, %v509_v0  ;;  %v720_v7 = vpop.f32.mrf.mxu0  ;;  %v740_v8 = vpop.f32.mrf.mxu1 }
 0x11d   : > { %v799_v9 = vadd.f32 %v720_v7, %v486_v1  ;;  %v807_v10 = vadd.f32 %v740_v8, %v494_v2  ;;  %v507_v7 = vld [vmem:[#allocation2 + $0x70] sm:$0xff]  ;;  %v515_v8 = vld [vmem:[#allocation2 + $0x20] sm:$0xff] }
 0x11e   : > { %846 = vst [vmem:[#allocation2 + $0x38] sm:$0xff] %v814_v5 }
 0x11f   : > { %854 = vst [vmem:[#allocation2 + $0xa8] sm:$0xff] %v822_v6 }
 0x120   : > { %831 = vst [vmem:[#allocation2] sm:$0xff] %v799_v9  ;;  %v492_v9 = vld [vmem:[#allocation2 + $0x48] sm:$0xff] }
 0x121   : > { %839 = vst [vmem:[#allocation2 + $0x88] sm:$0xff] %v807_v10  ;;  %v500_v10 = vld [vmem:[#allocation2 + $0x78] sm:$0xff] }
 0x123   : > { %v760_v15 = vpop.f32.mrf.mxu2  ;;  %v780_v16 = vpop.f32.mrf.mxu3 }
 0x124   : > { %v815_v17 = vadd.f32 %v760_v15, %v502_v11  ;;  %v823_v18 = vadd.f32 %v780_v16, %v510_v12  ;;  %v723_v19 = vpop.f32.mrf.mxu0  ;;  %v743_v20 = vpop.f32.mrf.mxu1 }
 0x125   : > { %v800_v21 = vadd.f32 %v723_v19, %v487_v13  ;;  %v808_v22 = vadd.f32 %v743_v20, %v495_v14  ;;  %v508_v19 = vld [vmem:[#allocation2 + $0xc0] sm:$0xff]  ;;  %v516_v20 = vld [vmem:[#allocation2 + $0x98] sm:$0xff] }
 0x126   : > { %847 = vst [vmem:[#allocation2 + $0x58] sm:$0xff] %v815_v17 }
 0x127   : > { %855 = vst [vmem:[#allocation2 + $0xd0] sm:$0xff] %v823_v18 }
 0x128   : > { %832 = vst [vmem:[#allocation2 + $0xd8] sm:$0xff] %v800_v21 }
 0x129   : > { %840 = vst [vmem:[#allocation2 + $0xe8] sm:$0xff] %v808_v22 }
 0x12b   : > { %v763_v27 = vpop.f32.mrf.mxu2  ;;  %v783_v28 = vpop.f32.mrf.mxu3 }
 0x12c   : > { %v816_v29 = vadd.f32 %v763_v27, %v503_v23  ;;  %v824_v30 = vadd.f32 %v783_v28, %v511_v24  ;;  %v725_v31 = vpop.f32.mrf.mxu0  ;;  %v745_v32 = vpop.f32.mrf.mxu1 }
 0x12d   : > { %v801_v33 = vadd.f32 %v725_v31, %v488_v25  ;;  %v809_v34 = vadd.f32 %v745_v32, %v496_v26 }
 0x12e   : > { %848 = vst [vmem:[#allocation2 + $0x40] sm:$0xff] %v816_v29 }
 0x12f   : > { %856 = vst [vmem:[#allocation2 + $0x10] sm:$0xff] %v824_v30 }
 0x130   : > { %833 = vst [vmem:[#allocation2 + $0x18] sm:$0xff] %v801_v33 }
 0x131   : > { %841 = vst [vmem:[#allocation2 + $0xb8] sm:$0xff] %v809_v34 }
 0x133   : > { %v765_v39 = vpop.f32.mrf.mxu2  ;;  %v785_v40 = vpop.f32.mrf.mxu3 }
 0x134   : > { %v817_v41 = vadd.f32 %v765_v39, %v504_v35  ;;  %v825_v42 = vadd.f32 %v785_v40, %v512_v36  ;;  %v728_v43 = vpop.f32.mrf.mxu0  ;;  %v748_v44 = vpop.f32.mrf.mxu1 }
 0x135   : > { %v802_v45 = vadd.f32 %v728_v43, %v489_v37  ;;  %v810_v46 = vadd.f32 %v748_v44, %v497_v38 }
 0x136   : > { %849 = vst [vmem:[#allocation2 + $0xc8] sm:$0xff] %v817_v41 }
 0x137   : > { %857 = vst [vmem:[#allocation2 + $0x28] sm:$0xff] %v825_v42 }
 0x138   : > { %834 = vst [vmem:[#allocation2 + $0x50] sm:$0xff] %v802_v45 }
 0x139   : > { %842 = vst [vmem:[#allocation2 + $0x60] sm:$0xff] %v810_v46 }
 0x13b   : > { %v768_v51 = vpop.f32.mrf.mxu2  ;;  %v788_v52 = vpop.f32.mrf.mxu3 }
 0x13c   : > { %v818_v53 = vadd.f32 %v768_v51, %v505_v47  ;;  %v826_v54 = vadd.f32 %v788_v52, %v513_v48  ;;  %v730_v55 = vpop.f32.mrf.mxu0  ;;  %v750_v56 = vpop.f32.mrf.mxu1 }
 0x13d   : > { %v803_v57 = vadd.f32 %v730_v55, %v490_v49  ;;  %v811_v58 = vadd.f32 %v750_v56, %v498_v50 }
 0x13e   : > { %850 = vst [vmem:[#allocation2 + $0xe0] sm:$0xff] %v818_v53 }
 0x13f   : > { %858 = vst [vmem:[#allocation2 + $0xa0] sm:$0xff] %v826_v54 }
 0x140   : > { %835 = vst [vmem:[#allocation2 + $0x68] sm:$0xff] %v803_v57 }
 0x141   : > { %843 = vst [vmem:[#allocation2 + $0xf0] sm:$0xff] %v811_v58 }
 0x143   : > { %v770_v63 = vpop.f32.mrf.mxu2  ;;  %v790_v0 = vpop.f32.mrf.mxu3 }
 0x144   : > { %v819_v1 = vadd.f32 %v770_v63, %v506_v59  ;;  %v827_v2 = vadd.f32 %v790_v0, %v514_v60  ;;  %v733_v3 = vpop.f32.mrf.mxu0  ;;  %v753_v4 = vpop.f32.mrf.mxu1 }
 0x145   : > { %v804_v5 = vadd.f32 %v733_v3, %v491_v61  ;;  %v812_v6 = vadd.f32 %v753_v4, %v499_v62 }
 0x146   : > { %851 = vst [vmem:[#allocation2 + $0x90] sm:$0xff] %v819_v1 }
 0x147   : > { %859 = vst [vmem:[#allocation2 + $0xf8] sm:$0xff] %v827_v2 }
 0x148   : > { %836 = vst [vmem:[#allocation2 + $0x30] sm:$0xff] %v804_v5 }
 0x149   : > { %844 = vst [vmem:[#allocation2 + $0x8] sm:$0xff] %v812_v6 }
 0x14b   : > { %v773_v11 = vpop.f32.mrf.mxu2  ;;  %v793_v12 = vpop.f32.mrf.mxu3 }
 0x14c   : > { %v820_v13 = vadd.f32 %v773_v11, %v507_v7  ;;  %v828_v14 = vadd.f32 %v793_v12, %v515_v8  ;;  %v735_v15 = vpop.f32.mrf.mxu0  ;;  %v755_v16 = vpop.f32.mrf.mxu1 }
 0x14d   : > { %v805_v17 = vadd.f32 %v735_v15, %v492_v9  ;;  %v813_v18 = vadd.f32 %v755_v16, %v500_v10 }
 0x14e   : > { %852 = vst [vmem:[#allocation2 + $0x70] sm:$0xff] %v820_v13 }
 0x14f   : > { %860 = vst [vmem:[#allocation2 + $0x20] sm:$0xff] %v828_v14 }
 0x150   : > { %837 = vst [vmem:[#allocation2 + $0x48] sm:$0xff] %v805_v17 }
 0x151   : > { %845 = vst [vmem:[#allocation2 + $0x78] sm:$0xff] %v813_v18 }
 0x153   : > { %v775_v21 = vpop.f32.mrf.mxu2  ;;  %v795_v22 = vpop.f32.mrf.mxu3  ;;  %865 = sbr.rel (%p1665_p3) target bundleno = 955 (0x3bb), region = 89 }
 0x154   : > { %v821_v23 = vadd.f32 %v775_v21, %v508_v19  ;;  %v829_v24 = vadd.f32 %v795_v22, %v516_v20 }
 0x156   : > { %853 = vst [vmem:[#allocation2 + $0xc0] sm:$0xff] %v821_v23 }
 0x157   : > { %861 = vst [vmem:[#allocation2 + $0x98] sm:$0xff] %v829_v24 }
 0x158   : > { %v902_v25 = vld [vmem:[%s2219_s20 + $0x20] sm:$0xff]  ;;  %v900_v26 = vld [vmem:[%s2219_s20 + $0x10] sm:$0xff]  ;;  %v2019_v28 = vmov 0   ;;  %v903_v29 = vld [vmem:[%s2219_s20 + $0x28] sm:$0xff] }
 0x159   : > { %v898_v27 = vld [vmem:[%s2219_s20] sm:$0xff]  ;;  %1833 = vset.pattern.permute.xlu2 %v2019_v28  ;;  %1832 = vset.pattern.permute.xlu1 %v2019_v28  ;;  %v901_v30 = vld [vmem:[%s2219_s20 + $0x18] sm:$0xff]  ;;  %v899_v31 = vld [vmem:[%s2219_s20 + $0x8] sm:$0xff] }
 0x15a   : > { %1831 = vset.pattern.permute.xlu0 %v2019_v28  ;;  %952 = vperm.xlu2 %1833, %v902_v25   ;;  %v916_v32 = vld [vmem:[%s2219_s20 + $0x90] sm:$0xff]  ;;  %v915_v33 = vld [vmem:[%s2219_s20 + $0x88] sm:$0xff]  ;;  %v914_v34 = vld [vmem:[%s2219_s20 + $0x80] sm:$0xff] }
 0x15b   : > { %942 = vperm.xlu1 %1832, %v900_v26   ;;  %932 = vperm.xlu0 %1831, %v898_v27   ;;  %v919_v35 = vld [vmem:[%s2219_s20 + $0xa8] sm:$0xff]  ;;  %v918_v36 = vld [vmem:[%s2219_s20 + $0xa0] sm:$0xff]  ;;  %v917_v37 = vld [vmem:[%s2219_s20 + $0x98] sm:$0xff] }
 0x15c   : > { %v905_v38 = vld [vmem:[%s2219_s20 + $0x38] sm:$0xff]  ;;  %v920_v39 = vld [vmem:[%s2219_s20 + $0xb0] sm:$0xff]  ;;  %v922_v41 = vld [vmem:[%s2219_s20 + $0xc0] sm:$0xff] }
 0x15d   : > { %v904_v40 = vld [vmem:[%s2219_s20 + $0x30] sm:$0xff]  ;;  %v906_v42 = vld [vmem:[%s2219_s20 + $0x40] sm:$0xff]  ;;  %v921_v43 = vld [vmem:[%s2219_s20 + $0xb8] sm:$0xff] }
 0x15e   : > { %v908_v44 = vld [vmem:[%s2219_s20 + $0x50] sm:$0xff]  ;;  %v923_v45 = vld [vmem:[%s2219_s20 + $0xc8] sm:$0xff]  ;;  %v925_v47 = vld [vmem:[%s2219_s20 + $0xd8] sm:$0xff] }
 0x15f   : > { %v907_v46 = vld [vmem:[%s2219_s20 + $0x48] sm:$0xff]  ;;  %v909_v48 = vld [vmem:[%s2219_s20 + $0x58] sm:$0xff]  ;;  %v924_v49 = vld [vmem:[%s2219_s20 + $0xd0] sm:$0xff] }
 0x160   : > { %v911_v50 = vld [vmem:[%s2219_s20 + $0x68] sm:$0xff]  ;;  %v926_v51 = vld [vmem:[%s2219_s20 + $0xe0] sm:$0xff]  ;;  %v928_v53 = vld [vmem:[%s2219_s20 + $0xf0] sm:$0xff] }
 0x161   : > { %v910_v52 = vld [vmem:[%s2219_s20 + $0x60] sm:$0xff]  ;;  %v912_v54 = vld [vmem:[%s2219_s20 + $0x70] sm:$0xff]  ;;  %v927_v55 = vld [vmem:[%s2219_s20 + $0xe8] sm:$0xff] }
 0x162   : > { %957 = vperm.xlu2 %1833, %v903_v29   ;;  %v929_v56 = vld [vmem:[%s2219_s20 + $0xf8] sm:$0xff]  ;;  %v1243_v58 = vld [vmem:[%s2392_s4 + $0x8] sm:$0xff]  ;;  %v1242_v59 = vld [vmem:[%s2392_s4] sm:$0xff] }
 0x163   : > { %947 = vperm.xlu1 %1832, %v901_v30   ;;  %937 = vperm.xlu0 %1831, %v899_v31   ;;  %v913_v57 = vld [vmem:[%s2219_s20 + $0x78] sm:$0xff]  ;;  %v1244_v61 = vld [vmem:[%s2392_s4 + $0x10] sm:$0xff]  ;;  %v1247_v62 = vld [vmem:[%s2392_s4 + $0x28] sm:$0xff] }
 0x164   : > { %v1245_v60 = vld [vmem:[%s2392_s4 + $0x18] sm:$0xff]  ;;  %v1246_v63 = vld [vmem:[%s2392_s4 + $0x20] sm:$0xff]  ;;  %v1248_v1 = vld [vmem:[%s2392_s4 + $0x30] sm:$0xff] }
 0x165   : > { %v1249_v0 = vld [vmem:[%s2392_s4 + $0x38] sm:$0xff]  ;;  %v866_v7 = vld [vmem:[#allocation2 + $0xb0] sm:$0xff]  ;;  %v867_v17 = vld [vmem:[#allocation2] sm:$0xff] }
 0x166   : > { %v882_v8 = vld [vmem:[#allocation2 + $0x38] sm:$0xff]  ;;  %v884_v22 = vld [vmem:[#allocation2 + $0x40] sm:$0xff] }
 0x167   : > { %v883_v14 = vld [vmem:[#allocation2 + $0x58] sm:$0xff] }
 0x168   : > { %v868_v23 = vld [vmem:[#allocation2 + $0xd8] sm:$0xff] }
 0x16a   : > { %1022 = vperm.xlu2 %1833, %v916_v32   ;;  %v885_v32 = vld [vmem:[#allocation2 + $0xc8] sm:$0xff] }
 0x16b   : > { %1017 = vperm.xlu1 %1832, %v915_v33   ;;  %1012 = vperm.xlu0 %1831, %v914_v34   ;;  %v869_v33 = vld [vmem:[#allocation2 + $0x18] sm:$0xff] }
 0x172   : > { %1037 = vperm.xlu2 %1833, %v919_v35  }
 0x173   : > { %1032 = vperm.xlu1 %1832, %v918_v36   ;;  %1027 = vperm.xlu0 %1831, %v917_v37  }
 0x17a   : > { %967 = vperm.xlu2 %1833, %v905_v38  }
 0x17b   : > { %1042 = vperm.xlu1 %1832, %v920_v39   ;;  %962 = vperm.xlu0 %1831, %v904_v40   ;;  %v886_v39 = vld [vmem:[#allocation2 + $0xe0] sm:$0xff] }
 0x182   : > { %1052 = vperm.xlu2 %1833, %v922_v41   ;;  %v870_v41 = vld [vmem:[#allocation2 + $0x50] sm:$0xff] }
 0x183   : > { %972 = vperm.xlu1 %1832, %v906_v42   ;;  %1047 = vperm.xlu0 %1831, %v921_v43  }
 0x18a   : > { %982 = vperm.xlu2 %1833, %v908_v44  }
 0x18b   : > { %1057 = vperm.xlu1 %1832, %v923_v45   ;;  %977 = vperm.xlu0 %1831, %v907_v46   ;;  %v871_v46 = vld [vmem:[#allocation2 + $0x68] sm:$0xff] }
 0x192   : > { %1067 = vperm.xlu2 %1833, %v925_v47   ;;  %v887_v47 = vld [vmem:[#allocation2 + $0x90] sm:$0xff] }
 0x193   : > { %987 = vperm.xlu1 %1832, %v909_v48   ;;  %1062 = vperm.xlu0 %1831, %v924_v49  }
 0x19a   : > { %997 = vperm.xlu2 %1833, %v911_v50  }
 0x19b   : > { %1072 = vperm.xlu1 %1832, %v926_v51   ;;  %992 = vperm.xlu0 %1831, %v910_v52  }
 0x1a2   : > { %1082 = vperm.xlu2 %1833, %v928_v53  }
 0x1a3   : > { %1002 = vperm.xlu1 %1832, %v912_v54   ;;  %1077 = vperm.xlu0 %1831, %v927_v55  }
 0x1ab   : > { %1087 = vperm.xlu1 %1832, %v929_v56   ;;  %1007 = vperm.xlu0 %1831, %v913_v57   ;;  %v888_v57 = vld [vmem:[#allocation2 + $0x70] sm:$0xff] }
 0x1b3   : > { %1257 = vperm.xlu1 %1832, %v1243_v58   ;;  %1252 = vperm.xlu0 %1831, %v1242_v59   ;;  %v872_v58 = vld [vmem:[#allocation2 + $0x30] sm:$0xff] }
 0x1b4   : > { %v953_v4 = vpop.permute.xlu2 %952 }
 0x1b5   : > { %v1094_v44 = vmul.f32 %v953_v4, %v870_v41 }
 0x1b7   : > { %v1126_v48 = vmax.f32 %v1094_v44, 0.0 }
 0x1bb   : > { %1267 = vperm.xlu1 %1832, %v1245_v60   ;;  %1262 = vperm.xlu0 %1831, %v1244_v61  }
 0x1bc   : > { %v958_v12 = vpop.permute.xlu2 %957 }
 0x1bd   : > { %v1095_v50 = vmul.f32 %v958_v12, %v871_v46  ;;  %v890_v12 = vld [vmem:[#allocation2 + $0xa8] sm:$0xff]  ;;  %v894_v46 = vld [vmem:[#allocation2 + $0xa0] sm:$0xff] }
 0x1bf   : > { %v1127_v54 = vmax.f32 %v1095_v50, 0.0 }
 0x1c3   : > { %1277 = vperm.xlu1 %1832, %v1247_v62   ;;  %1272 = vperm.xlu0 %1831, %v1246_v63  }
 0x1c4   : > { %v1023_v25 = vpop.permute.xlu2 %1022 }
 0x1c5   : > { %v1108_v26 = vmul.f32 %v1023_v25, %v884_v22 }
 0x1c7   : > { %v1140_v29 = vmax.f32 %v1108_v26, 0.0 }
 0x1cb   : > { %1287 = vperm.xlu1 %1832, %v1249_v0   ;;  %1282 = vperm.xlu0 %1831, %v1248_v1  }
 0x1cc   : > { %v1038_v49 = vpop.permute.xlu2 %1037 }
 0x1cd   : > { %v943_v2 = vpop.permute.xlu1 %942  ;;  %v933_v3 = vpop.permute.xlu0 %932  ;;  %v1111_v51 = vmul.f32 %v1038_v49, %v887_v47  ;;  %v878_v47 = vld [vmem:[#allocation2 + $0x60] sm:$0xff] }
 0x1ce   : > { %v1090_v9 = vmul.f32 %v933_v3, %v866_v7  ;;  %v1092_v27 = vmul.f32 %v943_v2, %v868_v23  ;;  %v889_v2 = vld [vmem:[#allocation2 + $0xc0] sm:$0xff]  ;;  %v873_v3 = vld [vmem:[#allocation2 + $0x48] sm:$0xff] }
 0x1cf   : > { %v1143_v55 = vmax.f32 %v1111_v51, 0.0 }
 0x1d0   : > { %v1122_v15 = vmax.f32 %v1090_v9, 0.0  ;;  %v1124_v30 = vmax.f32 %v1092_v27, 0.0  ;;  %v874_v9 = vld [vmem:[#allocation2 + $0x80] sm:$0xff] }
 0x1d1   : > { %v1844_v59 = vpack.i.bf16 %v1143_v55, %v1127_v54 }
 0x1d2   : > { %v1838_v34 = vpack.i.bf16 %v1140_v29, %v1124_v30  ;;  %v892_v29 = vld [vmem:[#allocation2 + $0x10] sm:$0xff]  ;;  %v876_v30 = vld [vmem:[#allocation2 + $0xe8] sm:$0xff] }
 0x1d4   : > { %v968_v0 = vpop.permute.xlu2 %967 }
 0x1d5   : > { %v948_v5 = vpop.permute.xlu1 %947  ;;  %v938_v6 = vpop.permute.xlu0 %937 }
 0x1d6   : > { %v1091_v20 = vmul.f32 %v938_v6, %v867_v17  ;;  %v1093_v36 = vmul.f32 %v948_v5, %v869_v33  ;;  %v1097_v6 = vmul.f32 %v968_v0, %v873_v3 }
 0x1d8   : > { %v1123_v24 = vmax.f32 %v1091_v20, 0.0  ;;  %v1125_v40 = vmax.f32 %v1093_v36, 0.0  ;;  %v875_v20 = vld [vmem:[#allocation2 + $0x88] sm:$0xff]  ;;  %v877_v36 = vld [vmem:[#allocation2 + $0xb8] sm:$0xff] }
 0x1dd   : > { %v1013_v10 = vpop.permute.xlu0 %1012  ;;  %v1018_v13 = vpop.permute.xlu1 %1017 }
 0x1de   : > { %v1106_v11 = vmul.f32 %v1013_v10, %v882_v8  ;;  %v1107_v18 = vmul.f32 %v1018_v13, %v883_v14  ;;  %v1129_v10 = vmax.f32 %v1097_v6, 0.0 }
 0x1e0   : > { %v1138_v16 = vmax.f32 %v1106_v11, 0.0  ;;  %v1139_v21 = vmax.f32 %v1107_v18, 0.0  ;;  %v1053_v11 = vpop.permute.xlu2 %1052 }
 0x1e2   : > { %v1834_v19 = vpack.i.bf16 %v1138_v16, %v1122_v15  ;;  %v1836_v28 = vpack.i.bf16 %v1139_v21, %v1123_v24  ;;  %v1114_v15 = vmul.f32 %v1053_v11, %v890_v12 }
 0x1e4   : > { %1835 = vxpose.xlu2.b32.start [1/16] %v1834_v19, 128  ;;  %v891_v19 = vld [vmem:[#allocation2 + $0xd0] sm:$0xff]  ;;  %v1146_v21 = vmax.f32 %v1114_v15, 0.0 }
 0x1e5   : > { %v1028_v31 = vpop.permute.xlu0 %1027  ;;  %v1033_v38 = vpop.permute.xlu1 %1032 }
 0x1e6   : > { %v1109_v35 = vmul.f32 %v1028_v31, %v885_v32  ;;  %v1110_v42 = vmul.f32 %v1033_v38, %v886_v39  ;;  %v893_v39 = vld [vmem:[#allocation2 + $0x28] sm:$0xff] }
 0x1e8   : > { %v1141_v37 = vmax.f32 %v1109_v35, 0.0  ;;  %v1142_v45 = vmax.f32 %v1110_v42, 0.0  ;;  %v983_v27 = vpop.permute.xlu2 %982 }
 0x1e9   : > { %v1100_v33 = vmul.f32 %v983_v27, %v876_v30 }
 0x1ea   : > { %v1840_v43 = vpack.i.bf16 %v1141_v37, %v1125_v40  ;;  %v1842_v52 = vpack.i.bf16 %v1142_v45, %v1126_v48 }
 0x1eb   : > { %v1132_v37 = vmax.f32 %v1100_v33, 0.0 }
 0x1ec   : > { %1837 = vxpose.xlu2.b32.cont [2/16] %v1836_v28, 128 }
 0x1ed   : > { %v963_v53 = vpop.permute.xlu0 %962  ;;  %v1043_v56 = vpop.permute.xlu1 %1042 }
 0x1ee   : > { %v1112_v60 = vmul.f32 %v1043_v56, %v888_v57  ;;  %v1096_v61 = vmul.f32 %v963_v53, %v872_v58  ;;  %v895_v56 = vld [vmem:[#allocation2 + $0xf8] sm:$0xff]  ;;  %v879_v57 = vld [vmem:[#allocation2 + $0xf0] sm:$0xff] }
 0x1f0   : > { %v1144_v62 = vmax.f32 %v1112_v60, 0.0  ;;  %v1128_v63 = vmax.f32 %v1096_v61, 0.0  ;;  %v1068_v38 = vpop.permute.xlu2 %1067 }
 0x1f1   : > { %v1117_v42 = vmul.f32 %v1068_v38, %v893_v39 }
 0x1f2   : > { %v1846_v4 = vpack.i.bf16 %v1144_v62, %v1128_v63  ;;  %v880_v63 = vld [vmem:[#allocation2 + $0x8] sm:$0xff] }
 0x1f3   : > { %v1149_v48 = vmax.f32 %v1117_v42, 0.0 }
 0x1f4   : > { %1839 = vxpose.xlu2.b32.cont [3/16] %v1838_v34, 128 }
 0x1f5   : > { %v1048_v1 = vpop.permute.xlu0 %1047  ;;  %v973_v7 = vpop.permute.xlu1 %972 }
 0x1f6   : > { %v1113_v5 = vmul.f32 %v1048_v1, %v889_v2  ;;  %v1098_v13 = vmul.f32 %v973_v7, %v874_v9  ;;  %v896_v2 = vld [vmem:[#allocation2 + $0x20] sm:$0xff] }
 0x1f8   : > { %v1145_v8 = vmax.f32 %v1113_v5, 0.0  ;;  %v1130_v17 = vmax.f32 %v1098_v13, 0.0  ;;  %v998_v54 = vpop.permute.xlu2 %997 }
 0x1f9   : > { %v1103_v60 = vmul.f32 %v998_v54, %v879_v57 }
 0x1fa   : > { %v1848_v14 = vpack.i.bf16 %v1145_v8, %v1129_v10  ;;  %v1850_v22 = vpack.i.bf16 %v1146_v21, %v1130_v17  ;;  %v897_v8 = vld [vmem:[#allocation2 + $0x98] sm:$0xff] }
 0x1fb   : > { %v1135_v0 = vmax.f32 %v1103_v60, 0.0  ;;  %v881_v10 = vld [vmem:[#allocation2 + $0x78] sm:$0xff] }
 0x1fc   : > { %1841 = vxpose.xlu2.b32.cont [4/16] %v1840_v43, 128 }
 0x1fd   : > { %v978_v16 = vpop.permute.xlu0 %977  ;;  %v1058_v18 = vpop.permute.xlu1 %1057 }
 0x1fe   : > { %v1115_v23 = vmul.f32 %v1058_v18, %v891_v19  ;;  %v1099_v24 = vmul.f32 %v978_v16, %v875_v20 }
 0x200   : > { %v1147_v25 = vmax.f32 %v1115_v23, 0.0  ;;  %v1131_v26 = vmax.f32 %v1099_v24, 0.0  ;;  %v1083_v1 = vpop.permute.xlu2 %1082 }
 0x201   : > { %v1120_v5 = vmul.f32 %v1083_v1, %v896_v2 }
 0x202   : > { %v1852_v31 = vpack.i.bf16 %v1147_v25, %v1131_v26 }
 0x203   : > { %v1152_v11 = vmax.f32 %v1120_v5, 0.0 }
 0x204   : > { %1843 = vxpose.xlu2.b32.cont [5/16] %v1842_v52, 128 }
 0x205   : > { %v1063_v28 = vpop.permute.xlu0 %1062  ;;  %v988_v34 = vpop.permute.xlu1 %987 }
 0x206   : > { %v1116_v32 = vmul.f32 %v1063_v28, %v892_v29  ;;  %v1101_v40 = vmul.f32 %v988_v34, %v877_v36 }
 0x208   : > { %v1148_v35 = vmax.f32 %v1116_v32, 0.0  ;;  %v1133_v44 = vmax.f32 %v1101_v40, 0.0 }
 0x20a   : > { %v1854_v41 = vpack.i.bf16 %v1148_v35, %v1132_v37  ;;  %v1856_v49 = vpack.i.bf16 %v1149_v48, %v1133_v44 }
 0x20c   : > { %1845 = vxpose.xlu2.b32.cont [6/16] %v1844_v59, 128 }
 0x20d   : > { %v993_v43 = vpop.permute.xlu0 %992  ;;  %v1073_v45 = vpop.permute.xlu1 %1072 }
 0x20e   : > { %v1118_v50 = vmul.f32 %v1073_v45, %v894_v46  ;;  %v1102_v51 = vmul.f32 %v993_v43, %v878_v47 }
 0x210   : > { %v1150_v52 = vmax.f32 %v1118_v50, 0.0  ;;  %v1134_v53 = vmax.f32 %v1102_v51, 0.0 }
 0x212   : > { %v1858_v58 = vpack.i.bf16 %v1150_v52, %v1134_v53 }
 0x214   : > { %1847 = vxpose.xlu2.b32.cont [7/16] %v1846_v4, 128 }
 0x215   : > { %v1078_v55 = vpop.permute.xlu0 %1077  ;;  %v1003_v61 = vpop.permute.xlu1 %1002 }
 0x216   : > { %v1119_v59 = vmul.f32 %v1078_v55, %v895_v56  ;;  %v1104_v3 = vmul.f32 %v1003_v61, %v880_v63 }
 0x218   : > { %v1151_v62 = vmax.f32 %v1119_v59, 0.0  ;;  %v1136_v6 = vmax.f32 %v1104_v3, 0.0 }
 0x21a   : > { %v1860_v4 = vpack.i.bf16 %v1151_v62, %v1135_v0  ;;  %v1862_v12 = vpack.i.bf16 %v1152_v11, %v1136_v6 }
 0x21c   : > { %1849 = vxpose.xlu2.b32.cont [8/16] %v1848_v14, 128 }
 0x21d   : > { %v1088_v7 = vpop.permute.xlu1 %1087  ;;  %v1008_v9 = vpop.permute.xlu0 %1007 }
 0x21e   : > { %v1121_v13 = vmul.f32 %v1088_v7, %v897_v8  ;;  %v1105_v14 = vmul.f32 %v1008_v9, %v881_v10 }
 0x220   : > { %v1153_v15 = vmax.f32 %v1121_v13, 0.0  ;;  %v1137_v16 = vmax.f32 %v1105_v14, 0.0 }
 0x222   : > { %v1864_v17 = vpack.i.bf16 %v1153_v15, %v1137_v16 }
 0x224   : > { %1851 = vxpose.xlu2.b32.cont [9/16] %v1850_v22, 128 }
 0x22c   : > { %1853 = vxpose.xlu2.b32.cont [10/16] %v1852_v31, 128 }
 0x234   : > { %1855 = vxpose.xlu2.b32.cont [11/16] %v1854_v41, 128 }
 0x23c   : > { %1857 = vxpose.xlu2.b32.cont [12/16] %v1856_v49, 128 }
 0x244   : > { %1859 = vxpose.xlu2.b32.cont [13/16] %v1858_v58, 128 }
 0x24c   : > { %1861 = vxpose.xlu2.b32.cont [14/16] %v1860_v4, 128 }
 0x254   : > { %1863 = vxpose.xlu2.b32.cont [15/16] %v1862_v12, 128 }
 0x25c   : > { %1865 = vxpose.xlu2.b32.end [16/16] %v1864_v17, 128 }
 0x27d   : > { %v1866_v18 = vpop.trf.xlu2 }
 0x27e   : > { %v1867_v20 = vunpack.i.l.bf16 %v1866_v18  ;;  %v1870_v21 = vunpack.i.h.bf16 %v1866_v18  ;;  %v1712_v18 = vld [vmem:[%s2391_s3] sm:$0xff] }
 0x285   : > { %v1871_v19 = vpop.trf.xlu2 }
 0x286   : > { %v1872_v22 = vunpack.i.l.bf16 %v1871_v19  ;;  %v1875_v23 = vunpack.i.h.bf16 %v1871_v19  ;;  %v1714_v19 = vld [vmem:[%s2391_s3 + $0x10] sm:$0xff] }
 0x288   : > { %v2307_v24 = vpack.c.bf16 %v1872_v22, %v1867_v20  ;;  %v2309_v25 = vpack.c.bf16 %v1875_v23, %v1870_v21  ;;  %v1713_v20 = vld [vmem:[%s2391_s3 + $0x8] sm:$0xff]  ;;  %v1715_v21 = vld [vmem:[%s2391_s3 + $0x18] sm:$0xff]  ;;  %v1253_v22 = vpop.permute.xlu0 %1252  ;;  %v1258_v23 = vpop.permute.xlu1 %1257 }
 0x28d   : > { %v1876_v26 = vpop.trf.xlu2 }
 0x28e   : > { %v1877_v28 = vunpack.i.l.bf16 %v1876_v26  ;;  %v1880_v29 = vunpack.i.h.bf16 %v1876_v26 }
 0x295   : > { %v1881_v27 = vpop.trf.xlu2 }
 0x296   : > { %v1882_v30 = vunpack.i.l.bf16 %v1881_v27  ;;  %v1885_v31 = vunpack.i.h.bf16 %v1881_v27 }
 0x298   : > { %v2311_v32 = vpack.c.bf16 %v1882_v30, %v1877_v28  ;;  %v2313_v33 = vpack.c.bf16 %v1885_v31, %v1880_v29  ;;  %v1268_v29 = vpop.permute.xlu1 %1267 }
 0x29d   : > { %v1886_v34 = vpop.trf.xlu2 }
 0x29e   : > { %v1887_v36 = vunpack.i.l.bf16 %v1886_v34  ;;  %v1890_v37 = vunpack.i.h.bf16 %v1886_v34 }
 0x2a5   : > { %v1891_v35 = vpop.trf.xlu2 }
 0x2a6   : > { %v1892_v38 = vunpack.i.l.bf16 %v1891_v35  ;;  %v1895_v39 = vunpack.i.h.bf16 %v1891_v35 }
 0x2a8   : > { %v1222_v40 = vpack.c.bf16 %v1892_v38, %v1887_v36  ;;  %v2315_v41 = vpack.c.bf16 %v1895_v39, %v1890_v37 }
 0x2ad   : > { %v1896_v42 = vpop.trf.xlu2 }
 0x2ae   : > { %v1897_v44 = vunpack.i.l.bf16 %v1896_v42  ;;  %v1900_v45 = vunpack.i.h.bf16 %v1896_v42  ;;  %v1278_v42 = vpop.permute.xlu1 %1277 }
 0x2b5   : > { %v1901_v43 = vpop.trf.xlu2 }
 0x2b6   : > { %v1902_v46 = vunpack.i.l.bf16 %v1901_v43  ;;  %v1905_v47 = vunpack.i.h.bf16 %v1901_v43 }
 0x2b8   : > { %v1224_v48 = vpack.c.bf16 %v1902_v46, %v1897_v44  ;;  %v1225_v49 = vpack.c.bf16 %v1905_v47, %v1900_v45 }
 0x2bd   : > { %v1906_v50 = vpop.trf.xlu2 }
 0x2be   : > { %v1907_v14 = vunpack.i.l.bf16 %v1906_v50  ;;  %v1910_v15 = vunpack.i.h.bf16 %v1906_v50 }
 0x2c5   : > { %v1911_v51 = vpop.trf.xlu2 }
 0x2c6   : > { %v1912_v11 = vunpack.i.l.bf16 %v1911_v51  ;;  %v1915_v13 = vunpack.i.h.bf16 %v1911_v51 }
 0x2c8   : > { %v1226_v16 = vpack.c.bf16 %v1912_v11, %v1907_v14  ;;  %v1227_v17 = vpack.c.bf16 %v1915_v13, %v1910_v15 }
 0x2cd   : > { %v1916_v52 = vpop.trf.xlu2 }
 0x2ce   : > { %v1917_v8 = vunpack.i.l.bf16 %v1916_v52  ;;  %v1920_v9 = vunpack.i.h.bf16 %v1916_v52 }
 0x2d5   : > { %v1921_v53 = vpop.trf.xlu2 }
 0x2d6   : > { %v1922_v5 = vunpack.i.l.bf16 %v1921_v53  ;;  %v1925_v7 = vunpack.i.h.bf16 %v1921_v53 }
 0x2d8   : > { %v1228_v10 = vpack.c.bf16 %v1922_v5, %v1917_v8  ;;  %v1229_v12 = vpack.c.bf16 %v1925_v7, %v1920_v9 }
 0x2dd   : > { %v1926_v54 = vpop.trf.xlu2 }
 0x2de   : > { %v1927_v2 = vunpack.i.l.bf16 %v1926_v54  ;;  %v1930_v3 = vunpack.i.h.bf16 %v1926_v54 }
 0x2e5   : > { %v1931_v55 = vpop.trf.xlu2 }
 0x2e6   : > { %v1932_v0 = vunpack.i.l.bf16 %v1931_v55  ;;  %v1935_v1 = vunpack.i.h.bf16 %v1931_v55 }
 0x2e8   : > { %v1230_v4 = vpack.c.bf16 %v1932_v0, %v1927_v2  ;;  %v1231_v6 = vpack.c.bf16 %v1935_v1, %v1930_v3  ;;  %v1288_v0 = vpop.permute.xlu1 %1287 }
 0x2ed   : > { %v1936_v56 = vpop.trf.xlu2 }
 0x2ee   : > { %v1937_v58 = vunpack.i.l.bf16 %v1936_v56  ;;  %v1940_v59 = vunpack.i.h.bf16 %v1936_v56 }
 0x2f5   : > { %v1941_v57 = vpop.trf.xlu2 }
 0x2f6   : > { %v1942_v60 = vunpack.i.l.bf16 %v1941_v57  ;;  %v1945_v61 = vunpack.i.h.bf16 %v1941_v57 }
 0x2f8   : > { %v1232_v62 = vpack.c.bf16 %v1942_v60, %v1937_v58  ;;  %v1233_v63 = vpack.c.bf16 %v1945_v61, %v1940_v59 }
 0x2fa   : > { %1314 = vmatpush.bf16.msra.mxu0 %v1232_v62  ;;  %1741 = vmatpush.bf16.msra.mxu2 %v1232_v62 }
 0x2fb   : > { %1343 = vmatpush.bf16.msra.mxu1 %v1233_v63  ;;  %1749 = vmatpush.bf16.msra.mxu3 %v1233_v63 }
 0x2fe   : > { %1315 = vmatpush.bf16.msra.mxu0 %v1230_v4  ;;  %1742 = vmatpush.bf16.msra.mxu2 %v1230_v4 }
 0x2ff   : > { %1344 = vmatpush.bf16.msra.mxu1 %v1231_v6  ;;  %1750 = vmatpush.bf16.msra.mxu3 %v1231_v6 }
 0x302   : > { %1316 = vmatpush.bf16.msra.mxu0 %v1228_v10  ;;  %1743 = vmatpush.bf16.msra.mxu2 %v1228_v10 }
 0x303   : > { %1345 = vmatpush.bf16.msra.mxu1 %v1229_v12  ;;  %1751 = vmatpush.bf16.msra.mxu3 %v1229_v12 }
 0x306   : > { %1317 = vmatpush.bf16.msra.mxu0 %v1226_v16  ;;  %1744 = vmatpush.bf16.msra.mxu2 %v1226_v16 }
 0x307   : > { %1346 = vmatpush.bf16.msra.mxu1 %v1227_v17  ;;  %1752 = vmatpush.bf16.msra.mxu3 %v1227_v17 }
 0x30a   : > { %1318 = vmatpush.bf16.msra.mxu0 %v1224_v48  ;;  %1745 = vmatpush.bf16.msra.mxu2 %v1224_v48 }
 0x30b   : > { %1347 = vmatpush.bf16.msra.mxu1 %v1225_v49  ;;  %1753 = vmatpush.bf16.msra.mxu3 %v1225_v49 }
 0x30e   : > { %1319 = vmatpush.bf16.msra.mxu0 %v1222_v40  ;;  %1746 = vmatpush.bf16.msra.mxu2 %v1222_v40 }
 0x30f   : > { %1348 = vmatpush.bf16.msra.mxu1 %v2315_v41  ;;  %1754 = vmatpush.bf16.msra.mxu3 %v2315_v41 }
 0x312   : > { %1320 = vmatpush.bf16.msra.mxu0 %v2311_v32  ;;  %1747 = vmatpush.bf16.msra.mxu2 %v2311_v32 }
 0x313   : > { %1349 = vmatpush.bf16.msra.mxu1 %v2313_v33  ;;  %1755 = vmatpush.bf16.msra.mxu3 %v2313_v33 }
 0x316   : > { %1321 = vmatpush.bf16.msra.mxu0 %v2307_v24  ;;  %1748 = vmatpush.bf16.msra.mxu2 %v2307_v24  ;;  %v1263_v24 = vpop.permute.xlu0 %1262 }
 0x317   : > { %1350 = vmatpush.bf16.msra.mxu1 %v2309_v25  ;;  %1756 = vmatpush.bf16.msra.mxu3 %v2309_v25 }
 0x319   : > { %1322 = vmatmul.bf16.vlgmr.msra.gmra.mxu0 %v1712_v18  ;;  %1332 = vmatmul.bf16.vlgmr.msra.gmra.mxu2 %v1714_v19 }
 0x31a   : > { %1351 = vmatmul.bf16.vlgmr.msra.gmra.mxu1 %v1712_v18  ;;  %1361 = vmatmul.bf16.vlgmr.msra.gmra.mxu3 %v1714_v19 }
 0x31e   : > { %v1273_v31 = vpop.permute.xlu0 %1272 }
 0x326   : > { %v1283_v53 = vpop.permute.xlu0 %1282 }
 0x329   : > { %1327 = vmatmul.bf16.gmra.mxu0 %v1713_v20  ;;  %1337 = vmatmul.bf16.gmra.mxu2 %v1715_v21 }
 0x32a   : > { %1356 = vmatmul.bf16.gmra.mxu1 %v1713_v20  ;;  %1366 = vmatmul.bf16.gmra.mxu3 %v1715_v21 }
 0x396   : > { %v1323_v25 = vpop.f32.mrf.mxu0 }
 0x397   : > { %v1324_v26 = vadd.f32 %v1323_v25, %v1253_v22  ;;  %v1352_v27 = vpop.f32.mrf.mxu1 }
 0x398   : > { %v1353_v28 = vadd.f32 %v1352_v27, %v1253_v22 }
 0x39a   : > { %v1372_v30 = vpack.c.bf16 %v1353_v28, %v1324_v26 }
 0x39c   : > { %1380 = vst [vmem:[%s2223_s7] sm:$0xff] %v1372_v30  ;;  %v1333_v32 = vpop.f32.mrf.mxu2 }
 0x39d   : > { %v1334_v33 = vadd.f32 %v1333_v32, %v1273_v31  ;;  %v1362_v34 = vpop.f32.mrf.mxu3 }
 0x39e   : > { %v1363_v35 = vadd.f32 %v1362_v34, %v1273_v31  ;;  %v1325_v36 = vpop.f32.mrf.mxu0 }
 0x39f   : > { %v1326_v37 = vadd.f32 %v1325_v36, %v1258_v23  ;;  %v1354_v38 = vpop.f32.mrf.mxu1 }
 0x3a0   : > { %v1376_v39 = vpack.c.bf16 %v1363_v35, %v1334_v33  ;;  %v1355_v40 = vadd.f32 %v1354_v38, %v1258_v23 }
 0x3a2   : > { %1384 = vst [vmem:[%s2223_s7 + $0x20] sm:$0xff] %v1376_v39  ;;  %v1373_v41 = vpack.c.bf16 %v1355_v40, %v1326_v37 }
 0x3a4   : > { %1381 = vst [vmem:[%s2223_s7 + $0x8] sm:$0xff] %v1373_v41  ;;  %v1335_v43 = vpop.f32.mrf.mxu2 }
 0x3a5   : > { %v1336_v44 = vadd.f32 %v1335_v43, %v1278_v42  ;;  %v1364_v45 = vpop.f32.mrf.mxu3 }
 0x3a6   : > { %v1365_v46 = vadd.f32 %v1364_v45, %v1278_v42  ;;  %v1328_v47 = vpop.f32.mrf.mxu0 }
 0x3a7   : > { %v1329_v48 = vadd.f32 %v1328_v47, %v1263_v24  ;;  %v1357_v49 = vpop.f32.mrf.mxu1 }
 0x3a8   : > { %v1377_v50 = vpack.c.bf16 %v1365_v46, %v1336_v44  ;;  %v1358_v51 = vadd.f32 %v1357_v49, %v1263_v24 }
 0x3aa   : > { %1385 = vst [vmem:[%s2223_s7 + $0x28] sm:$0xff] %v1377_v50  ;;  %v1374_v52 = vpack.c.bf16 %v1358_v51, %v1329_v48 }
 0x3ac   : > { %1382 = vst [vmem:[%s2223_s7 + $0x10] sm:$0xff] %v1374_v52  ;;  %v1338_v54 = vpop.f32.mrf.mxu2 }
 0x3ad   : > { %v1339_v55 = vadd.f32 %v1338_v54, %v1283_v53  ;;  %v1367_v56 = vpop.f32.mrf.mxu3 }
 0x3ae   : > { %v1368_v57 = vadd.f32 %v1367_v56, %v1283_v53  ;;  %v1330_v58 = vpop.f32.mrf.mxu0 }
 0x3af   : > { %v1331_v59 = vadd.f32 %v1330_v58, %v1268_v29  ;;  %v1359_v60 = vpop.f32.mrf.mxu1 }
 0x3b0   : > { %v1378_v61 = vpack.c.bf16 %v1368_v57, %v1339_v55  ;;  %v1360_v62 = vadd.f32 %v1359_v60, %v1268_v29 }
 0x3b2   : > { %1386 = vst [vmem:[%s2223_s7 + $0x30] sm:$0xff] %v1378_v61  ;;  %v1375_v63 = vpack.c.bf16 %v1360_v62, %v1331_v59 }
 0x3b4   : > { %1383 = vst [vmem:[%s2223_s7 + $0x18] sm:$0xff] %v1375_v63  ;;  %v1340_v1 = vpop.f32.mrf.mxu2 }
 0x3b5   : > { %v1341_v2 = vadd.f32 %v1340_v1, %v1288_v0  ;;  %v1369_v3 = vpop.f32.mrf.mxu3 }
 0x3b6   : > { %v1370_v4 = vadd.f32 %v1369_v3, %v1288_v0 }
 0x3b8   : > { %v1379_v5 = vpack.c.bf16 %v1370_v4, %v1341_v2 }
 0x3ba   : > { %1387 = vst [vmem:[%s2223_s7 + $0x38] sm:$0xff] %v1379_v5 }
 0x3bb PF: > { %1394 = sbr.rel (!%p2118_p9) target bundleno = 965 (0x3c5), region = 93  ;;  %s1716_s30 = sshll.u32 (%p2118_p9), %s2004_s23, 3  ;;  %v1440_v6 = vld [vmem:[%s2223_s7] sm:$0xff] (%p2118_p9)  ;;  %v1442_v7 = vld [vmem:[%s2223_s7 + $0x8] sm:$0xff] (%p2118_p9)  ;;  %v1444_v8 = vld [vmem:[%s2223_s7 + $0x10] sm:$0xff] (%p2118_p9) }
 0x3bc   : > { %s1397_s6 = scalar_lea.vmem (%p2118_p9), %s2393_s5, %s1716_s30  ;;  %v1446_v9 = vld [vmem:[%s2223_s7 + $0x18] sm:$0xff] (%p2118_p9)  ;;  %v1448_v10 = vld [vmem:[%s2223_s7 + $0x20] sm:$0xff] (%p2118_p9)  ;;  %v1450_v11 = vld [vmem:[%s2223_s7 + $0x28] sm:$0xff] (%p2118_p9) }
 0x3bd   : > { %1441 = vst [vmem:[%s1397_s6] sm:$0xff] (%p2118_p9), %v1440_v6  ;;  %v1452_v12 = vld [vmem:[%s2223_s7 + $0x30] sm:$0xff] (%p2118_p9) }
 0x3be   : > { %1443 = vst [vmem:[%s1397_s6 + $0x10] sm:$0xff] (%p2118_p9), %v1442_v7 }
 0x3bf   : > { %1445 = vst [vmem:[%s1397_s6 + $0x20] sm:$0xff] (%p2118_p9), %v1444_v8 }
 0x3c0   : > { %1447 = vst [vmem:[%s1397_s6 + $0x30] sm:$0xff] %v1446_v9 }
 0x3c1   : > { %1449 = vst [vmem:[%s1397_s6 + $0x40] sm:$0xff] %v1448_v10  ;;  %v1454_v13 = vld [vmem:[%s2223_s7 + $0x38] sm:$0xff] }
 0x3c2   : > { %1451 = vst [vmem:[%s1397_s6 + $0x50] sm:$0xff] %v1450_v11 }
 0x3c3   : > { %1453 = vst [vmem:[%s1397_s6 + $0x60] sm:$0xff] %v1452_v12 }
 0x3c4   : > { %1455 = vst [vmem:[%s1397_s6 + $0x70] sm:$0xff] %v1454_v13 }
 0x3c5 PF: > { %s15_s26 = sadd.s32 1, %s2016_s26   ;;  %s2400_s11 = sld [smem:[#allocation5_spill]] }
 0x3c6   : > { %p12_p4 = scmp.ge.s32.totalorder %s15_s26, 6   ;;  %s2401_s18 = smov %s1988_s19 }
 0x3c7   : > { %s2402_s19 = smov %s2123_s12  ;;  %s2403_s20 = smov %s1996_s21 }
 0x3c8   : > { %s2404_s21 = smov %s2126_s13  ;;  %s2405_s22 = smov %s2008_s24 }
 0x3c9   : > { %s2406_s23 = smov %s2012_s25  ;;  %s2407_s24 = smov %s2410_s27 }
 0x3ca   :  { %14 = sbr.rel (!%p12_p4) target bundleno = 7 (0x7), region = 168 }
 0x3cb   : > { %s2408_s25 = smov %s2400_s11 }

// kernel: cnf_encoder_forward.10
= control target key start
LH: loop header
LB: loop body
LE: loop exit
PB: predicated region body
PF: predicated region fallthrough
CT: control target
= control target key end

     0   :  { %s2636_s0 = inlined_call_operand.vmem [shape: bf16[512,256], index: 0, kind: input, shape index: {}]   ;;  %s2637_s1 = inlined_call_operand.vmem [shape: bf16[256,128], index: 1, kind: input, shape index: {}]   ;;  %s2638_s2 = inlined_call_operand.vmem [shape: f32[512,1], index: 2, kind: input, shape index: {}]   ;;  %s2639_s3 = inlined_call_operand.vmem [shape: bf16[64,128], index: 3, kind: input, shape index: {}]   ;;  %s2640_s4 = inlined_call_operand.vmem [shape: f32[64,1], index: 4, kind: input, shape index: {}]   ;;  %s2641_s5 = inlined_call_operand.vmem [shape: f32[512,128], index: 5, kind: output, shape index: {0}]   ;;  %s2642_s6 = inlined_call_operand.vmem [shape: bf16[64,512], index: 6, kind: output, shape index: {1}]  }
   0x1   :  { %2647 = sst [smem:[#allocation9_spill]] %s2636_s0 }
   0x2   :  { %s2164_s21 = smov 0   ;;  %s2166_s22 = smov 0  }
   0x3   :  { %s2168_s23 = smov 0   ;;  %s2170_s24 = smov 0  }
   0x4   :  { %s2172_s25 = smov 0   ;;  %s2174_s26 = smov 0  }
   0x5   :  { %s2176_s27 = smov 0   ;;  %s2178_s28 = smov 0  }
   0x6   :  { %s2180_s29 = smov 0  }
   0x7 LB: > { %2648 = sst [smem:[#allocation5_spill]] %s2117_s27  ;;  %s26_s30 = sadd.s32 1, %s2117_s27  ;;  %s2125_s29 = sphi %s2180_s29, %s17_s29   ;;  %s2121_s28 = sphi %s2178_s28, %s2658_s28   ;;  %s2117_s27 = sphi %s2176_s27, %s2657_s27   ;;  %s2113_s26 = sphi %s2174_s26, %s2656_s26   ;;  %s2109_s25 = sphi %s2172_s25, %s2655_s25   ;;  %s2105_s24 = sphi %s2170_s24, %s2662_s24   ;;  %s2101_s23 = sphi %s2168_s23, %s2661_s23   ;;  %s2097_s22 = sphi %s2166_s22, %s2660_s22   ;;  %s2093_s21 = sphi %s2164_s21, %s2659_s21  }
   0x8   : > { %2649 = sst [smem:[#allocation6_spill]] %s2121_s28  ;;  %p27_p0 = scmp.ge.s32.totalorder %s26_s30, 2 }
   0x9   : > { %s29_s7 = sadd.s32 1, %s2121_s28  ;;  %p45_p1 = scmp.ne.s32.totalorder %s2105_s24, %s2101_s23 }
   0xa   : > { %s2664_s30 = smov (%p27_p0, %s26_s30), 0  ;;  %s2666_s7 = smov (!%p27_p0, %s29_s7), %s2121_s28 }
   0xb   : > { %2650 = sst [smem:[#allocation7_spill]] %s2664_s30  ;;  %s1660_s8 = sadd.s32 4294967295, %s2125_s29  }
   0xc   : > { %p46_p2 = scmp.eq.s32.totalorder %s2125_s29, 0  ;;  %p31_p3 = scmp.ge.s32.totalorder %s2666_s7, 2 }
   0xd   : > { %s34_s9 = ssub.s32 %s2117_s27, %s2664_s30  ;;  %p194_p5 = scmp.ne.s32.totalorder %s2097_s22, %s2093_s21 }
   0xe   : > { %p2220_p4 = por %p46_p2, %p45_p1  ;;  %s2668_s7 = smov (%p31_p3, %s2666_s7), 0 }
   0xf   : > { %2652 = sst [smem:[#allocation8_spill]] %s2668_s7  ;;  %s38_s11 = sadd.s32 1, %s2105_s24 }
  0x10   : > { %p195_p6 = scmp.eq.s32.totalorder %s1660_s8, 3  ;;  %s33_s12 = ssub.s32 %s2121_s28, %s2668_s7 }
  0x11   : > { %s184_s13 = sadd.s32 1, %s2097_s22  ;;  %s35_s14 = sor.u32 %s34_s9, %s33_s12 }
  0x12   : > { %p182_p7 = scmp.eq.s32.totalorder %s33_s12, 0  ;;  %p36_p8 = scmp.eq.s32.totalorder %s35_s14, 0 }
  0x13   : > { %p2232_p9 = por %p195_p6, %p194_p5  ;;  %p1663_p10 = scmp.ge.s32.totalorder %s2125_s29, 4 }
  0x14   : > { %s2237_s16 = scalar_select %p182_p7, %s2097_s22, %s184_s13  }
  0x15   : > { %s2240_s17 = scalar_select %p36_p8, %s2105_s24, %s38_s11  }
  0x16   : > { %223 = sbr.rel (%p1663_p10) target bundleno = 69 (0x45), region = 24 }
  0x1b   : > { %226 = sbr.rel (!%p2220_p4) target bundleno = 69 (0x45), region = 28  ;;  %s228_s18 = sand.u32 (%p2220_p4), 1, %s2105_s24  }
  0x1c   : > { %s1796_s19 = sshll.u32 (%p2220_p4), %s2121_s28, 6  ;;  %s1664_s20 = sshll.u32 (%p2220_p4), %s228_s18, 7 }
  0x1d   : > { %s233_s8 = sadd.s32 (%p2220_p4), %s2117_s27, %s1796_s19  ;;  %s2654_s0 = sld [smem:[#allocation9_spill]] (%p2220_p4) }
  0x1e   : > { %s1667_s9 = sshll.u32 (%p2220_p4), %s233_s8, 2  ;;  %s2256_s10 = scalar_lea.vmem (%p2220_p4), [#allocation3], %s1664_s20 }
  0x23   : > { %s2251_s13 = scalar_lea.vmem %s2654_s0, %s1667_s9 }
  0x24   : > { %v252_v0 = vld [vmem:[%s2251_s13] sm:$0xf]  ;;  %v254_v1 = vld [vmem:[%s2251_s13 + $0x8] sm:$0xf]  ;;  %v256_v2 = vld [vmem:[%s2251_s13 + $0x10] sm:$0xf] }
  0x25   : > { %253 = vst [vmem:[%s2256_s10] sm:$0xf] %v252_v0  ;;  %v258_v3 = vld [vmem:[%s2251_s13 + $0x18] sm:$0xf]  ;;  %v260_v4 = vld [vmem:[%s2251_s13 + $0x20] sm:$0xf] }
  0x26   : > { %255 = vst [vmem:[%s2256_s10 + $0x4] sm:$0xf] %v254_v1  ;;  %v262_v5 = vld [vmem:[%s2251_s13 + $0x28] sm:$0xf]  ;;  %v264_v6 = vld [vmem:[%s2251_s13 + $0x30] sm:$0xf] }
  0x27   : > { %257 = vst [vmem:[%s2256_s10 + $0x8] sm:$0xf] %v256_v2  ;;  %v266_v7 = vld [vmem:[%s2251_s13 + $0x38] sm:$0xf]  ;;  %v268_v8 = vld [vmem:[%s2251_s13 + $0x40] sm:$0xf] }
  0x28   : > { %259 = vst [vmem:[%s2256_s10 + $0xc] sm:$0xf] %v258_v3  ;;  %v270_v9 = vld [vmem:[%s2251_s13 + $0x48] sm:$0xf]  ;;  %v272_v10 = vld [vmem:[%s2251_s13 + $0x50] sm:$0xf] }
  0x29   : > { %261 = vst [vmem:[%s2256_s10 + $0x10] sm:$0xf] %v260_v4  ;;  %v274_v11 = vld [vmem:[%s2251_s13 + $0x58] sm:$0xf]  ;;  %v276_v12 = vld [vmem:[%s2251_s13 + $0x60] sm:$0xf] }
  0x2a   : > { %263 = vst [vmem:[%s2256_s10 + $0x14] sm:$0xf] %v262_v5  ;;  %v278_v13 = vld [vmem:[%s2251_s13 + $0x68] sm:$0xf]  ;;  %v280_v14 = vld [vmem:[%s2251_s13 + $0x70] sm:$0xf] }
  0x2b   : > { %265 = vst [vmem:[%s2256_s10 + $0x18] sm:$0xf] %v264_v6  ;;  %v282_v15 = vld [vmem:[%s2251_s13 + $0x78] sm:$0xf]  ;;  %v284_v16 = vld [vmem:[%s2251_s13 + $0x80] sm:$0xf] }
  0x2c   : > { %267 = vst [vmem:[%s2256_s10 + $0x1c] sm:$0xf] %v266_v7  ;;  %v286_v17 = vld [vmem:[%s2251_s13 + $0x88] sm:$0xf]  ;;  %v288_v18 = vld [vmem:[%s2251_s13 + $0x90] sm:$0xf] }
  0x2d   : > { %269 = vst [vmem:[%s2256_s10 + $0x20] sm:$0xf] %v268_v8  ;;  %v290_v19 = vld [vmem:[%s2251_s13 + $0x98] sm:$0xf]  ;;  %v292_v20 = vld [vmem:[%s2251_s13 + $0xa0] sm:$0xf] }
  0x2e   : > { %271 = vst [vmem:[%s2256_s10 + $0x24] sm:$0xf] %v270_v9  ;;  %v294_v21 = vld [vmem:[%s2251_s13 + $0xa8] sm:$0xf]  ;;  %v296_v22 = vld [vmem:[%s2251_s13 + $0xb0] sm:$0xf] }
  0x2f   : > { %273 = vst [vmem:[%s2256_s10 + $0x28] sm:$0xf] %v272_v10  ;;  %v298_v23 = vld [vmem:[%s2251_s13 + $0xb8] sm:$0xf]  ;;  %v300_v24 = vld [vmem:[%s2251_s13 + $0xc0] sm:$0xf] }
  0x30   : > { %275 = vst [vmem:[%s2256_s10 + $0x2c] sm:$0xf] %v274_v11  ;;  %v302_v25 = vld [vmem:[%s2251_s13 + $0xc8] sm:$0xf]  ;;  %v304_v26 = vld [vmem:[%s2251_s13 + $0xd0] sm:$0xf] }
  0x31   : > { %277 = vst [vmem:[%s2256_s10 + $0x30] sm:$0xf] %v276_v12  ;;  %v306_v27 = vld [vmem:[%s2251_s13 + $0xd8] sm:$0xf]  ;;  %v308_v28 = vld [vmem:[%s2251_s13 + $0xe0] sm:$0xf] }
  0x32   : > { %279 = vst [vmem:[%s2256_s10 + $0x34] sm:$0xf] %v278_v13  ;;  %v310_v29 = vld [vmem:[%s2251_s13 + $0xe8] sm:$0xf]  ;;  %v312_v30 = vld [vmem:[%s2251_s13 + $0xf0] sm:$0xf] }
  0x33   : > { %281 = vst [vmem:[%s2256_s10 + $0x38] sm:$0xf] %v280_v14  ;;  %v314_v31 = vld [vmem:[%s2251_s13 + $0xf8] sm:$0xf] }
  0x34   : > { %283 = vst [vmem:[%s2256_s10 + $0x3c] sm:$0xf] %v282_v15 }
  0x35   : > { %285 = vst [vmem:[%s2256_s10 + $0x40] sm:$0xf] %v284_v16 }
  0x36   : > { %287 = vst [vmem:[%s2256_s10 + $0x44] sm:$0xf] %v286_v17 }
  0x37   : > { %289 = vst [vmem:[%s2256_s10 + $0x48] sm:$0xf] %v288_v18 }
  0x38   : > { %291 = vst [vmem:[%s2256_s10 + $0x4c] sm:$0xf] %v290_v19 }
  0x39   : > { %293 = vst [vmem:[%s2256_s10 + $0x50] sm:$0xf] %v292_v20 }
  0x3a   : > { %295 = vst [vmem:[%s2256_s10 + $0x54] sm:$0xf] %v294_v21 }
  0x3b   : > { %297 = vst [vmem:[%s2256_s10 + $0x58] sm:$0xf] %v296_v22 }
  0x3c   : > { %299 = vst [vmem:[%s2256_s10 + $0x5c] sm:$0xf] %v298_v23 }
  0x3d   : > { %301 = vst [vmem:[%s2256_s10 + $0x60] sm:$0xf] %v300_v24 }
  0x3e   : > { %303 = vst [vmem:[%s2256_s10 + $0x64] sm:$0xf] %v302_v25 }
  0x3f   : > { %305 = vst [vmem:[%s2256_s10 + $0x68] sm:$0xf] %v304_v26 }
  0x40   : > { %307 = vst [vmem:[%s2256_s10 + $0x6c] sm:$0xf] %v306_v27 }
  0x41   : > { %309 = vst [vmem:[%s2256_s10 + $0x70] sm:$0xf] %v308_v28 }
  0x42   : > { %311 = vst [vmem:[%s2256_s10 + $0x74] sm:$0xf] %v310_v29 }
  0x43   : > { %313 = vst [vmem:[%s2256_s10 + $0x78] sm:$0xf] %v312_v30 }
  0x44   : > { %315 = vst [vmem:[%s2256_s10 + $0x7c] sm:$0xf] %v314_v31 }
  0x45 PF: > { %p1668_p11 = scmp.ge.s32.totalorder %s2125_s29, 1  ;;  %p420_p12 = scmp.lt.s32.totalorder %s2125_s29, 5 }
  0x47   : > { %p421_p13 = pnand %p1668_p11, %p420_p12 }
  0x48   : > { %s427_s11 = sand.u32 (!%p421_p13), 1, %s2101_s23   ;;  %s467_s18 = sand.u32 (!%p421_p13), 1, %s2093_s21  }
  0x49   : > { %424 = sbr.rel (%p421_p13) target bundleno = 965 (0x3c5), region = 77  ;;  %s1669_s19 = sshll.u32 (!%p421_p13), %s427_s11, 7 }
  0x4a   : > { %s1670_s20 = sshll.u32 (!%p421_p13), %s467_s18, 6  ;;  %s1671_s8 = sshll.u32 (!%p421_p13), %s2109_s25, 4 }
  0x4b   : > { %s1673_s9 = sshll.u32 (!%p421_p13), %s2113_s26, 5  ;;  %p472_p0 = scmp.lt.s32.totalorder (!%p421_p13), %s1671_s8, 31 }
  0x4c   : > { %p478_p1 = scmp.lt.s32.totalorder (!%p421_p13), %s1673_s9, 63  ;;  %s2340_s28 = scalar_lea.vmem (!%p421_p13), [#allocation3], %s1669_s19 }
  0x4d   : > { %s2342_s27 = scalar_lea.vmem (!%p421_p13), [#allocation4], %s1670_s20  ;;  %p1677_p2 = scmp.ne.s32.totalorder (!%p421_p13), %s2109_s25, 0 }
  0x4e   : > { %s2670_s8 = smov (!%p472_p0, %s1671_s8), 31  ;;  %s2672_s9 = smov (!%p478_p1, %s1673_s9), 63 }
  0x4f   : > { %s1672_s12 = sshll.u32 %s2670_s8, 2  ;;  %s1674_s0 = sshll.u32 %s2672_s9, 3 }
  0x50   : > { %s2328_s10 = scalar_lea.vmem %s2637_s1, %s1672_s12  ;;  %s2333_s23 = scalar_lea.vmem %s2638_s2, %s1674_s0 }
  0x51   : > { %s2338_s18 = scalar_lea.vmem %s2641_s5, %s1674_s0  ;;  %493 = sbr.rel (%p1677_p2) target bundleno = 119 (0x77), region = 85 }
  0x56   : > { %v2127_v32 = vmov 0.0  }
  0x57   : > { %494 = vst [vmem:[#allocation2 + $0xb0] sm:$0xff] %v2127_v32 }
  0x58   : > { %495 = vst [vmem:[#allocation2] sm:$0xff] %v2127_v32 }
  0x59   : > { %496 = vst [vmem:[#allocation2 + $0xd8] sm:$0xff] %v2127_v32 }
  0x5a   : > { %497 = vst [vmem:[#allocation2 + $0x18] sm:$0xff] %v2127_v32 }
  0x5b   : > { %498 = vst [vmem:[#allocation2 + $0x50] sm:$0xff] %v2127_v32 }
  0x5c   : > { %499 = vst [vmem:[#allocation2 + $0x68] sm:$0xff] %v2127_v32 }
  0x5d   : > { %500 = vst [vmem:[#allocation2 + $0x30] sm:$0xff] %v2127_v32 }
  0x5e   : > { %501 = vst [vmem:[#allocation2 + $0x48] sm:$0xff] %v2127_v32 }
  0x5f   : > { %502 = vst [vmem:[#allocation2 + $0x80] sm:$0xff] %v2127_v32 }
  0x60   : > { %503 = vst [vmem:[#allocation2 + $0x88] sm:$0xff] %v2127_v32 }
  0x61   : > { %504 = vst [vmem:[#allocation2 + $0xe8] sm:$0xff] %v2127_v32 }
  0x62   : > { %505 = vst [vmem:[#allocation2 + $0xb8] sm:$0xff] %v2127_v32 }
  0x63   : > { %506 = vst [vmem:[#allocation2 + $0x60] sm:$0xff] %v2127_v32 }
  0x64   : > { %507 = vst [vmem:[#allocation2 + $0xf0] sm:$0xff] %v2127_v32 }
  0x65   : > { %508 = vst [vmem:[#allocation2 + $0x8] sm:$0xff] %v2127_v32 }
  0x66   : > { %509 = vst [vmem:[#allocation2 + $0x78] sm:$0xff] %v2127_v32 }
  0x67   : > { %510 = vst [vmem:[#allocation2 + $0x38] sm:$0xff] %v2127_v32 }
  0x68   : > { %511 = vst [vmem:[#allocation2 + $0x58] sm:$0xff] %v2127_v32 }
  0x69   : > { %512 = vst [vmem:[#allocation2 + $0x40] sm:$0xff] %v2127_v32 }
  0x6a   : > { %513 = vst [vmem:[#allocation2 + $0xc8] sm:$0xff] %v2127_v32 }
  0x6b   : > { %514 = vst [vmem:[#allocation2 + $0xe0] sm:$0xff] %v2127_v32 }
  0x6c   : > { %515 = vst [vmem:[#allocation2 + $0x90] sm:$0xff] %v2127_v32 }
  0x6d   : > { %516 = vst [vmem:[#allocation2 + $0x70] sm:$0xff] %v2127_v32 }
  0x6e   : > { %517 = vst [vmem:[#allocation2 + $0xc0] sm:$0xff] %v2127_v32 }
  0x6f   : > { %518 = vst [vmem:[#allocation2 + $0xa8] sm:$0xff] %v2127_v32 }
  0x70   : > { %519 = vst [vmem:[#allocation2 + $0xd0] sm:$0xff] %v2127_v32 }
  0x71   : > { %520 = vst [vmem:[#allocation2 + $0x10] sm:$0xff] %v2127_v32 }
  0x72   : > { %521 = vst [vmem:[#allocation2 + $0x28] sm:$0xff] %v2127_v32 }
  0x73   : > { %522 = vst [vmem:[#allocation2 + $0xa0] sm:$0xff] %v2127_v32 }
  0x74   : > { %523 = vst [vmem:[#allocation2 + $0xf8] sm:$0xff] %v2127_v32 }
  0x75   : > { %524 = vst [vmem:[#allocation2 + $0x20] sm:$0xff] %v2127_v32 }
  0x76   : > { %525 = vst [vmem:[#allocation2 + $0x98] sm:$0xff] %v2127_v32 }
  0x77 PF: > { %v1820_v33 = vld [vmem:[%s2328_s10 + $0x38] sm:$0xff]  ;;  %v1819_v34 = vld [vmem:[%s2328_s10 + $0x30] sm:$0xff]  ;;  %v1818_v35 = vld [vmem:[%s2328_s10 + $0x28] sm:$0xff]  ;;  %p1774_p3 = scmp.ne.s32.totalorder %s2109_s25, 1 }
  0x78   : > { %750 = vmatpush.bf16.msra.mxu0 %v1820_v33  ;;  %1826 = vmatpush.bf16.msra.mxu1 %v1820_v33  ;;  %v1817_v36 = vld [vmem:[%s2328_s10 + $0x20] sm:$0xff]  ;;  %v1816_v37 = vld [vmem:[%s2328_s10 + $0x18] sm:$0xff]  ;;  %v1815_v38 = vld [vmem:[%s2328_s10 + $0x10] sm:$0xff] }
  0x79   : > { %1827 = vmatpush.bf16.msra.mxu2 %v1820_v33  ;;  %1828 = vmatpush.bf16.msra.mxu3 %v1820_v33  ;;  %v1814_v39 = vld [vmem:[%s2328_s10 + $0x8] sm:$0xff]  ;;  %v1813_v40 = vld [vmem:[%s2328_s10] sm:$0xff]  ;;  %v1799_v49 = vld [vmem:[%s2340_s28 + $0x10] sm:$0xff] }
  0x7a   : > { %v1797_v41 = vld [vmem:[%s2340_s28] sm:$0xff]  ;;  %v1798_v45 = vld [vmem:[%s2340_s28 + $0x8] sm:$0xff]  ;;  %v1803_v50 = vld [vmem:[%s2340_s28 + $0x30] sm:$0xff] }
  0x7b   : > { %v1801_v42 = vld [vmem:[%s2340_s28 + $0x20] sm:$0xff]  ;;  %v1802_v46 = vld [vmem:[%s2340_s28 + $0x28] sm:$0xff]  ;;  %v1807_v51 = vld [vmem:[%s2340_s28 + $0x50] sm:$0xff] }
  0x7c   : > { %751 = vmatpush.bf16.msra.mxu0 %v1819_v34  ;;  %1829 = vmatpush.bf16.msra.mxu1 %v1819_v34  ;;  %v1805_v43 = vld [vmem:[%s2340_s28 + $0x40] sm:$0xff]  ;;  %v1806_v47 = vld [vmem:[%s2340_s28 + $0x48] sm:$0xff]  ;;  %v1811_v52 = vld [vmem:[%s2340_s28 + $0x70] sm:$0xff] }
  0x7d   : > { %1830 = vmatpush.bf16.msra.mxu2 %v1819_v34  ;;  %1831 = vmatpush.bf16.msra.mxu3 %v1819_v34  ;;  %v1809_v44 = vld [vmem:[%s2340_s28 + $0x60] sm:$0xff]  ;;  %v1810_v48 = vld [vmem:[%s2340_s28 + $0x68] sm:$0xff]  ;;  %v1800_v53 = vld [vmem:[%s2340_s28 + $0x18] sm:$0xff] }
  0x7e   : > { %v1804_v54 = vld [vmem:[%s2340_s28 + $0x38] sm:$0xff]  ;;  %v526_v57 = vld [vmem:[#allocation2 + $0xb0] sm:$0xff]  ;;  %v534_v58 = vld [vmem:[#allocation2 + $0x80] sm:$0xff] }
  0x7f   : > { %v1808_v55 = vld [vmem:[%s2340_s28 + $0x58] sm:$0xff]  ;;  %v550_v0 = vld [vmem:[#allocation2 + $0xa8] sm:$0xff]  ;;  %v527_v1 = vld [vmem:[#allocation2] sm:$0xff] }
  0x80   : > { %752 = vmatpush.bf16.msra.mxu0 %v1818_v35  ;;  %1832 = vmatpush.bf16.msra.mxu1 %v1818_v35  ;;  %v1812_v56 = vld [vmem:[%s2340_s28 + $0x78] sm:$0xff]  ;;  %v535_v2 = vld [vmem:[#allocation2 + $0x88] sm:$0xff]  ;;  %v551_v12 = vld [vmem:[#allocation2 + $0xd0] sm:$0xff] }
  0x81   : > { %1833 = vmatpush.bf16.msra.mxu2 %v1818_v35  ;;  %1834 = vmatpush.bf16.msra.mxu3 %v1818_v35  ;;  %v542_v63 = vld [vmem:[#allocation2 + $0x38] sm:$0xff]  ;;  %v536_v14 = vld [vmem:[#allocation2 + $0xe8] sm:$0xff]  ;;  %v544_v23 = vld [vmem:[#allocation2 + $0x40] sm:$0xff] }
  0x82   : > { %v543_v11 = vld [vmem:[#allocation2 + $0x58] sm:$0xff]  ;;  %v552_v24 = vld [vmem:[#allocation2 + $0x10] sm:$0xff]  ;;  %v545_v35 = vld [vmem:[#allocation2 + $0xc8] sm:$0xff] }
  0x83   : > { %v528_v13 = vld [vmem:[#allocation2 + $0xd8] sm:$0xff] }
  0x84   : > { %753 = vmatpush.bf16.msra.mxu0 %v1817_v36  ;;  %1835 = vmatpush.bf16.msra.mxu1 %v1817_v36  ;;  %v529_v25 = vld [vmem:[#allocation2 + $0x18] sm:$0xff] }
  0x85   : > { %1836 = vmatpush.bf16.msra.mxu2 %v1817_v36  ;;  %1837 = vmatpush.bf16.msra.mxu3 %v1817_v36  ;;  %v537_v26 = vld [vmem:[#allocation2 + $0xb8] sm:$0xff]  ;;  %v553_v36 = vld [vmem:[#allocation2 + $0x28] sm:$0xff] }
  0x88   : > { %754 = vmatpush.bf16.msra.mxu0 %v1816_v37  ;;  %1838 = vmatpush.bf16.msra.mxu1 %v1816_v37 }
  0x89   : > { %1839 = vmatpush.bf16.msra.mxu2 %v1816_v37  ;;  %1840 = vmatpush.bf16.msra.mxu3 %v1816_v37  ;;  %v530_v37 = vld [vmem:[#allocation2 + $0x50] sm:$0xff] }
  0x8c   : > { %755 = vmatpush.bf16.msra.mxu0 %v1815_v38  ;;  %1841 = vmatpush.bf16.msra.mxu1 %v1815_v38 }
  0x8d   : > { %1842 = vmatpush.bf16.msra.mxu2 %v1815_v38  ;;  %1843 = vmatpush.bf16.msra.mxu3 %v1815_v38  ;;  %v538_v38 = vld [vmem:[#allocation2 + $0x60] sm:$0xff] }
  0x90   : > { %756 = vmatpush.bf16.msra.mxu0 %v1814_v39  ;;  %1844 = vmatpush.bf16.msra.mxu1 %v1814_v39 }
  0x91   : > { %1845 = vmatpush.bf16.msra.mxu2 %v1814_v39  ;;  %1846 = vmatpush.bf16.msra.mxu3 %v1814_v39 }
  0x94   : > { %757 = vmatpush.bf16.msra.mxu0 %v1813_v40  ;;  %1847 = vmatpush.bf16.msra.mxu1 %v1813_v40 }
  0x95   : > { %1848 = vmatpush.bf16.msra.mxu2 %v1813_v40  ;;  %1849 = vmatpush.bf16.msra.mxu3 %v1813_v40 }
  0x97   : > { %758 = vmatmul.bf16.vlgmr.msra.gmra.mxu0 %v1797_v41  ;;  %778 = vmatmul.bf16.vlgmr.msra.gmra.mxu1 %v1801_v42 }
  0x98   : > { %798 = vmatmul.bf16.vlgmr.msra.gmra.mxu2 %v1805_v43  ;;  %818 = vmatmul.bf16.vlgmr.msra.gmra.mxu3 %v1809_v44 }
  0xa7   : > { %763 = vmatmul.bf16.gmra.mxu0 %v1798_v45  ;;  %783 = vmatmul.bf16.gmra.mxu1 %v1802_v46 }
  0xa8   : > { %803 = vmatmul.bf16.gmra.mxu2 %v1806_v47  ;;  %823 = vmatmul.bf16.gmra.mxu3 %v1810_v48  ;;  %v546_v47 = vld [vmem:[#allocation2 + $0xe0] sm:$0xff] }
  0xa9   : > { %v554_v48 = vld [vmem:[#allocation2 + $0xa0] sm:$0xff] }
  0xb7   : > { %768 = vmatmul.bf16.gmra.mxu0 %v1799_v49  ;;  %788 = vmatmul.bf16.gmra.mxu1 %v1803_v50  ;;  %v531_v49 = vld [vmem:[#allocation2 + $0x68] sm:$0xff]  ;;  %v539_v50 = vld [vmem:[#allocation2 + $0xf0] sm:$0xff] }
  0xb8   : > { %808 = vmatmul.bf16.gmra.mxu2 %v1807_v51  ;;  %828 = vmatmul.bf16.gmra.mxu3 %v1811_v52 }
  0xc7   : > { %773 = vmatmul.bf16.gmra.mxu0 %v1800_v53  ;;  %793 = vmatmul.bf16.gmra.mxu1 %v1804_v54 }
  0xc8   : > { %813 = vmatmul.bf16.gmra.mxu2 %v1808_v55  ;;  %833 = vmatmul.bf16.gmra.mxu3 %v1812_v56 }
 0x114   : > { %v759_v59 = vpop.f32.mrf.mxu0  ;;  %v779_v60 = vpop.f32.mrf.mxu1 }
 0x115   : > { %v839_v61 = vadd.f32 %v759_v59, %v526_v57  ;;  %v847_v62 = vadd.f32 %v779_v60, %v534_v58  ;;  %v547_v59 = vld [vmem:[#allocation2 + $0x90] sm:$0xff]  ;;  %v555_v60 = vld [vmem:[#allocation2 + $0xf8] sm:$0xff] }
 0x117   : > { %871 = vst [vmem:[#allocation2 + $0xb0] sm:$0xff] %v839_v61  ;;  %v532_v61 = vld [vmem:[#allocation2 + $0x30] sm:$0xff] }
 0x118   : > { %879 = vst [vmem:[#allocation2 + $0x80] sm:$0xff] %v847_v62  ;;  %v540_v62 = vld [vmem:[#allocation2 + $0x8] sm:$0xff] }
 0x11b   : > { %v799_v3 = vpop.f32.mrf.mxu2  ;;  %v819_v4 = vpop.f32.mrf.mxu3 }
 0x11c   : > { %v855_v5 = vadd.f32 %v799_v3, %v542_v63  ;;  %v863_v6 = vadd.f32 %v819_v4, %v550_v0  ;;  %v761_v7 = vpop.f32.mrf.mxu0  ;;  %v781_v8 = vpop.f32.mrf.mxu1 }
 0x11d   : > { %v840_v9 = vadd.f32 %v761_v7, %v527_v1  ;;  %v848_v10 = vadd.f32 %v781_v8, %v535_v2  ;;  %v548_v7 = vld [vmem:[#allocation2 + $0x70] sm:$0xff]  ;;  %v556_v8 = vld [vmem:[#allocation2 + $0x20] sm:$0xff] }
 0x11e   : > { %887 = vst [vmem:[#allocation2 + $0x38] sm:$0xff] %v855_v5 }
 0x11f   : > { %895 = vst [vmem:[#allocation2 + $0xa8] sm:$0xff] %v863_v6 }
 0x120   : > { %872 = vst [vmem:[#allocation2] sm:$0xff] %v840_v9  ;;  %v533_v9 = vld [vmem:[#allocation2 + $0x48] sm:$0xff] }
 0x121   : > { %880 = vst [vmem:[#allocation2 + $0x88] sm:$0xff] %v848_v10  ;;  %v541_v10 = vld [vmem:[#allocation2 + $0x78] sm:$0xff] }
 0x123   : > { %v801_v15 = vpop.f32.mrf.mxu2  ;;  %v821_v16 = vpop.f32.mrf.mxu3 }
 0x124   : > { %v856_v17 = vadd.f32 %v801_v15, %v543_v11  ;;  %v864_v18 = vadd.f32 %v821_v16, %v551_v12  ;;  %v764_v19 = vpop.f32.mrf.mxu0  ;;  %v784_v20 = vpop.f32.mrf.mxu1 }
 0x125   : > { %v841_v21 = vadd.f32 %v764_v19, %v528_v13  ;;  %v849_v22 = vadd.f32 %v784_v20, %v536_v14  ;;  %v549_v19 = vld [vmem:[#allocation2 + $0xc0] sm:$0xff]  ;;  %v557_v20 = vld [vmem:[#allocation2 + $0x98] sm:$0xff] }
 0x126   : > { %888 = vst [vmem:[#allocation2 + $0x58] sm:$0xff] %v856_v17 }
 0x127   : > { %896 = vst [vmem:[#allocation2 + $0xd0] sm:$0xff] %v864_v18 }
 0x128   : > { %873 = vst [vmem:[#allocation2 + $0xd8] sm:$0xff] %v841_v21 }
 0x129   : > { %881 = vst [vmem:[#allocation2 + $0xe8] sm:$0xff] %v849_v22 }
 0x12b   : > { %v804_v27 = vpop.f32.mrf.mxu2  ;;  %v824_v28 = vpop.f32.mrf.mxu3 }
 0x12c   : > { %v857_v29 = vadd.f32 %v804_v27, %v544_v23  ;;  %v865_v30 = vadd.f32 %v824_v28, %v552_v24  ;;  %v766_v31 = vpop.f32.mrf.mxu0  ;;  %v786_v32 = vpop.f32.mrf.mxu1 }
 0x12d   : > { %v842_v33 = vadd.f32 %v766_v31, %v529_v25  ;;  %v850_v34 = vadd.f32 %v786_v32, %v537_v26 }
 0x12e   : > { %889 = vst [vmem:[#allocation2 + $0x40] sm:$0xff] %v857_v29 }
 0x12f   : > { %897 = vst [vmem:[#allocation2 + $0x10] sm:$0xff] %v865_v30 }
 0x130   : > { %874 = vst [vmem:[#allocation2 + $0x18] sm:$0xff] %v842_v33 }
 0x131   : > { %882 = vst [vmem:[#allocation2 + $0xb8] sm:$0xff] %v850_v34 }
 0x133   : > { %v806_v39 = vpop.f32.mrf.mxu2  ;;  %v826_v40 = vpop.f32.mrf.mxu3 }
 0x134   : > { %v858_v41 = vadd.f32 %v806_v39, %v545_v35  ;;  %v866_v42 = vadd.f32 %v826_v40, %v553_v36  ;;  %v769_v43 = vpop.f32.mrf.mxu0  ;;  %v789_v44 = vpop.f32.mrf.mxu1 }
 0x135   : > { %v843_v45 = vadd.f32 %v769_v43, %v530_v37  ;;  %v851_v46 = vadd.f32 %v789_v44, %v538_v38 }
 0x136   : > { %890 = vst [vmem:[#allocation2 + $0xc8] sm:$0xff] %v858_v41 }
 0x137   : > { %898 = vst [vmem:[#allocation2 + $0x28] sm:$0xff] %v866_v42 }
 0x138   : > { %875 = vst [vmem:[#allocation2 + $0x50] sm:$0xff] %v843_v45 }
 0x139   : > { %883 = vst [vmem:[#allocation2 + $0x60] sm:$0xff] %v851_v46 }
 0x13b   : > { %v809_v51 = vpop.f32.mrf.mxu2  ;;  %v829_v52 = vpop.f32.mrf.mxu3 }
 0x13c   : > { %v859_v53 = vadd.f32 %v809_v51, %v546_v47  ;;  %v867_v54 = vadd.f32 %v829_v52, %v554_v48  ;;  %v771_v55 = vpop.f32.mrf.mxu0  ;;  %v791_v56 = vpop.f32.mrf.mxu1 }
 0x13d   : > { %v844_v57 = vadd.f32 %v771_v55, %v531_v49  ;;  %v852_v58 = vadd.f32 %v791_v56, %v539_v50 }
 0x13e   : > { %891 = vst [vmem:[#allocation2 + $0xe0] sm:$0xff] %v859_v53 }
 0x13f   : > { %899 = vst [vmem:[#allocation2 + $0xa0] sm:$0xff] %v867_v54 }
 0x140   : > { %876 = vst [vmem:[#allocation2 + $0x68] sm:$0xff] %v844_v57 }
 0x141   : > { %884 = vst [vmem:[#allocation2 + $0xf0] sm:$0xff] %v852_v58 }
 0x143   : > { %v811_v63 = vpop.f32.mrf.mxu2  ;;  %v831_v0 = vpop.f32.mrf.mxu3 }
 0x144   : > { %v860_v1 = vadd.f32 %v811_v63, %v547_v59  ;;  %v868_v2 = vadd.f32 %v831_v0, %v555_v60  ;;  %v774_v3 = vpop.f32.mrf.mxu0  ;;  %v794_v4 = vpop.f32.mrf.mxu1 }
 0x145   : > { %v845_v5 = vadd.f32 %v774_v3, %v532_v61  ;;  %v853_v6 = vadd.f32 %v794_v4, %v540_v62 }
 0x146   : > { %892 = vst [vmem:[#allocation2 + $0x90] sm:$0xff] %v860_v1 }
 0x147   : > { %900 = vst [vmem:[#allocation2 + $0xf8] sm:$0xff] %v868_v2 }
 0x148   : > { %877 = vst [vmem:[#allocation2 + $0x30] sm:$0xff] %v845_v5 }
 0x149   : > { %885 = vst [vmem:[#allocation2 + $0x8] sm:$0xff] %v853_v6 }
 0x14b   : > { %v814_v11 = vpop.f32.mrf.mxu2  ;;  %v834_v12 = vpop.f32.mrf.mxu3 }
 0x14c   : > { %v861_v13 = vadd.f32 %v814_v11, %v548_v7  ;;  %v869_v14 = vadd.f32 %v834_v12, %v556_v8  ;;  %v776_v15 = vpop.f32.mrf.mxu0  ;;  %v796_v16 = vpop.f32.mrf.mxu1 }
 0x14d   : > { %v846_v17 = vadd.f32 %v776_v15, %v533_v9  ;;  %v854_v18 = vadd.f32 %v796_v16, %v541_v10 }
 0x14e   : > { %893 = vst [vmem:[#allocation2 + $0x70] sm:$0xff] %v861_v13 }
 0x14f   : > { %901 = vst [vmem:[#allocation2 + $0x20] sm:$0xff] %v869_v14 }
 0x150   : > { %878 = vst [vmem:[#allocation2 + $0x48] sm:$0xff] %v846_v17 }
 0x151   : > { %886 = vst [vmem:[#allocation2 + $0x78] sm:$0xff] %v854_v18 }
 0x153   : > { %v816_v21 = vpop.f32.mrf.mxu2  ;;  %v836_v22 = vpop.f32.mrf.mxu3  ;;  %906 = sbr.rel (%p1774_p3) target bundleno = 955 (0x3bb), region = 89 }
 0x154   : > { %v862_v23 = vadd.f32 %v816_v21, %v549_v19  ;;  %v870_v24 = vadd.f32 %v836_v22, %v557_v20 }
 0x156   : > { %894 = vst [vmem:[#allocation2 + $0xc0] sm:$0xff] %v862_v23 }
 0x157   : > { %902 = vst [vmem:[#allocation2 + $0x98] sm:$0xff] %v870_v24 }
 0x158   : > { %v943_v25 = vld [vmem:[%s2333_s23 + $0x20] sm:$0xff]  ;;  %v941_v26 = vld [vmem:[%s2333_s23 + $0x10] sm:$0xff]  ;;  %v2128_v28 = vmov 0   ;;  %v944_v29 = vld [vmem:[%s2333_s23 + $0x28] sm:$0xff] }
 0x159   : > { %v939_v27 = vld [vmem:[%s2333_s23] sm:$0xff]  ;;  %1942 = vset.pattern.permute.xlu2 %v2128_v28  ;;  %1941 = vset.pattern.permute.xlu1 %v2128_v28  ;;  %v942_v30 = vld [vmem:[%s2333_s23 + $0x18] sm:$0xff]  ;;  %v940_v31 = vld [vmem:[%s2333_s23 + $0x8] sm:$0xff] }
 0x15a   : > { %1940 = vset.pattern.permute.xlu0 %v2128_v28  ;;  %993 = vperm.xlu2 %1942, %v943_v25   ;;  %v957_v32 = vld [vmem:[%s2333_s23 + $0x90] sm:$0xff]  ;;  %v956_v33 = vld [vmem:[%s2333_s23 + $0x88] sm:$0xff]  ;;  %v955_v34 = vld [vmem:[%s2333_s23 + $0x80] sm:$0xff] }
 0x15b   : > { %983 = vperm.xlu1 %1941, %v941_v26   ;;  %973 = vperm.xlu0 %1940, %v939_v27   ;;  %v960_v35 = vld [vmem:[%s2333_s23 + $0xa8] sm:$0xff]  ;;  %v959_v36 = vld [vmem:[%s2333_s23 + $0xa0] sm:$0xff]  ;;  %v958_v37 = vld [vmem:[%s2333_s23 + $0x98] sm:$0xff] }
 0x15c   : > { %v946_v38 = vld [vmem:[%s2333_s23 + $0x38] sm:$0xff]  ;;  %v961_v39 = vld [vmem:[%s2333_s23 + $0xb0] sm:$0xff]  ;;  %v963_v41 = vld [vmem:[%s2333_s23 + $0xc0] sm:$0xff] }
 0x15d   : > { %v945_v40 = vld [vmem:[%s2333_s23 + $0x30] sm:$0xff]  ;;  %v947_v42 = vld [vmem:[%s2333_s23 + $0x40] sm:$0xff]  ;;  %v962_v43 = vld [vmem:[%s2333_s23 + $0xb8] sm:$0xff] }
 0x15e   : > { %v949_v44 = vld [vmem:[%s2333_s23 + $0x50] sm:$0xff]  ;;  %v964_v45 = vld [vmem:[%s2333_s23 + $0xc8] sm:$0xff]  ;;  %v966_v47 = vld [vmem:[%s2333_s23 + $0xd8] sm:$0xff] }
 0x15f   : > { %v948_v46 = vld [vmem:[%s2333_s23 + $0x48] sm:$0xff]  ;;  %v950_v48 = vld [vmem:[%s2333_s23 + $0x58] sm:$0xff]  ;;  %v965_v49 = vld [vmem:[%s2333_s23 + $0xd0] sm:$0xff] }
 0x160   : > { %v952_v50 = vld [vmem:[%s2333_s23 + $0x68] sm:$0xff]  ;;  %v967_v51 = vld [vmem:[%s2333_s23 + $0xe0] sm:$0xff]  ;;  %v969_v53 = vld [vmem:[%s2333_s23 + $0xf0] sm:$0xff] }
 0x161   : > { %v951_v52 = vld [vmem:[%s2333_s23 + $0x60] sm:$0xff]  ;;  %v953_v54 = vld [vmem:[%s2333_s23 + $0x70] sm:$0xff]  ;;  %v968_v55 = vld [vmem:[%s2333_s23 + $0xe8] sm:$0xff] }
 0x162   : > { %998 = vperm.xlu2 %1942, %v944_v29   ;;  %v970_v56 = vld [vmem:[%s2333_s23 + $0xf8] sm:$0xff]  ;;  %v1316_v58 = vld [vmem:[%s2640_s4 + $0x8] sm:$0xff]  ;;  %v1315_v59 = vld [vmem:[%s2640_s4] sm:$0xff] }
 0x163   : > { %988 = vperm.xlu1 %1941, %v942_v30   ;;  %978 = vperm.xlu0 %1940, %v940_v31   ;;  %v954_v57 = vld [vmem:[%s2333_s23 + $0x78] sm:$0xff]  ;;  %v911_v60 = vld [vmem:[#allocation2 + $0x50] sm:$0xff]  ;;  %v912_v2 = vld [vmem:[#allocation2 + $0x68] sm:$0xff] }
 0x164   : > { %v1318_v0 = vld [vmem:[%s2640_s4 + $0x18] sm:$0xff]  ;;  %v1317_v1 = vld [vmem:[%s2640_s4 + $0x10] sm:$0xff]  ;;  %v1320_v6 = vld [vmem:[%s2640_s4 + $0x28] sm:$0xff] }
 0x165   : > { %v1319_v7 = vld [vmem:[%s2640_s4 + $0x20] sm:$0xff]  ;;  %v1322_v12 = vld [vmem:[%s2640_s4 + $0x38] sm:$0xff]  ;;  %v1321_v13 = vld [vmem:[%s2640_s4 + $0x30] sm:$0xff] }
 0x166   : > { %v925_v8 = vld [vmem:[#allocation2 + $0x40] sm:$0xff]  ;;  %v928_v14 = vld [vmem:[#allocation2 + $0x90] sm:$0xff]  ;;  %v909_v15 = vld [vmem:[#allocation2 + $0xd8] sm:$0xff] }
 0x167   : > { %v907_v16 = vld [vmem:[#allocation2 + $0xb0] sm:$0xff]  ;;  %v914_v26 = vld [vmem:[#allocation2 + $0x48] sm:$0xff]  ;;  %v910_v27 = vld [vmem:[#allocation2 + $0x18] sm:$0xff] }
 0x168   : > { %v908_v28 = vld [vmem:[#allocation2] sm:$0xff] }
 0x16a   : > { %1063 = vperm.xlu2 %1942, %v957_v32  }
 0x16b   : > { %1058 = vperm.xlu1 %1941, %v956_v33   ;;  %1053 = vperm.xlu0 %1940, %v955_v34  }
 0x172   : > { %1078 = vperm.xlu2 %1942, %v960_v35  }
 0x173   : > { %1073 = vperm.xlu1 %1941, %v959_v36   ;;  %1068 = vperm.xlu0 %1940, %v958_v37  }
 0x17a   : > { %1008 = vperm.xlu2 %1942, %v946_v38   ;;  %v931_v38 = vld [vmem:[#allocation2 + $0xa8] sm:$0xff] }
 0x17b   : > { %1083 = vperm.xlu1 %1941, %v961_v39   ;;  %1003 = vperm.xlu0 %1940, %v945_v40   ;;  %v924_v39 = vld [vmem:[#allocation2 + $0x58] sm:$0xff] }
 0x17c   : > { %v923_v40 = vld [vmem:[#allocation2 + $0x38] sm:$0xff] }
 0x182   : > { %1093 = vperm.xlu2 %1942, %v963_v41  }
 0x183   : > { %1013 = vperm.xlu1 %1941, %v947_v42   ;;  %1088 = vperm.xlu0 %1940, %v962_v43  }
 0x18a   : > { %1023 = vperm.xlu2 %1942, %v949_v44  }
 0x18b   : > { %1098 = vperm.xlu1 %1941, %v964_v45   ;;  %1018 = vperm.xlu0 %1940, %v948_v46  }
 0x192   : > { %1108 = vperm.xlu2 %1942, %v966_v47  }
 0x193   : > { %1028 = vperm.xlu1 %1941, %v950_v48   ;;  %1103 = vperm.xlu0 %1940, %v965_v49  }
 0x19a   : > { %1038 = vperm.xlu2 %1942, %v952_v50  }
 0x19b   : > { %1113 = vperm.xlu1 %1941, %v967_v51   ;;  %1033 = vperm.xlu0 %1940, %v951_v52   ;;  %v917_v51 = vld [vmem:[#allocation2 + $0xe8] sm:$0xff]  ;;  %v927_v52 = vld [vmem:[#allocation2 + $0xe0] sm:$0xff] }
 0x1a2   : > { %1123 = vperm.xlu2 %1942, %v969_v53   ;;  %v926_v53 = vld [vmem:[#allocation2 + $0xc8] sm:$0xff] }
 0x1a3   : > { %1043 = vperm.xlu1 %1941, %v953_v54   ;;  %1118 = vperm.xlu0 %1940, %v968_v55  }
 0x1ab   : > { %1128 = vperm.xlu1 %1941, %v970_v56   ;;  %1048 = vperm.xlu0 %1940, %v954_v57  }
 0x1b3   : > { %1330 = vperm.xlu1 %1941, %v1316_v58   ;;  %1325 = vperm.xlu0 %1940, %v1315_v59  }
 0x1b4   : > { %v994_v61 = vpop.permute.xlu2 %993 }
 0x1b5   : > { %v2408_v62 = vmul.f32 %v994_v61, %v911_v60 }
 0x1b7   : > { %v1167_v63 = vmax.f32 %v2408_v62, 0.0  ;;  %v935_v62 = vld [vmem:[#allocation2 + $0xa0] sm:$0xff] }
 0x1b9   : > { %1199 = vst [vmem:[%s2338_s18 + $0x20] sm:$0xff] %v1167_v63 }
 0x1bb   : > { %1340 = vperm.xlu1 %1941, %v1318_v0   ;;  %1335 = vperm.xlu0 %1940, %v1317_v1  }
 0x1bc   : > { %v999_v3 = vpop.permute.xlu2 %998 }
 0x1bd   : > { %v2420_v4 = vmul.f32 %v999_v3, %v912_v2  ;;  %v934_v2 = vld [vmem:[#allocation2 + $0x28] sm:$0xff]  ;;  %v929_v3 = vld [vmem:[#allocation2 + $0x70] sm:$0xff] }
 0x1bf   : > { %v1168_v5 = vmax.f32 %v2420_v4, 0.0  ;;  %v921_v4 = vld [vmem:[#allocation2 + $0x8] sm:$0xff] }
 0x1c1   : > { %1200 = vst [vmem:[%s2338_s18 + $0x28] sm:$0xff] %v1168_v5 }
 0x1c3   : > { %1350 = vperm.xlu1 %1941, %v1320_v6   ;;  %1345 = vperm.xlu0 %1940, %v1319_v7   ;;  %v913_v6 = vld [vmem:[#allocation2 + $0x30] sm:$0xff] }
 0x1c4   : > { %v1064_v9 = vpop.permute.xlu2 %1063 }
 0x1c5   : > { %v2432_v10 = vmul.f32 %v1064_v9, %v925_v8 }
 0x1c7   : > { %v1181_v11 = vmax.f32 %v2432_v10, 0.0 }
 0x1c9   : > { %1213 = vst [vmem:[%s2338_s18 + $0x90] sm:$0xff] %v1181_v11 }
 0x1cb   : > { %1360 = vperm.xlu1 %1941, %v1322_v12   ;;  %1355 = vperm.xlu0 %1940, %v1321_v13  }
 0x1cc   : > { %v1079_v17 = vpop.permute.xlu2 %1078 }
 0x1cd   : > { %v2444_v18 = vmul.f32 %v1079_v17, %v928_v14  ;;  %v984_v19 = vpop.permute.xlu1 %983  ;;  %v974_v20 = vpop.permute.xlu0 %973 }
 0x1ce   : > { %v2446_v21 = vmul.f32 %v984_v19, %v909_v15  ;;  %v1131_v22 = vmul.f32 %v974_v20, %v907_v16  ;;  %v920_v20 = vld [vmem:[#allocation2 + $0xf0] sm:$0xff] }
 0x1cf   : > { %v1184_v23 = vmax.f32 %v2444_v18, 0.0 }
 0x1d0   : > { %v1165_v24 = vmax.f32 %v2446_v21, 0.0  ;;  %v1163_v25 = vmax.f32 %v1131_v22, 0.0  ;;  %v915_v22 = vld [vmem:[#allocation2 + $0x80] sm:$0xff] }
 0x1d1   : > { %1216 = vst [vmem:[%s2338_s18 + $0xa8] sm:$0xff] %v1184_v23 }
 0x1d2   : > { %1197 = vst [vmem:[%s2338_s18 + $0x10] sm:$0xff] %v1165_v24  ;;  %v1947_v19 = vpack.i.bf16 %v1181_v11, %v1165_v24 }
 0x1d3   : > { %1195 = vst [vmem:[%s2338_s18] sm:$0xff] %v1163_v25 }
 0x1d4   : > { %v1009_v29 = vpop.permute.xlu2 %1008 }
 0x1d5   : > { %v2457_v30 = vmul.f32 %v1009_v29, %v914_v26  ;;  %v989_v31 = vpop.permute.xlu1 %988  ;;  %v979_v32 = vpop.permute.xlu0 %978 }
 0x1d6   : > { %v2459_v33 = vmul.f32 %v989_v31, %v910_v27  ;;  %v1132_v34 = vmul.f32 %v979_v32, %v908_v28 }
 0x1d7   : > { %v1170_v35 = vmax.f32 %v2457_v30, 0.0 }
 0x1d8   : > { %v1166_v36 = vmax.f32 %v2459_v33, 0.0  ;;  %v1164_v37 = vmax.f32 %v1132_v34, 0.0  ;;  %v937_v34 = vld [vmem:[#allocation2 + $0x20] sm:$0xff] }
 0x1d9   : > { %1202 = vst [vmem:[%s2338_s18 + $0x38] sm:$0xff] %v1170_v35 }
 0x1da   : > { %1198 = vst [vmem:[%s2338_s18 + $0x18] sm:$0xff] %v1166_v36 }
 0x1db   : > { %1196 = vst [vmem:[%s2338_s18 + $0x8] sm:$0xff] %v1164_v37 }
 0x1dc   : > { %v1094_v41 = vpop.permute.xlu2 %1093 }
 0x1dd   : > { %v2470_v42 = vmul.f32 %v1094_v41, %v931_v38  ;;  %v1059_v43 = vpop.permute.xlu1 %1058  ;;  %v1054_v44 = vpop.permute.xlu0 %1053  ;;  %v916_v38 = vld [vmem:[#allocation2 + $0x88] sm:$0xff] }
 0x1de   : > { %v1148_v45 = vmul.f32 %v1059_v43, %v924_v39  ;;  %v1147_v46 = vmul.f32 %v1054_v44, %v923_v40 }
 0x1df   : > { %v1187_v47 = vmax.f32 %v2470_v42, 0.0 }
 0x1e0   : > { %v1180_v48 = vmax.f32 %v1148_v45, 0.0  ;;  %v1179_v49 = vmax.f32 %v1147_v46, 0.0 }
 0x1e1   : > { %1219 = vst [vmem:[%s2338_s18 + $0xc0] sm:$0xff] %v1187_v47 }
 0x1e2   : > { %1212 = vst [vmem:[%s2338_s18 + $0x88] sm:$0xff] %v1180_v48  ;;  %v1943_v50 = vpack.i.bf16 %v1179_v49, %v1163_v25  ;;  %v1945_v1 = vpack.i.bf16 %v1180_v48, %v1164_v37  ;;  %v930_v25 = vld [vmem:[#allocation2 + $0xc0] sm:$0xff]  ;;  %v932_v37 = vld [vmem:[#allocation2 + $0xd0] sm:$0xff] }
 0x1e3   : > { %1211 = vst [vmem:[%s2338_s18 + $0x80] sm:$0xff] %v1179_v49  ;;  %v918_v49 = vld [vmem:[#allocation2 + $0xb8] sm:$0xff] }
 0x1e4   : > { %1944 = vxpose.xlu2.b32.start [1/16] %v1943_v50, 128  ;;  %v1024_v54 = vpop.permute.xlu2 %1023  ;;  %v933_v50 = vld [vmem:[#allocation2 + $0x10] sm:$0xff] }
 0x1e5   : > { %v2478_v55 = vmul.f32 %v1024_v54, %v917_v51  ;;  %v1074_v56 = vpop.permute.xlu1 %1073  ;;  %v1069_v57 = vpop.permute.xlu0 %1068 }
 0x1e6   : > { %v1151_v58 = vmul.f32 %v1074_v56, %v927_v52  ;;  %v1150_v59 = vmul.f32 %v1069_v57, %v926_v53 }
 0x1e7   : > { %v1173_v60 = vmax.f32 %v2478_v55, 0.0 }
 0x1e8   : > { %v1183_v61 = vmax.f32 %v1151_v58, 0.0  ;;  %v1182_v0 = vmax.f32 %v1150_v59, 0.0  ;;  %v1953_v58 = vpack.i.bf16 %v1184_v23, %v1168_v5 }
 0x1e9   : > { %1205 = vst [vmem:[%s2338_s18 + $0x50] sm:$0xff] %v1173_v60 }
 0x1ea   : > { %1215 = vst [vmem:[%s2338_s18 + $0xa0] sm:$0xff] %v1183_v61  ;;  %v1949_v32 = vpack.i.bf16 %v1182_v0, %v1166_v36  ;;  %v1951_v48 = vpack.i.bf16 %v1183_v61, %v1167_v63  ;;  %v919_v63 = vld [vmem:[#allocation2 + $0x60] sm:$0xff] }
 0x1eb   : > { %1214 = vst [vmem:[%s2338_s18 + $0x98] sm:$0xff] %v1182_v0 }
 0x1ec   : > { %1946 = vxpose.xlu2.b32.cont [2/16] %v1945_v1, 128  ;;  %v1109_v7 = vpop.permute.xlu2 %1108 }
 0x1ed   : > { %v2486_v8 = vmul.f32 %v1109_v7, %v934_v2  ;;  %v1084_v9 = vpop.permute.xlu1 %1083  ;;  %v1004_v12 = vpop.permute.xlu0 %1003  ;;  %v936_v7 = vld [vmem:[#allocation2 + $0xf8] sm:$0xff] }
 0x1ee   : > { %v2488_v13 = vmul.f32 %v1084_v9, %v929_v3  ;;  %v2490_v14 = vmul.f32 %v1004_v12, %v913_v6 }
 0x1ef   : > { %v1190_v15 = vmax.f32 %v2486_v8, 0.0 }
 0x1f0   : > { %v1185_v16 = vmax.f32 %v2488_v13, 0.0  ;;  %v1169_v17 = vmax.f32 %v2490_v14, 0.0 }
 0x1f1   : > { %1222 = vst [vmem:[%s2338_s18 + $0xd8] sm:$0xff] %v1190_v15 }
 0x1f2   : > { %1217 = vst [vmem:[%s2338_s18 + $0xb0] sm:$0xff] %v1185_v16  ;;  %v1955_v6 = vpack.i.bf16 %v1185_v16, %v1169_v17  ;;  %v922_v16 = vld [vmem:[#allocation2 + $0x78] sm:$0xff] }
 0x1f3   : > { %1201 = vst [vmem:[%s2338_s18 + $0x30] sm:$0xff] %v1169_v17 }
 0x1f4   : > { %1948 = vxpose.xlu2.b32.cont [3/16] %v1947_v19, 128  ;;  %v1039_v26 = vpop.permute.xlu2 %1038  ;;  %v938_v19 = vld [vmem:[#allocation2 + $0x98] sm:$0xff] }
 0x1f5   : > { %v2504_v27 = vmul.f32 %v1039_v26, %v920_v20  ;;  %v1014_v28 = vpop.permute.xlu1 %1013  ;;  %v1089_v29 = vpop.permute.xlu0 %1088 }
 0x1f6   : > { %v2506_v31 = vmul.f32 %v1014_v28, %v915_v22  ;;  %v1154_v21 = vmul.f32 %v1089_v29, %v930_v25 }
 0x1f7   : > { %v1176_v10 = vmax.f32 %v2504_v27, 0.0 }
 0x1f8   : > { %v1171_v11 = vmax.f32 %v2506_v31, 0.0  ;;  %v1186_v24 = vmax.f32 %v1154_v21, 0.0 }
 0x1f9   : > { %1208 = vst [vmem:[%s2338_s18 + $0x68] sm:$0xff] %v1176_v10 }
 0x1fa   : > { %1203 = vst [vmem:[%s2338_s18 + $0x40] sm:$0xff] %v1171_v11  ;;  %v1957_v14 = vpack.i.bf16 %v1186_v24, %v1170_v35  ;;  %v1959_v29 = vpack.i.bf16 %v1187_v47, %v1171_v11 }
 0x1fb   : > { %1218 = vst [vmem:[%s2338_s18 + $0xb8] sm:$0xff] %v1186_v24 }
 0x1fc   : > { %1950 = vxpose.xlu2.b32.cont [4/16] %v1949_v32, 128  ;;  %v1124_v39 = vpop.permute.xlu2 %1123 }
 0x1fd   : > { %v2519_v40 = vmul.f32 %v1124_v39, %v937_v34  ;;  %v1099_v41 = vpop.permute.xlu1 %1098  ;;  %v1019_v43 = vpop.permute.xlu0 %1018 }
 0x1fe   : > { %v1156_v44 = vmul.f32 %v1099_v41, %v932_v37  ;;  %v1140_v45 = vmul.f32 %v1019_v43, %v916_v38 }
 0x1ff   : > { %v1193_v33 = vmax.f32 %v2519_v40, 0.0 }
 0x200   : > { %v1188_v36 = vmax.f32 %v1156_v44, 0.0  ;;  %v1172_v46 = vmax.f32 %v1140_v45, 0.0 }
 0x201   : > { %1225 = vst [vmem:[%s2338_s18 + $0xf0] sm:$0xff] %v1193_v33 }
 0x202   : > { %1220 = vst [vmem:[%s2338_s18 + $0xc8] sm:$0xff] %v1188_v36  ;;  %v1961_v30 = vpack.i.bf16 %v1188_v36, %v1172_v46 }
 0x203   : > { %1204 = vst [vmem:[%s2338_s18 + $0x48] sm:$0xff] %v1172_v46 }
 0x204   : > { %1952 = vxpose.xlu2.b32.cont [5/16] %v1951_v48, 128 }
 0x205   : > { %v1029_v51 = vpop.permute.xlu1 %1028  ;;  %v1104_v52 = vpop.permute.xlu0 %1103 }
 0x206   : > { %v1142_v53 = vmul.f32 %v1029_v51, %v918_v49  ;;  %v1157_v54 = vmul.f32 %v1104_v52, %v933_v50 }
 0x208   : > { %v1174_v56 = vmax.f32 %v1142_v53, 0.0  ;;  %v1189_v57 = vmax.f32 %v1157_v54, 0.0 }
 0x20a   : > { %1206 = vst [vmem:[%s2338_s18 + $0x58] sm:$0xff] %v1174_v56  ;;  %v1963_v35 = vpack.i.bf16 %v1189_v57, %v1173_v60  ;;  %v1965_v21 = vpack.i.bf16 %v1190_v15, %v1174_v56 }
 0x20b   : > { %1221 = vst [vmem:[%s2338_s18 + $0xd0] sm:$0xff] %v1189_v57 }
 0x20c   : > { %1954 = vxpose.xlu2.b32.cont [6/16] %v1953_v58, 128 }
 0x20d   : > { %v1114_v59 = vpop.permute.xlu1 %1113  ;;  %v1034_v61 = vpop.permute.xlu0 %1033 }
 0x20e   : > { %v1159_v0 = vmul.f32 %v1114_v59, %v935_v62  ;;  %v1143_v1 = vmul.f32 %v1034_v61, %v919_v63 }
 0x210   : > { %v1191_v2 = vmax.f32 %v1159_v0, 0.0  ;;  %v1175_v3 = vmax.f32 %v1143_v1, 0.0 }
 0x212   : > { %1223 = vst [vmem:[%s2338_s18 + $0xe0] sm:$0xff] %v1191_v2  ;;  %v1967_v24 = vpack.i.bf16 %v1191_v2, %v1175_v3 }
 0x213   : > { %1207 = vst [vmem:[%s2338_s18 + $0x60] sm:$0xff] %v1175_v3 }
 0x214   : > { %1956 = vxpose.xlu2.b32.cont [7/16] %v1955_v6, 128 }
 0x215   : > { %v1044_v5 = vpop.permute.xlu1 %1043  ;;  %v1119_v18 = vpop.permute.xlu0 %1118 }
 0x216   : > { %v1145_v23 = vmul.f32 %v1044_v5, %v921_v4  ;;  %v1160_v9 = vmul.f32 %v1119_v18, %v936_v7 }
 0x218   : > { %v1177_v12 = vmax.f32 %v1145_v23, 0.0  ;;  %v1192_v13 = vmax.f32 %v1160_v9, 0.0 }
 0x21a   : > { %1209 = vst [vmem:[%s2338_s18 + $0x70] sm:$0xff] %v1177_v12  ;;  %v1969_v31 = vpack.i.bf16 %v1192_v13, %v1176_v10  ;;  %v1971_v42 = vpack.i.bf16 %v1193_v33, %v1177_v12 }
 0x21b   : > { %1224 = vst [vmem:[%s2338_s18 + $0xe8] sm:$0xff] %v1192_v13 }
 0x21c   : > { %1958 = vxpose.xlu2.b32.cont [8/16] %v1957_v14, 128 }
 0x21d   : > { %v1129_v17 = vpop.permute.xlu1 %1128  ;;  %v1049_v20 = vpop.permute.xlu0 %1048 }
 0x21e   : > { %v1162_v22 = vmul.f32 %v1129_v17, %v938_v19  ;;  %v1146_v25 = vmul.f32 %v1049_v20, %v922_v16 }
 0x220   : > { %v1194_v26 = vmax.f32 %v1162_v22, 0.0  ;;  %v1178_v28 = vmax.f32 %v1146_v25, 0.0 }
 0x222   : > { %1226 = vst [vmem:[%s2338_s18 + $0xf8] sm:$0xff] %v1194_v26  ;;  %v1973_v47 = vpack.i.bf16 %v1194_v26, %v1178_v28 }
 0x223   : > { %1210 = vst [vmem:[%s2338_s18 + $0x78] sm:$0xff] %v1178_v28 }
 0x224   : > { %1960 = vxpose.xlu2.b32.cont [9/16] %v1959_v29, 128 }
 0x22c   : > { %1962 = vxpose.xlu2.b32.cont [10/16] %v1961_v30, 128 }
 0x234   : > { %1964 = vxpose.xlu2.b32.cont [11/16] %v1963_v35, 128 }
 0x23c   : > { %1966 = vxpose.xlu2.b32.cont [12/16] %v1965_v21, 128 }
 0x244   : > { %1968 = vxpose.xlu2.b32.cont [13/16] %v1967_v24, 128 }
 0x24c   : > { %1970 = vxpose.xlu2.b32.cont [14/16] %v1969_v31, 128 }
 0x254   : > { %1972 = vxpose.xlu2.b32.cont [15/16] %v1971_v42, 128 }
 0x25c   : > { %1974 = vxpose.xlu2.b32.end [16/16] %v1973_v47, 128 }
 0x27d   : > { %v1975_v11 = vpop.trf.xlu2 }
 0x27e   : > { %v1976_v60 = vunpack.i.l.bf16 %v1975_v11  ;;  %v1979_v32 = vunpack.i.h.bf16 %v1975_v11  ;;  %v1821_v11 = vld [vmem:[%s2639_s3] sm:$0xff] }
 0x285   : > { %v1980_v55 = vpop.trf.xlu2 }
 0x286   : > { %v1981_v34 = vunpack.i.l.bf16 %v1980_v55  ;;  %v1984_v8 = vunpack.i.h.bf16 %v1980_v55  ;;  %v1823_v55 = vld [vmem:[%s2639_s3 + $0x10] sm:$0xff] }
 0x288   : > { %v2555_v15 = vpack.c.bf16 %v1981_v34, %v1976_v60  ;;  %v2557_v37 = vpack.c.bf16 %v1984_v8, %v1979_v32  ;;  %v1822_v60 = vld [vmem:[%s2639_s3 + $0x8] sm:$0xff]  ;;  %v1824_v32 = vld [vmem:[%s2639_s3 + $0x18] sm:$0xff]  ;;  %v1326_v34 = vpop.permute.xlu0 %1325  ;;  %v1331_v8 = vpop.permute.xlu1 %1330 }
 0x28d   : > { %v1985_v38 = vpop.trf.xlu2 }
 0x28e   : > { %v1986_v10 = vunpack.i.l.bf16 %v1985_v38  ;;  %v1989_v39 = vunpack.i.h.bf16 %v1985_v38 }
 0x295   : > { %v1990_v27 = vpop.trf.xlu2 }
 0x296   : > { %v1991_v41 = vunpack.i.l.bf16 %v1990_v27  ;;  %v1994_v40 = vunpack.i.h.bf16 %v1990_v27 }
 0x298   : > { %v2559_v43 = vpack.c.bf16 %v1991_v41, %v1986_v10  ;;  %v2561_v44 = vpack.c.bf16 %v1994_v40, %v1989_v39  ;;  %v1341_v39 = vpop.permute.xlu1 %1340 }
 0x29d   : > { %v1995_v45 = vpop.trf.xlu2 }
 0x29e   : > { %v1996_v36 = vunpack.i.l.bf16 %v1995_v45  ;;  %v1999_v46 = vunpack.i.h.bf16 %v1995_v45 }
 0x2a5   : > { %v2000_v33 = vpop.trf.xlu2 }
 0x2a6   : > { %v2001_v48 = vunpack.i.l.bf16 %v2000_v33  ;;  %v2004_v49 = vunpack.i.h.bf16 %v2000_v33 }
 0x2a8   : > { %v1295_v50 = vpack.c.bf16 %v2001_v48, %v1996_v36  ;;  %v2563_v51 = vpack.c.bf16 %v2004_v49, %v1999_v46 }
 0x2ad   : > { %v2005_v52 = vpop.trf.xlu2 }
 0x2ae   : > { %v2006_v54 = vunpack.i.l.bf16 %v2005_v52  ;;  %v2009_v56 = vunpack.i.h.bf16 %v2005_v52  ;;  %v1351_v52 = vpop.permute.xlu1 %1350 }
 0x2b5   : > { %v2010_v53 = vpop.trf.xlu2 }
 0x2b6   : > { %v2011_v57 = vunpack.i.l.bf16 %v2010_v53  ;;  %v2014_v58 = vunpack.i.h.bf16 %v2010_v53 }
 0x2b8   : > { %v1297_v62 = vpack.c.bf16 %v2011_v57, %v2006_v54  ;;  %v1298_v63 = vpack.c.bf16 %v2014_v58, %v2009_v56 }
 0x2bd   : > { %v2015_v59 = vpop.trf.xlu2 }
 0x2be   : > { %v2016_v24 = vunpack.i.l.bf16 %v2015_v59  ;;  %v2019_v31 = vunpack.i.h.bf16 %v2015_v59 }
 0x2c5   : > { %v2020_v61 = vpop.trf.xlu2 }
 0x2c6   : > { %v2021_v30 = vunpack.i.l.bf16 %v2020_v61  ;;  %v2024_v21 = vunpack.i.h.bf16 %v2020_v61 }
 0x2c8   : > { %v1299_v42 = vpack.c.bf16 %v2021_v30, %v2016_v24  ;;  %v1300_v47 = vpack.c.bf16 %v2024_v21, %v2019_v31 }
 0x2cd   : > { %v2025_v0 = vpop.trf.xlu2 }
 0x2ce   : > { %v2026_v26 = vunpack.i.l.bf16 %v2025_v0  ;;  %v2029_v28 = vunpack.i.h.bf16 %v2025_v0 }
 0x2d5   : > { %v2030_v1 = vpop.trf.xlu2 }
 0x2d6   : > { %v2031_v20 = vunpack.i.l.bf16 %v2030_v1  ;;  %v2034_v25 = vunpack.i.h.bf16 %v2030_v1 }
 0x2d8   : > { %v1301_v29 = vpack.c.bf16 %v2031_v20, %v2026_v26  ;;  %v1302_v35 = vpack.c.bf16 %v2034_v25, %v2029_v28 }
 0x2dd   : > { %v2035_v2 = vpop.trf.xlu2 }
 0x2de   : > { %v2036_v19 = vunpack.i.l.bf16 %v2035_v2  ;;  %v2039_v16 = vunpack.i.h.bf16 %v2035_v2 }
 0x2e5   : > { %v2040_v3 = vpop.trf.xlu2 }
 0x2e6   : > { %v2041_v13 = vunpack.i.l.bf16 %v2040_v3  ;;  %v2044_v14 = vunpack.i.h.bf16 %v2040_v3 }
 0x2e8   : > { %v1303_v17 = vpack.c.bf16 %v2041_v13, %v2036_v19  ;;  %v1304_v22 = vpack.c.bf16 %v2044_v14, %v2039_v16  ;;  %v1361_v13 = vpop.permute.xlu1 %1360 }
 0x2ed   : > { %v2045_v6 = vpop.trf.xlu2 }
 0x2ee   : > { %v2046_v7 = vunpack.i.l.bf16 %v2045_v6  ;;  %v2049_v5 = vunpack.i.h.bf16 %v2045_v6 }
 0x2f5   : > { %v2050_v4 = vpop.trf.xlu2 }
 0x2f6   : > { %v2051_v18 = vunpack.i.l.bf16 %v2050_v4  ;;  %v2054_v23 = vunpack.i.h.bf16 %v2050_v4 }
 0x2f8   : > { %v1305_v9 = vpack.c.bf16 %v2051_v18, %v2046_v7  ;;  %v1306_v12 = vpack.c.bf16 %v2054_v23, %v2049_v5 }
 0x2fa   : > { %1387 = vmatpush.bf16.msra.mxu0 %v1305_v9  ;;  %1850 = vmatpush.bf16.msra.mxu2 %v1305_v9 }
 0x2fb   : > { %1416 = vmatpush.bf16.msra.mxu1 %v1306_v12  ;;  %1858 = vmatpush.bf16.msra.mxu3 %v1306_v12 }
 0x2fe   : > { %1388 = vmatpush.bf16.msra.mxu0 %v1303_v17  ;;  %1851 = vmatpush.bf16.msra.mxu2 %v1303_v17 }
 0x2ff   : > { %1417 = vmatpush.bf16.msra.mxu1 %v1304_v22  ;;  %1859 = vmatpush.bf16.msra.mxu3 %v1304_v22 }
 0x302   : > { %1389 = vmatpush.bf16.msra.mxu0 %v1301_v29  ;;  %1852 = vmatpush.bf16.msra.mxu2 %v1301_v29 }
 0x303   : > { %1418 = vmatpush.bf16.msra.mxu1 %v1302_v35  ;;  %1860 = vmatpush.bf16.msra.mxu3 %v1302_v35 }
 0x306   : > { %1390 = vmatpush.bf16.msra.mxu0 %v1299_v42  ;;  %1853 = vmatpush.bf16.msra.mxu2 %v1299_v42 }
 0x307   : > { %1419 = vmatpush.bf16.msra.mxu1 %v1300_v47  ;;  %1861 = vmatpush.bf16.msra.mxu3 %v1300_v47 }
 0x30a   : > { %1391 = vmatpush.bf16.msra.mxu0 %v1297_v62  ;;  %1854 = vmatpush.bf16.msra.mxu2 %v1297_v62 }
 0x30b   : > { %1420 = vmatpush.bf16.msra.mxu1 %v1298_v63  ;;  %1862 = vmatpush.bf16.msra.mxu3 %v1298_v63 }
 0x30e   : > { %1392 = vmatpush.bf16.msra.mxu0 %v1295_v50  ;;  %1855 = vmatpush.bf16.msra.mxu2 %v1295_v50 }
 0x30f   : > { %1421 = vmatpush.bf16.msra.mxu1 %v2563_v51  ;;  %1863 = vmatpush.bf16.msra.mxu3 %v2563_v51 }
 0x312   : > { %1393 = vmatpush.bf16.msra.mxu0 %v2559_v43  ;;  %1856 = vmatpush.bf16.msra.mxu2 %v2559_v43 }
 0x313   : > { %1422 = vmatpush.bf16.msra.mxu1 %v2561_v44  ;;  %1864 = vmatpush.bf16.msra.mxu3 %v2561_v44 }
 0x316   : > { %1394 = vmatpush.bf16.msra.mxu0 %v2555_v15  ;;  %1857 = vmatpush.bf16.msra.mxu2 %v2555_v15  ;;  %v1336_v15 = vpop.permute.xlu0 %1335 }
 0x317   : > { %1423 = vmatpush.bf16.msra.mxu1 %v2557_v37  ;;  %1865 = vmatpush.bf16.msra.mxu3 %v2557_v37 }
 0x319   : > { %1395 = vmatmul.bf16.vlgmr.msra.gmra.mxu0 %v1821_v11  ;;  %1405 = vmatmul.bf16.vlgmr.msra.gmra.mxu2 %v1823_v55 }
 0x31a   : > { %1424 = vmatmul.bf16.vlgmr.msra.gmra.mxu1 %v1821_v11  ;;  %1434 = vmatmul.bf16.vlgmr.msra.gmra.mxu3 %v1823_v55 }
 0x31e   : > { %v1346_v40 = vpop.permute.xlu0 %1345 }
 0x326   : > { %v1356_v1 = vpop.permute.xlu0 %1355 }
 0x329   : > { %1400 = vmatmul.bf16.gmra.mxu0 %v1822_v60  ;;  %1410 = vmatmul.bf16.gmra.mxu2 %v1824_v32 }
 0x32a   : > { %1429 = vmatmul.bf16.gmra.mxu1 %v1822_v60  ;;  %1439 = vmatmul.bf16.gmra.mxu3 %v1824_v32 }
 0x396   : > { %v1396_v37 = vpop.f32.mrf.mxu0 }
 0x397   : > { %v1397_v38 = vadd.f32 %v1396_v37, %v1326_v34  ;;  %v1425_v27 = vpop.f32.mrf.mxu1 }
 0x398   : > { %v1426_v10 = vadd.f32 %v1425_v27, %v1326_v34 }
 0x39a   : > { %v1445_v41 = vpack.c.bf16 %v1426_v10, %v1397_v38 }
 0x39c   : > { %1453 = vst [vmem:[%s2342_s27] sm:$0xff] %v1445_v41  ;;  %v1406_v43 = vpop.f32.mrf.mxu2 }
 0x39d   : > { %v1407_v44 = vadd.f32 %v1406_v43, %v1346_v40  ;;  %v1435_v45 = vpop.f32.mrf.mxu3 }
 0x39e   : > { %v1436_v33 = vadd.f32 %v1435_v45, %v1346_v40  ;;  %v1398_v36 = vpop.f32.mrf.mxu0 }
 0x39f   : > { %v1399_v46 = vadd.f32 %v1398_v36, %v1331_v8  ;;  %v1427_v48 = vpop.f32.mrf.mxu1 }
 0x3a0   : > { %v1449_v49 = vpack.c.bf16 %v1436_v33, %v1407_v44  ;;  %v1428_v50 = vadd.f32 %v1427_v48, %v1331_v8 }
 0x3a2   : > { %1457 = vst [vmem:[%s2342_s27 + $0x20] sm:$0xff] %v1449_v49  ;;  %v1446_v51 = vpack.c.bf16 %v1428_v50, %v1399_v46 }
 0x3a4   : > { %1454 = vst [vmem:[%s2342_s27 + $0x8] sm:$0xff] %v1446_v51  ;;  %v1408_v53 = vpop.f32.mrf.mxu2 }
 0x3a5   : > { %v1409_v54 = vadd.f32 %v1408_v53, %v1351_v52  ;;  %v1437_v56 = vpop.f32.mrf.mxu3 }
 0x3a6   : > { %v1438_v57 = vadd.f32 %v1437_v56, %v1351_v52  ;;  %v1401_v58 = vpop.f32.mrf.mxu0 }
 0x3a7   : > { %v1402_v62 = vadd.f32 %v1401_v58, %v1336_v15  ;;  %v1430_v63 = vpop.f32.mrf.mxu1 }
 0x3a8   : > { %v1450_v59 = vpack.c.bf16 %v1438_v57, %v1409_v54  ;;  %v1431_v61 = vadd.f32 %v1430_v63, %v1336_v15 }
 0x3aa   : > { %1458 = vst [vmem:[%s2342_s27 + $0x28] sm:$0xff] %v1450_v59  ;;  %v1447_v0 = vpack.c.bf16 %v1431_v61, %v1402_v62 }
 0x3ac   : > { %1455 = vst [vmem:[%s2342_s27 + $0x10] sm:$0xff] %v1447_v0  ;;  %v1411_v2 = vpop.f32.mrf.mxu2 }
 0x3ad   : > { %v1412_v3 = vadd.f32 %v1411_v2, %v1356_v1  ;;  %v1440_v6 = vpop.f32.mrf.mxu3 }
 0x3ae   : > { %v1441_v4 = vadd.f32 %v1440_v6, %v1356_v1  ;;  %v1403_v7 = vpop.f32.mrf.mxu0 }
 0x3af   : > { %v1404_v5 = vadd.f32 %v1403_v7, %v1341_v39  ;;  %v1432_v18 = vpop.f32.mrf.mxu1 }
 0x3b0   : > { %v1451_v23 = vpack.c.bf16 %v1441_v4, %v1412_v3  ;;  %v1433_v9 = vadd.f32 %v1432_v18, %v1341_v39 }
 0x3b2   : > { %1459 = vst [vmem:[%s2342_s27 + $0x30] sm:$0xff] %v1451_v23  ;;  %v1448_v12 = vpack.c.bf16 %v1433_v9, %v1404_v5 }
 0x3b4   : > { %1456 = vst [vmem:[%s2342_s27 + $0x18] sm:$0xff] %v1448_v12  ;;  %v1413_v14 = vpop.f32.mrf.mxu2 }
 0x3b5   : > { %v1414_v19 = vadd.f32 %v1413_v14, %v1361_v13  ;;  %v1442_v16 = vpop.f32.mrf.mxu3 }
 0x3b6   : > { %v1443_v17 = vadd.f32 %v1442_v16, %v1361_v13 }
 0x3b8   : > { %v1452_v20 = vpack.c.bf16 %v1443_v17, %v1414_v19 }
 0x3ba   : > { %1460 = vst [vmem:[%s2342_s27 + $0x38] sm:$0xff] %v1452_v20 }
 0x3bb PF: > { %1476 = sbr.rel (!%p2232_p9) target bundleno = 965 (0x3c5), region = 97  ;;  %s1825_s8 = sshll.u32 (%p2232_p9), %s2113_s26, 3  ;;  %v1522_v22 = vld [vmem:[%s2342_s27] sm:$0xff] (%p2232_p9)  ;;  %v1524_v25 = vld [vmem:[%s2342_s27 + $0x8] sm:$0xff] (%p2232_p9)  ;;  %v1526_v26 = vld [vmem:[%s2342_s27 + $0x10] sm:$0xff] (%p2232_p9) }
 0x3bc   : > { %s1479_s14 = scalar_lea.vmem (%p2232_p9), %s2642_s6, %s1825_s8  ;;  %v1528_v28 = vld [vmem:[%s2342_s27 + $0x18] sm:$0xff] (%p2232_p9)  ;;  %v1530_v29 = vld [vmem:[%s2342_s27 + $0x20] sm:$0xff] (%p2232_p9)  ;;  %v1532_v30 = vld [vmem:[%s2342_s27 + $0x28] sm:$0xff] (%p2232_p9) }
 0x3bd   : > { %1523 = vst [vmem:[%s1479_s14] sm:$0xff] (%p2232_p9), %v1522_v22  ;;  %v1534_v35 = vld [vmem:[%s2342_s27 + $0x30] sm:$0xff] (%p2232_p9) }
 0x3be   : > { %1525 = vst [vmem:[%s1479_s14 + $0x10] sm:$0xff] (%p2232_p9), %v1524_v25 }
 0x3bf   : > { %1527 = vst [vmem:[%s1479_s14 + $0x20] sm:$0xff] (%p2232_p9), %v1526_v26 }
 0x3c0   : > { %1529 = vst [vmem:[%s1479_s14 + $0x30] sm:$0xff] %v1528_v28 }
 0x3c1   : > { %1531 = vst [vmem:[%s1479_s14 + $0x40] sm:$0xff] %v1530_v29  ;;  %v1536_v21 = vld [vmem:[%s2342_s27 + $0x38] sm:$0xff] }
 0x3c2   : > { %1533 = vst [vmem:[%s1479_s14 + $0x50] sm:$0xff] %v1532_v30 }
 0x3c3   : > { %1535 = vst [vmem:[%s1479_s14 + $0x60] sm:$0xff] %v1534_v35 }
 0x3c4   : > { %1537 = vst [vmem:[%s1479_s14 + $0x70] sm:$0xff] %v1536_v21 }
 0x3c5 PF: > { %s17_s29 = sadd.s32 1, %s2125_s29   ;;  %s2655_s25 = sld [smem:[#allocation5_spill]] }
 0x3c6   : > { %p14_p4 = scmp.ge.s32.totalorder %s17_s29, 6   ;;  %s2656_s26 = sld [smem:[#allocation6_spill]] }
 0x3c7   : > { %s2657_s27 = sld [smem:[#allocation7_spill]]  ;;  %s2659_s21 = smov %s2097_s22 }
 0x3c8   : > { %s2658_s28 = sld [smem:[#allocation8_spill]]  ;;  %s2660_s22 = smov %s2237_s16 }
 0x3c9   : > { %s2661_s23 = smov %s2105_s24  ;;  %s2662_s24 = smov %s2240_s17 }
 0x3ca   :  { %16 = sbr.rel (!%p14_p4) target bundleno = 7 (0x7), region = 180 }

</bundles_post_ra>
